<compile_context>
chip_gen: v6e
topology: v6e:2x2x1
jax: 0.10.0
libtpu: 0.0.40
codegen_flags: <defaults>
</compile_context>

<pallas_src>
import jax
import jax.numpy as jnp
from jax.experimental import pallas as pl
from jax.experimental.pallas import tpu as pltpu

# ---- synthetic schema configuration (mirrors GraphAutoencoder.__init__) ----
D_F1, D_F2 = 6, 4                        # raw dims of the two numeric data fields
ENC = 16                                 # field-encoder output_size
BASE = 8                                 # base_entity_representation_size
BOUNDARY = BASE + (ENC + 1) + (ENC + 1)  # 42
AE_HIDDEN, BOTTLENECK = 32, 16           # autoencoder_shapes = [32, 16]
PROJ = BOUNDARY                          # projected_size = max(boundary_sizes)
DEPTH = 0

LANES = 128                              # lane width; fused layers 1..6 are K=128 -> N=128
N_LAYERS = 7                             # enc | ae1 | ae2 | dec1 | dec2 | proj | field-dec
SLAB_ROWS = N_LAYERS * LANES             # 896 (biases folded into the weight blocks)

CONST_LANE = LANES - 1                   # lane 127 carries the constant 1 (bias lane)
IN_W = 16                                # packed input width: [f1 | f2 | pad | 1]
IN_CONST = IN_W - 1                      # column 15 of the packed input is the constant 1

# disjoint lane bands of the single packed output
DEC_OFF = 0                              # [ 0:10)  decoded f1 | f2
BN_OFF = D_F1 + D_F2                     # [10:26)  bottleneck
AE_OFF = BN_OFF + BOTTLENECK             # [26:68)  autoencoder output
assert AE_OFF + BOUNDARY <= CONST_LANE   # bands stay clear of the constant-1 lane
assert D_F1 + D_F2 + 1 <= IN_W


# --------------------------------- kernel ---------------------------------
def _graph_ae_kernel(x_ref, slab_ref, out_ref):
    relu = lambda v: jnp.maximum(v, 0.0)

    def layer(a, i, k=LANES, act=True):
        w = slab_ref[i * LANES:i * LANES + k, :]          # bf16 weight block, static slice
        y = jnp.dot(a.astype(jnp.bfloat16), w,           # native bf16 MXU, f32 accumulate
                    preferred_element_type=jnp.float32)   # (bias rides on the const-1 lane)
        return relu(y) if act else y

    x = x_ref[...]                    # (TN,16) f32: [f1 | f2 | 0 | 1]
    e = layer(x, 0, k=IN_W)           # encode_fields (both encoders, block-diagonal)
    h = layer(e, 1)                   # BasicAutoencoder enc layer 1 (concat folded away)
    bn = layer(h, 2)                  # bottleneck            -> lane band [10:26)
    dh = layer(bn, 3)                 # BasicAutoencoder dec layer 1
    ae = layer(dh, 4, act=False)      # autoencoder output    -> lane band [26:68)
    pr = layer(ae, 5)                 # MLPProjector (Linear + relu)
    de = layer(pr, 6, act=False)      # decode_fields (both decoders) -> band [0:10)

    out_ref[...] = de + bn + ae       # disjoint bands -> one lane-dense 128-wide store


# --------------------------- host-side param packing ---------------------------
def _pack_param_slab(p):
    """Pack all weights + biases into one bf16 (896, 128) slab (one resident DMA).

    Each layer is a (128,128) block; its bias sits in the block's constant row and a 1 at
    (const_row, 127) propagates the constant-1 lane forward through relu."""

    def block(weights, biases, const_row, carry_const=True):
        w = jnp.zeros((LANES, LANES), jnp.float32)
        for mat, r, c in weights:
            w = w.at[r:r + mat.shape[0], c:c + mat.shape[1]].set(mat)
        for vec, c in biases:                     # bias folded into the const-1 row
            vec = vec.reshape(-1)
            w = w.at[const_row, c:c + vec.shape[0]].set(vec)
        if carry_const:                           # keep the constant 1 alive downstream
            w = w.at[const_row, CONST_LANE].set(1.0)
        return w

    # fold [zeros(8) | e1 | 0 | e2 | 0] concat into slices of the first AE weight
    aw1_e1 = p["aw1"][BASE:BASE + ENC, :]
    aw1_e2 = p["aw1"][BASE + ENC + 1:BASE + 2 * ENC + 1, :]

    blocks = [
        block([(p["we1"], 0, 0), (p["we2"], D_F1, ENC)],            # 0: field encoders
              [(p["be1"], 0), (p["be2"], ENC)], IN_CONST),          #    (block-diagonal)
        block([(aw1_e1, 0, 0), (aw1_e2, ENC, 0)],                   # 1: AE enc 1
              [(p["ab1"], 0)], CONST_LANE),
        block([(p["aw2"], 0, BN_OFF)],                              # 2: AE enc 2 -> bn band
              [(p["ab2"], BN_OFF)], CONST_LANE),
        block([(p["dw1"], BN_OFF, 0)],                              # 3: AE dec 1 (reads bn)
              [(p["db1"], 0)], CONST_LANE),
        block([(p["dw2"], 0, AE_OFF)],                              # 4: AE dec 2 -> ae band
              [(p["db2"], AE_OFF)], CONST_LANE),
        block([(p["pw"], AE_OFF, 0)],                               # 5: projector (reads ae)
              [(p["pb"], 0)], CONST_LANE),
        block([(p["ow1"], 0, 0), (p["ow2"], 0, D_F1)],              # 6: field decoders
              [(p["ob1"], 0), (p["ob2"], D_F1)], CONST_LANE,
              carry_const=False),
    ]
    return jnp.concatenate(blocks, axis=0).astype(jnp.bfloat16)     # (896, 128) bf16


# ---------------------------------- wrapper ----------------------------------
def _choose_row_tile(n):
    """Big tiles amortize per-grid-step overhead; keep >=2 steps so v7x can use both TCs."""
    rt = 128
    while rt < 1024 and n >= 4 * rt:
        rt *= 2
    return rt


def graph_autoencoder_forward(f1, f2, params, *, row_tile=None):
    """Fused GraphAutoencoder forward for the single entity type.

    Returns (decoded_f1, decoded_f2, bottlenecks, autoencoder_outputs)."""
    n = f1.shape[0]
    if row_tile is None:
        row_tile = _choose_row_tile(n)
    n_pad = int(pl.cdiv(n, row_tile)) * row_tile

    # narrow 16-lane input per entity row: [f1 | f2 | pad | 1]; the trailing 1 is the
    # constant lane that carries every layer's bias through the packed weight blocks.
    x = jnp.concatenate(
        [f1.astype(jnp.float32), f2.astype(jnp.float32),
         jnp.zeros((n, IN_W - D_F1 - D_F2 - 1), jnp.float32),
         jnp.ones((n, 1), jnp.float32)], axis=1)
    x = jnp.pad(x, ((0, n_pad - n), (0, 0)))                 # padded rows: const=0 -> all-zero

    slab = _pack_param_slab(params)                          # single bf16 param DMA

    flops = 2 * n_pad * LANES * (IN_W + (N_LAYERS - 1) * LANES)
    bytes_accessed = n_pad * IN_W * 4 + SLAB_ROWS * LANES * 2 + n_pad * LANES * 4

    out = pl.pallas_call(
        _graph_ae_kernel,
        out_shape=jax.ShapeDtypeStruct((n_pad, LANES), jnp.float32),
        grid=(n_pad // row_tile,),
        in_specs=[
            pl.BlockSpec((row_tile, IN_W), lambda i: (i, 0)),       # entity rows (narrow)
            pl.BlockSpec((SLAB_ROWS, LANES), lambda i: (0, 0)),     # params (resident)
        ],
        out_specs=pl.BlockSpec((row_tile, LANES), lambda i: (i, 0)),
        compiler_params=pltpu.CompilerParams(
            dimension_semantics=("parallel",)),                     # v7x: 2 TCs share rows
        cost_estimate=pl.CostEstimate(
            flops=flops, transcendentals=0, bytes_accessed=bytes_accessed),
    )(x, slab)

    dec1 = out[:n, DEC_OFF:DEC_OFF + D_F1]
    dec2 = out[:n, DEC_OFF + D_F1:DEC_OFF + D_F1 + D_F2]
    bn = out[:n, BN_OFF:BN_OFF + BOTTLENECK]
    ae_out = out[:n, AE_OFF:AE_OFF + BOUNDARY]
    return dec1, dec2, bn, ae_out


# ------------------------- deterministic parameter init -------------------------
def _xavier(key, fan_in, fan_out):
    a = (6.0 / (fan_in + fan_out)) ** 0.5
    return jax.random.uniform(key, (fan_in, fan_out), jnp.float32, -a, a)


def init_params(key):
    ks = jax.random.split(key, 9)
    bias = lambda d: jnp.full((1, d), 0.01, jnp.float32)   # init_weights: bias <- 0.01
    p = {}
    p["we1"], p["be1"] = _xavier(ks[0], D_F1, ENC), bias(ENC)
    p["we2"], p["be2"] = _xavier(ks[1], D_F2, ENC), bias(ENC)
    p["aw1"], p["ab1"] = _xavier(ks[2], BOUNDARY, AE_HIDDEN), bias(AE_HIDDEN)
    p["aw2"], p["ab2"] = _xavier(ks[3], AE_HIDDEN, BOTTLENECK), bias(BOTTLENECK)
    p["dw1"], p["db1"] = _xavier(ks[4], BOTTLENECK, AE_HIDDEN), bias(AE_HIDDEN)
    p["dw2"], p["db2"] = _xavier(ks[5], AE_HIDDEN, BOUNDARY), bias(BOUNDARY)
    p["pw"], p["pb"] = _xavier(ks[6], BOUNDARY, PROJ), bias(PROJ)
    p["ow1"], p["ob1"] = _xavier(ks[7], PROJ, D_F1), bias(D_F1)
    p["ow2"], p["ob2"] = _xavier(ks[8], PROJ, D_F2), bias(D_F2)
    return p


# ------------------------------ plain-JAX references ------------------------------
def reference_forward(f1, f2, p):
    """Semantic (full f32, HIGHEST precision) reference of the torch forward pass."""
    n = f1.shape[0]
    relu = lambda v: jnp.maximum(v, 0.0)
    hp = jax.lax.Precision.HIGHEST
    mm = lambda a, b: jnp.dot(a, b, precision=hp)
    e1 = relu(mm(f1, p["we1"]) + p["be1"])
    e2 = relu(mm(f2, p["we2"]) + p["be2"])
    x = jnp.concatenate(
        [jnp.zeros((n, BASE)), e1, jnp.zeros((n, 1)), e2, jnp.zeros((n, 1))], axis=1)
    x = jnp.where(jnp.isnan(x), 0.0, x)
    h = relu(mm(x, p["aw1"]) + p["ab1"])
    bn = relu(mm(x=h, y=p["aw2"], precision=hp) if False else mm(h, p["aw2"]) + p["ab2"])
    dh = relu(mm(bn, p["dw1"]) + p["db1"])
    ae_out = mm(dh, p["dw2"]) + p["db2"]
    proj = relu(mm(ae_out, p["pw"]) + p["pb"])
    dec1 = mm(proj, p["ow1"]) + p["ob1"]
    dec2 = mm(proj, p["ow2"]) + p["ob2"]
    return dec1, dec2, bn, ae_out


def reference_forward_bf16(f1, f2, p):
    """Reference with the SAME numerics as the kernel: bf16 weights/activations fed to the
    matmuls, f32 accumulation, biases rounded to bf16 (constant-1 lane folding)."""
    n = f1.shape[0]
    relu = lambda v: jnp.maximum(v, 0.0)
    mm = lambda a, w: jnp.dot(a.astype(jnp.bfloat16), w.astype(jnp.bfloat16),
                              preferred_element_type=jnp.float32)
    bb = lambda b: b.astype(jnp.bfloat16).astype(jnp.float32)
    e1 = relu(mm(f1, p["we1"]) + bb(p["be1"]))
    e2 = relu(mm(f2, p["we2"]) + bb(p["be2"]))
    x = jnp.concatenate(
        [jnp.zeros((n, BASE)), e1, jnp.zeros((n, 1)), e2, jnp.zeros((n, 1))], axis=1)
    h = relu(mm(x, p["aw1"]) + bb(p["ab1"]))
    bn = relu(mm(h, p["aw2"]) + bb(p["ab2"]))
    dh = relu(mm(bn, p["dw1"]) + bb(p["db1"]))
    ae_out = mm(dh, p["dw2"]) + bb(p["db2"])
    proj = relu(mm(ae_out, p["pw"]) + bb(p["pb"]))
    dec1 = mm(proj, p["ow1"]) + bb(p["ob1"])
    dec2 = mm(proj, p["ow2"]) + bb(p["ob2"])
    return dec1, dec2, bn, ae_out


if __name__ == "__main__":
    root = jax.random.PRNGKey(0)
    k_f1, k_f2, k_p = jax.random.split(root, 3)
    n = 1024                                  # entities -> row_tile 512, 2 parallel tiles
    f1 = jax.random.normal(k_f1, (n, D_F1), jnp.float32)
    f2 = jax.random.normal(k_f2, (n, D_F2), jnp.float32)
    params = init_params(k_p)

    outs = graph_autoencoder_forward(f1, f2, params)
    outs = jax.block_until_ready(outs)

    # Tight check: kernel vs a plain-JAX reference using the identical bf16 matmul numerics.
    refs_bf16 = reference_forward_bf16(f1, f2, params)
    for got, want in zip(outs, refs_bf16):
        assert got.shape == want.shape and got.dtype == want.dtype
        assert jnp.allclose(got, want, rtol=1e-3, atol=1e-3), (
            float(jnp.max(jnp.abs(got - want))))

    # Sanity check: bf16 MXU path stays close to the full-precision (HIGHEST) reference.
    refs_f32 = reference_forward(f1, f2, params)
    for got, want in zip(outs, refs_f32):
        assert got.shape == want.shape
        assert jnp.allclose(got, want, rtol=1e-1, atol=1e-1), (
            float(jnp.max(jnp.abs(got - want))))

    print("KERNEL_OK")
</pallas_src>

<mosaic_0001>
module attributes {stable_mosaic.version = 11 : i64} {
  func.func @_graph_ae_kernel(%arg0: i32, %arg1: memref<512x16xf32, #tpu.memory_space<vmem>>, %arg2: memref<896x128xbf16, #tpu.memory_space<vmem>>, %arg3: memref<512x128xf32, #tpu.memory_space<vmem>>) attributes {dimension_semantics = [#tpu.dimension_semantics<parallel>], iteration_bounds = array<i64: 2>, scalar_prefetch = 0 : i64, scratch_operands = 0 : i64, tpu.core_type = #tpu.core_type<tc>, window_params = [{transform_indices = @transform_0, window_bounds = array<i64: 512, 16>}, {pipeline_mode = #tpu.pipeline_mode<synchronous>, transform_indices = @transform_1, window_bounds = array<i64: 896, 128>}, {transform_indices = @transform_2, window_bounds = array<i64: 512, 128>}]} {
    %c0 = arith.constant 0 : index
    %c0_0 = arith.constant 0 : index
    %0 = vector.load %arg1[%c0, %c0_0] : memref<512x16xf32, #tpu.memory_space<vmem>>, vector<512x16xf32>
    %c0_1 = arith.constant 0 : index
    %c0_2 = arith.constant 0 : index
    %1 = vector.load %arg2[%c0_1, %c0_2] : memref<896x128xbf16, #tpu.memory_space<vmem>>, vector<16x128xbf16>
    %2 = arith.truncf %0 : vector<512x16xf32> to vector<512x16xbf16>
    %cst = arith.constant dense<0.000000e+00> : vector<512x128xf32>
    %3 = tpu.matmul %2, %1, %cst {dimension_numbers = #tpu.dot_dimension_numbers<[1], [0], [0], [1], [0, 0, 1, 1], [], []>} : vector<512x16xbf16>, vector<16x128xbf16>, vector<512x128xf32> -> vector<512x128xf32>
    %cst_3 = arith.constant 0.000000e+00 : f32
    %4 = vector.broadcast %cst_3 : f32 to vector<512x128xf32>
    %5 = arith.maximumf %3, %4 : vector<512x128xf32>
    %c128 = arith.constant 128 : index
    %c0_4 = arith.constant 0 : index
    %6 = vector.load %arg2[%c128, %c0_4] : memref<896x128xbf16, #tpu.memory_space<vmem>>, vector<128x128xbf16>
    %7 = arith.truncf %5 : vector<512x128xf32> to vector<512x128xbf16>
    %cst_5 = arith.constant dense<0.000000e+00> : vector<512x128xf32>
    %8 = tpu.matmul %7, %6, %cst_5 {dimension_numbers = #tpu.dot_dimension_numbers<[1], [0], [0], [1], [0, 0, 1, 1], [], []>} : vector<512x128xbf16>, vector<128x128xbf16>, vector<512x128xf32> -> vector<512x128xf32>
    %cst_6 = arith.constant 0.000000e+00 : f32
    %9 = vector.broadcast %cst_6 : f32 to vector<512x128xf32>
    %10 = arith.maximumf %8, %9 : vector<512x128xf32>
    %c256 = arith.constant 256 : index
    %c0_7 = arith.constant 0 : index
    %11 = vector.load %arg2[%c256, %c0_7] : memref<896x128xbf16, #tpu.memory_space<vmem>>, vector<128x128xbf16>
    %12 = arith.truncf %10 : vector<512x128xf32> to vector<512x128xbf16>
    %cst_8 = arith.constant dense<0.000000e+00> : vector<512x128xf32>
    %13 = tpu.matmul %12, %11, %cst_8 {dimension_numbers = #tpu.dot_dimension_numbers<[1], [0], [0], [1], [0, 0, 1, 1], [], []>} : vector<512x128xbf16>, vector<128x128xbf16>, vector<512x128xf32> -> vector<512x128xf32>
    %cst_9 = arith.constant 0.000000e+00 : f32
    %14 = vector.broadcast %cst_9 : f32 to vector<512x128xf32>
    %15 = arith.maximumf %13, %14 : vector<512x128xf32>
    %c384 = arith.constant 384 : index
    %c0_10 = arith.constant 0 : index
    %16 = vector.load %arg2[%c384, %c0_10] : memref<896x128xbf16, #tpu.memory_space<vmem>>, vector<128x128xbf16>
    %17 = arith.truncf %15 : vector<512x128xf32> to vector<512x128xbf16>
    %cst_11 = arith.constant dense<0.000000e+00> : vector<512x128xf32>
    %18 = tpu.matmul %17, %16, %cst_11 {dimension_numbers = #tpu.dot_dimension_numbers<[1], [0], [0], [1], [0, 0, 1, 1], [], []>} : vector<512x128xbf16>, vector<128x128xbf16>, vector<512x128xf32> -> vector<512x128xf32>
    %cst_12 = arith.constant 0.000000e+00 : f32
    %19 = vector.broadcast %cst_12 : f32 to vector<512x128xf32>
    %20 = arith.maximumf %18, %19 : vector<512x128xf32>
    %c512 = arith.constant 512 : index
    %c0_13 = arith.constant 0 : index
    %21 = vector.load %arg2[%c512, %c0_13] : memref<896x128xbf16, #tpu.memory_space<vmem>>, vector<128x128xbf16>
    %22 = arith.truncf %20 : vector<512x128xf32> to vector<512x128xbf16>
    %cst_14 = arith.constant dense<0.000000e+00> : vector<512x128xf32>
    %23 = tpu.matmul %22, %21, %cst_14 {dimension_numbers = #tpu.dot_dimension_numbers<[1], [0], [0], [1], [0, 0, 1, 1], [], []>} : vector<512x128xbf16>, vector<128x128xbf16>, vector<512x128xf32> -> vector<512x128xf32>
    %c640 = arith.constant 640 : index
    %c0_15 = arith.constant 0 : index
    %24 = vector.load %arg2[%c640, %c0_15] : memref<896x128xbf16, #tpu.memory_space<vmem>>, vector<128x128xbf16>
    %25 = arith.truncf %23 : vector<512x128xf32> to vector<512x128xbf16>
    %cst_16 = arith.constant dense<0.000000e+00> : vector<512x128xf32>
    %26 = tpu.matmul %25, %24, %cst_16 {dimension_numbers = #tpu.dot_dimension_numbers<[1], [0], [0], [1], [0, 0, 1, 1], [], []>} : vector<512x128xbf16>, vector<128x128xbf16>, vector<512x128xf32> -> vector<512x128xf32>
    %cst_17 = arith.constant 0.000000e+00 : f32
    %27 = vector.broadcast %cst_17 : f32 to vector<512x128xf32>
    %28 = arith.maximumf %26, %27 : vector<512x128xf32>
    %c768 = arith.constant 768 : index
    %c0_18 = arith.constant 0 : index
    %29 = vector.load %arg2[%c768, %c0_18] : memref<896x128xbf16, #tpu.memory_space<vmem>>, vector<128x128xbf16>
    %30 = arith.truncf %28 : vector<512x128xf32> to vector<512x128xbf16>
    %cst_19 = arith.constant dense<0.000000e+00> : vector<512x128xf32>
    %31 = tpu.matmul %30, %29, %cst_19 {dimension_numbers = #tpu.dot_dimension_numbers<[1], [0], [0], [1], [0, 0, 1, 1], [], []>} : vector<512x128xbf16>, vector<128x128xbf16>, vector<512x128xf32> -> vector<512x128xf32>
    %32 = arith.addf %31, %15 : vector<512x128xf32>
    %33 = arith.addf %32, %23 : vector<512x128xf32>
    %c0_20 = arith.constant 0 : index
    %c0_21 = arith.constant 0 : index
    %34 = vector.load %arg3[%c0_20, %c0_21] : memref<512x128xf32, #tpu.memory_space<vmem>>, vector<512x128xf32>
    tpu.vector_store %arg3[%c0_20, %c0_21], %33 {strides = array<i32>} : memref<512x128xf32, #tpu.memory_space<vmem>>, vector<512x128xf32>,
    return
  }
  func.func @transform_0(%arg0: i32) -> (i32, i32) {
    %c0_i32 = arith.constant 0 : i32
    %c0_i32_0 = arith.constant 0 : i32
    return %arg0, %c0_i32 : i32, i32
  }
  func.func @transform_1(%arg0: i32) -> (i32, i32) {
    %c0_i32 = arith.constant 0 : i32
    %c0_i32_0 = arith.constant 0 : i32
    %c0_i32_1 = arith.constant 0 : i32
    return %c0_i32, %c0_i32_0 : i32, i32
  }
  func.func @transform_2(%arg0: i32) -> (i32, i32) {
    %c0_i32 = arith.constant 0 : i32
    %c0_i32_0 = arith.constant 0 : i32
    return %arg0, %c0_i32 : i32, i32
  }
}

</mosaic_0001>

<bundles_post_ra>
// kernel: tpu_custom_call.1
= control target key start
LH: loop header
LB: loop body
LE: loop exit
PB: predicated region body
PF: predicated region fallthrough
CT: control target
= control target key end

     0   :  { %7 = vsyncpa [#allocation3], 0  ;;  %s5724_s0 = inlined_call_operand.vmem [shape: f32[1024,16], index: 0, kind: input, shape index: {}]   ;;  %s5725_s1 = inlined_call_operand.vmem [shape: bf16[896,128], index: 1, kind: input, shape index: {}]   ;;  %s5726_s2 = inlined_call_operand.hbm [shape: f32[1024,128], index: 2, kind: output, shape index: {}]  }
   0x1   :  { %9 = vsyncpa [#allocation3 + $0x1], 0  ;;  %s4555_s9 = smov 0   ;;  %s4557_s10 = smov 0  }
   0x2   :  { %s4559_s11 = smov 0   ;;  %s4561_s12 = smov 0  }
   0x3 LB: > { %s4576_s13 = sadd.s32 4294967295, %s4535_s12   ;;  %s3470_s14 = sadd.s32 4294967294, %s4535_s12   ;;  %s4535_s12 = sphi %s4561_s12, %s6115_s12   ;;  %s4531_s11 = sphi %s4559_s11, %s6114_s11   ;;  %s4527_s10 = sphi %s4557_s10, %s6113_s10   ;;  %s4523_s9 = sphi %s4555_s9, %s6112_s9  }
   0x4   : > { %s4580_s15 = sadd.s32 1, %s4535_s12   ;;  %s69_s16 = sadd.s32 1, %s4531_s11 }
   0x5   : > { %s66_s17 = ssub.s32 %s4535_s12, %s4580_s15  ;;  %p79_p0 = scmp.ne.s32.totalorder %s4531_s11, %s4527_s10 }
   0x6   : > { %p67_p1 = scmp.eq.s32.totalorder %s66_s17, 0  ;;  %p80_p2 = scmp.eq.s32.totalorder %s4576_s13, 1 }
   0x7   : > { %p85_p3 = scmp.ne.s32.totalorder %s4527_s10, %s4523_s9  ;;  %p86_p4 = scmp.eq.s32.totalorder %s3470_s14, 1 }
   0x8   : > { %s4591_s18 = scalar_select %p67_p1, %s4531_s11, %s69_s16  }
   0x9   : > { %p4593_p5 = por %p80_p2, %p79_p0  ;;  %p4597_p6 = por %p86_p4, %p85_p3 }
   0xa   : > { %p3473_p7 = scmp.ge.s32.totalorder %s4535_s12, 1  ;;  %p116_p8 = scmp.lt.s32.totalorder %s4535_s12, 3 }
   0xc   : > { %p117_p9 = pnand %p3473_p7, %p116_p8 }
   0xe   : > { %120 = sbr.rel (%p117_p9) target bundleno = 1588 (0x634), region = 28 }
  0x13   : > { %v4426_v0 = vld [vmem:[%s5725_s1] sm:$0xff]   ;;  %s3475_s23 = sshll.u32 %s4576_s13, 6  ;;  %v4427_v1 = vld [vmem:[%s5725_s1 + $0x78] sm:$0xff]   ;;  %vm250_vm0 = vcmask 130048   ;;  %v4428_v28 = vld [vmem:[%s5725_s1 + $0x70] sm:$0xff]   ;;  %s3563_s4 = sshll.u32 %s4576_s13, 13 }
  0x14   : > { %p139_p10 = scmp.lt.s32.totalorder %s3475_s23, 127  ;;  %3837 = vmatprep.subr.bf16.mxu0 %v4426_v0  ;;  %4383 = vmatprep.subr.bf16.mxu1 %v4426_v0  ;;  %v4429_v37 = vld [vmem:[%s5725_s1 + $0x68] sm:$0xff]   ;;  %v4430_v42 = vld [vmem:[%s5725_s1 + $0x60] sm:$0xff]   ;;  %v4431_v49 = vld [vmem:[%s5725_s1 + $0x58] sm:$0xff]   ;;  %s5675_s8 = scalar_lea.hbm %s5726_s2, %s3563_s4 }
  0x15   : > { %3838 = vmatpush3.bf16.msra.mxu0 %v4426_v0  ;;  %4384 = vmatpush3.bf16.msra.mxu1 %v4426_v0  ;;  %v4432_v55 = vld [vmem:[%s5725_s1 + $0x50] sm:$0xff]   ;;  %v4433_v63 = vld [vmem:[%s5725_s1 + $0x48] sm:$0xff]   ;;  %s4537_s16 = smov [#allocation2]  }
  0x16   : > { %s6117_s23 = smov (!%p139_p10, %s3475_s23), 127  ;;  %3903 = vmatprep.subr.bf16.mxu1 %v4427_v1  ;;  %s4479_s17 = sshll.u32 %s4537_s16, 4  ;;  %s4480_s17 = int_to_ptr.vmem [resolvable:$false] %s4479_s17 }
  0x17   : > { %s3476_s26 = sshll.u32 %s6117_s23, 3  ;;  %s4481_s21 = scalar_lea.vmem %s4480_s17, 16384 }
  0x18   : > { %s4613_s29 = scalar_lea.vmem %s5724_s0, %s3476_s26 }
  0x19   : > { %v146_v2 = vld [vmem:[%s4613_s29] sm:$0xff]  ;;  %v147_v3 = vld [vmem:[%s4613_s29 + $0x8] sm:$0xff]  ;;  %v148_v4 = vld [vmem:[%s4613_s29 + $0x10] sm:$0xff] }
  0x1a   : > { %v212_v5 = vpack.c.bf16 %v147_v3, %v146_v2  ;;  %v149_v6 = vld [vmem:[%s4613_s29 + $0x18] sm:$0xff]  ;;  %v150_v7 = vld [vmem:[%s4613_s29 + $0x20] sm:$0xff]  ;;  %v151_v8 = vld [vmem:[%s4613_s29 + $0x28] sm:$0xff] }
  0x1b   : > { %v213_v9 = vpack.c.bf16 %v149_v6, %v148_v4  ;;  %v214_v10 = vpack.c.bf16 %v151_v8, %v150_v7  ;;  %v152_v11 = vld [vmem:[%s4613_s29 + $0x30] sm:$0xff]  ;;  %v153_v12 = vld [vmem:[%s4613_s29 + $0x38] sm:$0xff]  ;;  %v154_v13 = vld [vmem:[%s4613_s29 + $0x40] sm:$0xff] }
  0x1c   : > { %3839 = vmatprep.mubr.msk.bf16.mxu0 %vm250_vm0, %v212_v5  ;;  %v155_v14 = vld [vmem:[%s4613_s29 + $0x48] sm:$0xff]  ;;  %v215_v15 = vpack.c.bf16 %v153_v12, %v152_v11  ;;  %v178_v17 = vld [vmem:[%s4613_s29 + $0x100] sm:$0xff]  ;;  %v180_v19 = vld [vmem:[%s4613_s29 + $0x110] sm:$0xff] }
  0x1d   : > { %3840 = vmatmul.mubr.msk.bf16.vlgmr.msra.gmra.mxu0 %vm250_vm0, %v213_v9  ;;  %v216_v16 = vpack.c.bf16 %v155_v14, %v154_v13  ;;  %v179_v18 = vld [vmem:[%s4613_s29 + $0x108] sm:$0xff]  ;;  %v181_v20 = vld [vmem:[%s4613_s29 + $0x118] sm:$0xff]  ;;  %v182_v23 = vld [vmem:[%s4613_s29 + $0x120] sm:$0xff] }
  0x1e   : > { %3843 = vmatprep.mubr.msk.bf16.mxu0 %vm250_vm0, %v214_v10  ;;  %v228_v21 = vpack.c.bf16 %v179_v18, %v178_v17  ;;  %v229_v22 = vpack.c.bf16 %v181_v20, %v180_v19  ;;  %v183_v24 = vld [vmem:[%s4613_s29 + $0x128] sm:$0xff]  ;;  %v156_v25 = vld [vmem:[%s4613_s29 + $0x50] sm:$0xff]  ;;  %v157_v26 = vld [vmem:[%s4613_s29 + $0x58] sm:$0xff] }
  0x1f   : > { %v230_v27 = vpack.c.bf16 %v183_v24, %v182_v23  ;;  %v158_v29 = vld [vmem:[%s4613_s29 + $0x60] sm:$0xff]  ;;  %v159_v30 = vld [vmem:[%s4613_s29 + $0x68] sm:$0xff]  ;;  %v217_v31 = vpack.c.bf16 %v157_v26, %v156_v25  ;;  %v184_v32 = vld [vmem:[%s4613_s29 + $0x130] sm:$0xff] }
  0x20   : > { %3871 = vmatprep.mubr.msk.bf16.mxu1 %vm250_vm0, %v228_v21  ;;  %v185_v33 = vld [vmem:[%s4613_s29 + $0x138] sm:$0xff]  ;;  %v218_v34 = vpack.c.bf16 %v159_v30, %v158_v29  ;;  %v186_v35 = vld [vmem:[%s4613_s29 + $0x140] sm:$0xff]  ;;  %v187_v36 = vld [vmem:[%s4613_s29 + $0x148] sm:$0xff] }
  0x21   : > { %3872 = vmatmul.mubr.msk.bf16.vlgmr.msra.gmra.mxu1 %vm250_vm0, %v229_v22  ;;  %v231_v38 = vpack.c.bf16 %v185_v33, %v184_v32  ;;  %v160_v39 = vld [vmem:[%s4613_s29 + $0x70] sm:$0xff]  ;;  %v161_v40 = vld [vmem:[%s4613_s29 + $0x78] sm:$0xff]  ;;  %v232_v41 = vpack.c.bf16 %v187_v36, %v186_v35  ;;  %v162_v43 = vld [vmem:[%s4613_s29 + $0x80] sm:$0xff] }
  0x22   : > { %3875 = vmatprep.mubr.msk.bf16.mxu1 %vm250_vm0, %v230_v27  ;;  %3904 = vmatpush3.bf16.msra.mxu1 %v4427_v1  ;;  %v163_v44 = vld [vmem:[%s4613_s29 + $0x88] sm:$0xff]  ;;  %v188_v45 = vld [vmem:[%s4613_s29 + $0x150] sm:$0xff]  ;;  %v189_v46 = vld [vmem:[%s4613_s29 + $0x158] sm:$0xff]  ;;  %v219_v50 = vpack.c.bf16 %v161_v40, %v160_v39 }
  0x23   : > { %3905 = vmatprep.subr.bf16.mxu1 %v4428_v28  ;;  %v190_v47 = vld [vmem:[%s4613_s29 + $0x160] sm:$0xff]  ;;  %v191_v48 = vld [vmem:[%s4613_s29 + $0x168] sm:$0xff]  ;;  %v220_v51 = vpack.c.bf16 %v163_v44, %v162_v43  ;;  %v164_v52 = vld [vmem:[%s4613_s29 + $0x90] sm:$0xff]  ;;  %v233_v54 = vpack.c.bf16 %v189_v46, %v188_v45 }
  0x24   : > { %v165_v53 = vld [vmem:[%s4613_s29 + $0x98] sm:$0xff]  ;;  %v166_v56 = vld [vmem:[%s4613_s29 + $0xa0] sm:$0xff]  ;;  %v167_v57 = vld [vmem:[%s4613_s29 + $0xa8] sm:$0xff]  ;;  %v234_v58 = vpack.c.bf16 %v191_v48, %v190_v47 }
  0x25   : > { %3844 = vmatmul.mubr.msk.bf16.gmra.mxu0 %vm250_vm0, %v215_v15  ;;  %v192_v59 = vld [vmem:[%s4613_s29 + $0x170] sm:$0xff]  ;;  %v193_v60 = vld [vmem:[%s4613_s29 + $0x178] sm:$0xff]  ;;  %v194_v61 = vld [vmem:[%s4613_s29 + $0x180] sm:$0xff]  ;;  %v221_v0 = vpack.c.bf16 %v165_v53, %v164_v52  ;;  %v222_v1 = vpack.c.bf16 %v167_v57, %v166_v56 }
  0x26   : > { %3847 = vmatprep.mubr.msk.bf16.mxu0 %vm250_vm0, %v216_v16  ;;  %3906 = vmatpush3.bf16.msra.mxu1 %v4428_v28  ;;  %v195_v62 = vld [vmem:[%s4613_s29 + $0x188] sm:$0xff]  ;;  %v168_v2 = vld [vmem:[%s4613_s29 + $0xb0] sm:$0xff]  ;;  %v169_v3 = vld [vmem:[%s4613_s29 + $0xb8] sm:$0xff]  ;;  %v235_v4 = vpack.c.bf16 %v193_v60, %v192_v59 }
  0x27   : > { %3907 = vmatprep.subr.bf16.mxu1 %v4429_v37  ;;  %v170_v5 = vld [vmem:[%s4613_s29 + $0xc0] sm:$0xff]  ;;  %v171_v6 = vld [vmem:[%s4613_s29 + $0xc8] sm:$0xff]  ;;  %v236_v7 = vpack.c.bf16 %v195_v62, %v194_v61  ;;  %v196_v8 = vld [vmem:[%s4613_s29 + $0x190] sm:$0xff]  ;;  %v223_v12 = vpack.c.bf16 %v169_v3, %v168_v2 }
  0x28   : > { %v197_v9 = vld [vmem:[%s4613_s29 + $0x198] sm:$0xff]  ;;  %v198_v10 = vld [vmem:[%s4613_s29 + $0x1a0] sm:$0xff]  ;;  %v199_v11 = vld [vmem:[%s4613_s29 + $0x1a8] sm:$0xff]  ;;  %v224_v13 = vpack.c.bf16 %v171_v6, %v170_v5 }
  0x29   : > { %3876 = vmatmul.mubr.msk.bf16.gmra.mxu1 %vm250_vm0, %v231_v38  ;;  %v172_v14 = vld [vmem:[%s4613_s29 + $0xd0] sm:$0xff]  ;;  %v173_v15 = vld [vmem:[%s4613_s29 + $0xd8] sm:$0xff]  ;;  %v237_v16 = vpack.c.bf16 %v197_v9, %v196_v8  ;;  %v174_v17 = vld [vmem:[%s4613_s29 + $0xe0] sm:$0xff]  ;;  %v238_v19 = vpack.c.bf16 %v199_v11, %v198_v10 }
  0x2a   : > { %3879 = vmatprep.mubr.msk.bf16.mxu1 %vm250_vm0, %v232_v41  ;;  %3908 = vmatpush3.bf16.msra.mxu1 %v4429_v37  ;;  %v175_v18 = vld [vmem:[%s4613_s29 + $0xe8] sm:$0xff]  ;;  %v200_v20 = vld [vmem:[%s4613_s29 + $0x1b0] sm:$0xff]  ;;  %v201_v21 = vld [vmem:[%s4613_s29 + $0x1b8] sm:$0xff]  ;;  %v225_v24 = vpack.c.bf16 %v173_v15, %v172_v14 }
  0x2b   : > { %3909 = vmatprep.subr.bf16.mxu1 %v4430_v42  ;;  %v202_v22 = vld [vmem:[%s4613_s29 + $0x1c0] sm:$0xff]  ;;  %v203_v23 = vld [vmem:[%s4613_s29 + $0x1c8] sm:$0xff]  ;;  %v226_v25 = vpack.c.bf16 %v175_v18, %v174_v17  ;;  %v239_v26 = vpack.c.bf16 %v201_v21, %v200_v20  ;;  %v176_v28 = vld [vmem:[%s4613_s29 + $0xf0] sm:$0xff] }
  0x2c   : > { %v240_v27 = vpack.c.bf16 %v203_v23, %v202_v22  ;;  %v177_v29 = vld [vmem:[%s4613_s29 + $0xf8] sm:$0xff]  ;;  %v206_v33 = vld [vmem:[%s4613_s29 + $0x1e0] sm:$0xff]  ;;  %v208_v37 = vld [vmem:[%s4613_s29 + $0x1f0] sm:$0xff] }
  0x2d   : > { %3848 = vmatmul.mubr.msk.bf16.gmra.mxu0 %vm250_vm0, %v217_v31  ;;  %v227_v30 = vpack.c.bf16 %v177_v29, %v176_v28  ;;  %v204_v31 = vld [vmem:[%s4613_s29 + $0x1d0] sm:$0xff]  ;;  %v205_v32 = vld [vmem:[%s4613_s29 + $0x1d8] sm:$0xff]  ;;  %v4434_v40 = vld [vmem:[%s5725_s1 + $0x40] sm:$0xff]  }
  0x2e   : > { %3851 = vmatprep.mubr.msk.bf16.mxu0 %vm250_vm0, %v218_v34  ;;  %3910 = vmatpush3.bf16.msra.mxu1 %v4430_v42  ;;  %v207_v34 = vld [vmem:[%s4613_s29 + $0x1e8] sm:$0xff]  ;;  %v241_v35 = vpack.c.bf16 %v205_v32, %v204_v31  ;;  %v209_v38 = vld [vmem:[%s4613_s29 + $0x1f8] sm:$0xff]  ;;  %v4436_v45 = vld [vmem:[%s5725_s1 + $0xb0] sm:$0xff]   ;;  %s135_s29 = sand.u32 1, %s4527_s10  }
  0x2f   : > { %3911 = vmatprep.subr.bf16.mxu1 %v4431_v49  ;;  %v242_v36 = vpack.c.bf16 %v207_v34, %v206_v33  ;;  %v243_v39 = vpack.c.bf16 %v209_v38, %v208_v37  ;;  %v4435_v44 = vld [vmem:[%s5725_s1 + $0xb8] sm:$0xff]   ;;  %v4437_v52 = vld [vmem:[%s5725_s1 + $0xa8] sm:$0xff]   ;;  %v4440_v10 = vld [vmem:[%s5725_s1 + $0x90] sm:$0xff]   ;;  %s3474_s30 = sshll.u32 %s135_s29, 9  ;;  %s5684_s13 = scalar_lea.sflag [#allocation3], %s135_s29 }
  0x30   : > { %3983 = vmatprep.subr.bf16.mxu0 %v4435_v44  ;;  %v4439_v3 = vld [vmem:[%s5725_s1 + $0x98] sm:$0xff]   ;;  %s5420_s3 = scalar_lea.vmem [#allocation2], %s3474_s30 }
  0x31   : > { %3880 = vmatmul.mubr.msk.bf16.gmra.mxu1 %vm250_vm0, %v233_v54  ;;  %3984 = vmatpush3.bf16.msra.mxu0 %v4435_v44  ;;  %s3408_s5 = sshll.u32 %s5420_s3, 4  ;;  %s5677_s5 = int_to_ptr.vmem [resolvable:$true] %s3408_s5 }
  0x32   : > { %3883 = vmatprep.mubr.msk.bf16.mxu1 %vm250_vm0, %v234_v58  ;;  %3912 = vmatpush3.bf16.msra.mxu1 %v4431_v49  ;;  %v4438_v58 = vld [vmem:[%s5725_s1 + $0xa0] sm:$0xff]   ;;  %s4475_s14 = scalar_lea.vmem %s5677_s5, 8192  ;;  %p4482_p0 = scmp.lt.s32.totalorder %s5677_s5, %s4480_s17 }
  0x33   : > { %3913 = vmatprep.subr.bf16.mxu1 %v4432_v55  ;;  %3985 = vmatprep.subr.bf16.mxu0 %v4436_v45  ;;  %p4476_p11 = scmp.ne.s32.totalorder %s5677_s5, %s4475_s14  ;;  %p4483_p1 = scmp.lt.s32.totalorder %s4481_s21, %s4475_s14 }
  0x35   : > { %3852 = vmatmul.mubr.msk.bf16.gmra.mxu0 %vm250_vm0, %v219_v50  ;;  %p4477_p12 = pnand %p4476_p11, %p4593_p5  ;;  %p4484_p2 = por %p4483_p1, %p4482_p0 }
  0x36   : > { %3855 = vmatprep.mubr.msk.bf16.mxu0 %vm250_vm0, %v220_v51  ;;  %3914 = vmatpush3.bf16.msra.mxu1 %v4432_v55 }
  0x37   : > { %3915 = vmatprep.subr.bf16.mxu1 %v4433_v63  ;;  %3986 = vmatpush3.bf16.msra.mxu0 %v4436_v45  ;;  %p4478_p13 = pneg %p4477_p12 }
  0x38   : > { %3987 = vmatprep.subr.bf16.mxu0 %v4437_v52 }
  0x39   : > { %3884 = vmatmul.mubr.msk.bf16.gmra.mxu1 %vm250_vm0, %v235_v4  ;;  %p4485_p3 = pnand %p4484_p2, %p4478_p13 }
  0x3a   : > { %3887 = vmatprep.mubr.msk.bf16.mxu1 %vm250_vm0, %v236_v7  ;;  %3916 = vmatpush3.bf16.msra.mxu1 %v4433_v63 }
  0x3b   : > { %3917 = vmatprep.subr.bf16.mxu1 %v4434_v40  ;;  %3988 = vmatpush3.bf16.msra.mxu0 %v4437_v52 }
  0x3c   : > { %3989 = vmatprep.subr.bf16.mxu0 %v4438_v58 }
  0x3d   : > { %3856 = vmatmul.mubr.msk.bf16.gmra.mxu0 %vm250_vm0, %v221_v0 }
  0x3e   : > { %3859 = vmatprep.mubr.msk.bf16.mxu0 %vm250_vm0, %v222_v1  ;;  %3918 = vmatpush3.bf16.msra.mxu1 %v4434_v40 }
  0x3f   : > { %3990 = vmatpush3.bf16.msra.mxu0 %v4438_v58 }
  0x40   : > { %3991 = vmatprep.subr.bf16.mxu0 %v4439_v3 }
  0x41   : > { %3888 = vmatmul.mubr.msk.bf16.gmra.mxu1 %vm250_vm0, %v237_v16 }
  0x42   : > { %3891 = vmatprep.mubr.msk.bf16.mxu1 %vm250_vm0, %v238_v19  ;;  %v4441_v19 = vld [vmem:[%s5725_s1 + $0x88] sm:$0xff]  }
  0x43   : > { %3992 = vmatpush3.bf16.msra.mxu0 %v4439_v3 }
  0x44   : > { %3993 = vmatprep.subr.bf16.mxu0 %v4440_v10 }
  0x45   : > { %3860 = vmatmul.mubr.msk.bf16.gmra.mxu0 %vm250_vm0, %v223_v12 }
  0x46   : > { %3863 = vmatprep.mubr.msk.bf16.mxu0 %vm250_vm0, %v224_v13 }
  0x47   : > { %3994 = vmatpush3.bf16.msra.mxu0 %v4440_v10 }
  0x48   : > { %3995 = vmatprep.subr.bf16.mxu0 %v4441_v19 }
  0x49   : > { %3892 = vmatmul.mubr.msk.bf16.gmra.mxu1 %vm250_vm0, %v239_v26 }
  0x4a   : > { %3895 = vmatprep.mubr.msk.bf16.mxu1 %vm250_vm0, %v240_v27 }
  0x4b   : > { %3996 = vmatpush3.bf16.msra.mxu0 %v4441_v19 }
  0x4d   : > { %3864 = vmatmul.mubr.msk.bf16.gmra.mxu0 %vm250_vm0, %v225_v24 }
  0x4e   : > { %3867 = vmatprep.mubr.msk.bf16.mxu0 %vm250_vm0, %v226_v25 }
  0x51   : > { %3896 = vmatmul.mubr.msk.bf16.gmra.mxu1 %vm250_vm0, %v241_v35 }
  0x52   : > { %3899 = vmatprep.mubr.msk.bf16.mxu1 %vm250_vm0, %v242_v36 }
  0x55   : > { %3868 = vmatmul.mubr.msk.bf16.gmra.mxu0 %vm250_vm0, %v227_v30 }
  0x59   : > { %3900 = vmatmul.mubr.msk.bf16.gmra.mxu1 %vm250_vm0, %v243_v39 }
  0xdd   : > { %v3841_v41 = vpop.f32.mrf.mxu0 }
  0xde   : > { %v638_v50 = vmax.f32 %v3841_v41, 0.0 }
  0xdf   : > { %v381_v42 = vpop.f32.mrf.mxu0 }
  0xe0   : > { %v636_v48 = vmax.f32 %v381_v42, 0.0 }
  0xe1   : > { %v3842_v43 = vpop.f32.mrf.mxu0  ;;  %v4741_v56 = vpop.f32.mrf.mxu1 }
  0xe2   : > { %v639_v46 = vmax.f32 %v3842_v43, 0.0 }
  0xe3   : > { %v384_v47 = vpop.f32.mrf.mxu0  ;;  %v4746_v59 = vpop.f32.mrf.mxu1 }
  0xe4   : > { %v637_v49 = vmax.f32 %v384_v47, 0.0  ;;  %v717_v54 = vpack.c.bf16 %v639_v46, %v638_v50 }
  0xe5   : > { %v3845_v51 = vpop.f32.mrf.mxu0  ;;  %v4748_v0 = vpop.f32.mrf.mxu1 }
  0xe6   : > { %v716_v53 = vpack.c.bf16 %v637_v49, %v636_v48  ;;  %v642_v1 = vmax.f32 %v3845_v51, 0.0 }
  0xe7   : > { %v397_v55 = vpop.f32.mrf.mxu0  ;;  %v4753_v5 = vpop.f32.mrf.mxu1 }
  0xe8   : > { %3919 = vmatprep.mubr.bf16.mxu1 %v716_v53  ;;  %v640_v62 = vmax.f32 %v397_v55, 0.0  ;;  %v669_v19 = vmax.f32 %v4753_v5, 0.0  ;;  %v671_v5 = vmax.f32 %v4748_v0, 0.0 }
  0xe9   : > { %v3846_v57 = vpop.f32.mrf.mxu0  ;;  %3920 = vmatmul.mubr.bf16.vlgmr.msra.gmra.mxu1 %v717_v54  ;;  %v4755_v8 = vpop.f32.mrf.mxu1 }
  0xea   : > { %v643_v60 = vmax.f32 %v3846_v57, 0.0 }
  0xeb   : > { %v400_v61 = vpop.f32.mrf.mxu0  ;;  %v4760_v11 = vpop.f32.mrf.mxu1 }
  0xec   : > { %v641_v63 = vmax.f32 %v400_v61, 0.0  ;;  %v719_v6 = vpack.c.bf16 %v643_v60, %v642_v1 }
  0xed   : > { %v3849_v2 = vpop.f32.mrf.mxu0  ;;  %v4762_v16 = vpop.f32.mrf.mxu1 }
  0xee   : > { %v718_v4 = vpack.c.bf16 %v641_v63, %v640_v62  ;;  %v646_v17 = vmax.f32 %v3849_v2, 0.0 }
  0xef   : > { %v413_v7 = vpop.f32.mrf.mxu0  ;;  %v4767_v21 = vpop.f32.mrf.mxu1 }
  0xf0   : > { %3923 = vmatprep.mubr.bf16.mxu1 %v718_v4  ;;  %v644_v14 = vmax.f32 %v413_v7, 0.0 }
  0xf1   : > { %v3850_v9 = vpop.f32.mrf.mxu0  ;;  %3924 = vmatmul.mubr.bf16.gmra.mxu1 %v719_v6  ;;  %v4769_v24 = vpop.f32.mrf.mxu1 }
  0xf2   : > { %v647_v12 = vmax.f32 %v3850_v9, 0.0 }
  0xf3   : > { %v416_v13 = vpop.f32.mrf.mxu0  ;;  %v4771_v26 = vpop.f32.mrf.mxu1 }
  0xf4   : > { %v645_v15 = vmax.f32 %v416_v13, 0.0  ;;  %v721_v22 = vpack.c.bf16 %v647_v12, %v646_v17 }
  0xf5   : > { %v3853_v18 = vpop.f32.mrf.mxu0  ;;  %v4773_v31 = vpop.f32.mrf.mxu1 }
  0xf6   : > { %v720_v20 = vpack.c.bf16 %v645_v15, %v644_v14  ;;  %v650_v32 = vmax.f32 %v3853_v18, 0.0  ;;  %v668_v18 = vmax.f32 %v4746_v59, 0.0  ;;  %v670_v59 = vmax.f32 %v4741_v56, 0.0  ;;  %v4442_v56 = vld [vmem:[%s5725_s1 + $0x80] sm:$0xff]  }
  0xf7   : > { %v429_v23 = vpop.f32.mrf.mxu0  ;;  %v4775_v37 = vpop.f32.mrf.mxu1  ;;  %3997 = vmatprep.subr.bf16.mxu0 %v4442_v56 }
  0xf8   : > { %3927 = vmatprep.mubr.bf16.mxu1 %v720_v20  ;;  %v648_v29 = vmax.f32 %v429_v23, 0.0  ;;  %3998 = vmatpush3.bf16.msra.mxu0 %v4442_v56  ;;  %v4449_v56 = vld [vmem:[%s5725_s1 + $0xc8] sm:$0xff]  }
  0xf9   : > { %v3854_v25 = vpop.f32.mrf.mxu0  ;;  %3928 = vmatmul.mubr.bf16.gmra.mxu1 %v721_v22  ;;  %v4777_v41 = vpop.f32.mrf.mxu1 }
  0xfa   : > { %v651_v27 = vmax.f32 %v3854_v25, 0.0 }
  0xfb   : > { %v432_v28 = vpop.f32.mrf.mxu0  ;;  %v4779_v49 = vpop.f32.mrf.mxu1 }
  0xfc   : > { %v649_v30 = vmax.f32 %v432_v28, 0.0  ;;  %v723_v35 = vpack.c.bf16 %v651_v27, %v650_v32 }
  0xfd   : > { %v3857_v33 = vpop.f32.mrf.mxu0  ;;  %v4781_v53 = vpop.f32.mrf.mxu1 }
  0xfe   : > { %v722_v34 = vpack.c.bf16 %v649_v30, %v648_v29  ;;  %v654_v44 = vmax.f32 %v3857_v33, 0.0  ;;  %v732_v30 = vpack.c.bf16 %v669_v19, %v668_v18 }
  0xff   : > { %v445_v36 = vpop.f32.mrf.mxu0  ;;  %v560_v63 = vpop.f32.mrf.mxu1 }
 0x100   : > { %3931 = vmatprep.mubr.bf16.mxu1 %v722_v34  ;;  %v652_v42 = vmax.f32 %v445_v36, 0.0  ;;  %v672_v34 = vmax.f32 %v4760_v11, 0.0  ;;  %v675_v11 = vmax.f32 %v4762_v16, 0.0 }
 0x101   : > { %v3858_v38 = vpop.f32.mrf.mxu0  ;;  %3932 = vmatmul.mubr.bf16.gmra.mxu1 %v723_v35  ;;  %v4783_v4 = vpop.f32.mrf.mxu1  ;;  %v673_v35 = vmax.f32 %v4767_v21, 0.0 }
 0x102   : > { %v655_v39 = vmax.f32 %v3858_v38, 0.0 }
 0x103   : > { %v448_v40 = vpop.f32.mrf.mxu0  ;;  %v573_v15 = vpop.f32.mrf.mxu1  ;;  %v734_v38 = vpack.c.bf16 %v673_v35, %v672_v34  ;;  %v4446_v34 = vld [vmem:[%s5725_s1 + $0xe0] sm:$0xff]   ;;  %v4447_v35 = vld [vmem:[%s5725_s1 + $0xd8] sm:$0xff]  }
 0x104   : > { %v653_v43 = vmax.f32 %v448_v40, 0.0  ;;  %v725_v47 = vpack.c.bf16 %v655_v39, %v654_v44  ;;  %v733_v39 = vpack.c.bf16 %v671_v5, %v670_v59  ;;  %v674_v44 = vmax.f32 %v4755_v8, 0.0 }
 0x105   : > { %v3861_v45 = vpop.f32.mrf.mxu0  ;;  %v3890_v23 = vpop.f32.mrf.mxu1  ;;  %v679_v8 = vmax.f32 %v4773_v31, 0.0 }
 0x106   : > { %v724_v46 = vpack.c.bf16 %v653_v43, %v652_v42  ;;  %v658_v57 = vmax.f32 %v3861_v45, 0.0  ;;  %v676_v42 = vmax.f32 %v4771_v26, 0.0  ;;  %v677_v43 = vmax.f32 %v4775_v37, 0.0 }
 0x107   : > { %v461_v48 = vpop.f32.mrf.mxu0  ;;  %v576_v33 = vpop.f32.mrf.mxu1  ;;  %v735_v21 = vpack.c.bf16 %v675_v11, %v674_v44  ;;  %v680_v26 = vmax.f32 %v4779_v49, 0.0  ;;  %v678_v37 = vmax.f32 %v4769_v24, 0.0 }
 0x108   : > { %3935 = vmatprep.mubr.bf16.mxu1 %v724_v46  ;;  %v656_v54 = vmax.f32 %v461_v48, 0.0  ;;  %v736_v0 = vpack.c.bf16 %v677_v43, %v676_v42  ;;  %v4448_v42 = vld [vmem:[%s5725_s1 + $0xd0] sm:$0xff]  }
 0x109   : > { %v3862_v50 = vpop.f32.mrf.mxu0  ;;  %3936 = vmatmul.mubr.bf16.gmra.mxu1 %v725_v47  ;;  %v3893_v36 = vpop.f32.mrf.mxu1  ;;  %v681_v47 = vmax.f32 %v560_v63, 0.0  ;;  %v687_v63 = vmax.f32 %v3890_v23, 0.0 }
 0x10a   : > { %v659_v51 = vmax.f32 %v3862_v50, 0.0  ;;  %v737_v50 = vpack.c.bf16 %v679_v8, %v678_v37  ;;  %v4450_v8 = vld [vmem:[%s5725_s1 + $0xc0] sm:$0xff]  }
 0x10b   : > { %v464_v52 = vpop.f32.mrf.mxu0  ;;  %v589_v40 = vpop.f32.mrf.mxu1  ;;  %v738_v48 = vpack.c.bf16 %v681_v47, %v680_v26 }
 0x10c   : > { %v657_v55 = vmax.f32 %v464_v52, 0.0  ;;  %v727_v61 = vpack.c.bf16 %v659_v51, %v658_v57  ;;  %v684_v52 = vmax.f32 %v573_v15, 0.0  ;;  %v683_v57 = vmax.f32 %v4781_v53, 0.0 }
 0x10d   : > { %v3865_v58 = vpop.f32.mrf.mxu0  ;;  %v3894_v45 = vpop.f32.mrf.mxu1  ;;  %v688_v24 = vmax.f32 %v589_v40, 0.0  ;;  %v690_v53 = vmax.f32 %v3893_v36, 0.0 }
 0x10e   : > { %v726_v60 = vpack.c.bf16 %v657_v55, %v656_v54  ;;  %v662_v9 = vmax.f32 %v3865_v58, 0.0  ;;  %v685_v54 = vmax.f32 %v576_v33, 0.0  ;;  %v682_v55 = vmax.f32 %v4777_v41, 0.0 }
 0x10f   : > { %v477_v62 = vpop.f32.mrf.mxu0  ;;  %v592_v46 = vpop.f32.mrf.mxu1 }
 0x110   : > { %3939 = vmatprep.mubr.bf16.mxu1 %v726_v60  ;;  %v660_v6 = vmax.f32 %v477_v62, 0.0  ;;  %v740_v49 = vpack.c.bf16 %v685_v54, %v684_v52  ;;  %v739_v60 = vpack.c.bf16 %v683_v57, %v682_v55  ;;  %v689_v31 = vmax.f32 %v592_v46, 0.0 }
 0x111   : > { %v3866_v1 = vpop.f32.mrf.mxu0  ;;  %3940 = vmatmul.mubr.bf16.gmra.mxu1 %v727_v61  ;;  %v3897_v16 = vpop.f32.mrf.mxu1  ;;  %v686_v62 = vmax.f32 %v4783_v4, 0.0 }
 0x112   : > { %v663_v2 = vmax.f32 %v3866_v1, 0.0  ;;  %v694_v4 = vmax.f32 %v3897_v16, 0.0 }
 0x113   : > { %v480_v3 = vpop.f32.mrf.mxu0  ;;  %v605_v51 = vpop.f32.mrf.mxu1 }
 0x114   : > { %v661_v7 = vmax.f32 %v480_v3, 0.0  ;;  %v729_v13 = vpack.c.bf16 %v663_v2, %v662_v9  ;;  %v742_v2 = vpack.c.bf16 %v689_v31, %v688_v24  ;;  %v741_v3 = vpack.c.bf16 %v687_v63, %v686_v62 }
 0x115   : > { %v3869_v10 = vpop.f32.mrf.mxu0  ;;  %v3898_v58 = vpop.f32.mrf.mxu1  ;;  %v691_v9 = vmax.f32 %v3894_v45, 0.0 }
 0x116   : > { %v728_v12 = vpack.c.bf16 %v661_v7, %v660_v6  ;;  %v666_v28 = vmax.f32 %v3869_v10, 0.0  ;;  %v692_v7 = vmax.f32 %v605_v51, 0.0  ;;  %v695_v18 = vmax.f32 %v3898_v58, 0.0 }
 0x117   : > { %v493_v14 = vpop.f32.mrf.mxu0  ;;  %v608_v61 = vpop.f32.mrf.mxu1 }
 0x118   : > { %3943 = vmatprep.mubr.bf16.mxu1 %v728_v12  ;;  %v664_v25 = vmax.f32 %v493_v14, 0.0  ;;  %v693_v41 = vmax.f32 %v608_v61, 0.0 }
 0x119   : > { %v3870_v17 = vpop.f32.mrf.mxu0  ;;  %3944 = vmatmul.mubr.bf16.gmra.mxu1 %v729_v13  ;;  %v3901_v1 = vpop.f32.mrf.mxu1  ;;  %v743_v13 = vpack.c.bf16 %v691_v9, %v690_v53 }
 0x11a   : > { %v667_v20 = vmax.f32 %v3870_v17, 0.0  ;;  %v744_v12 = vpack.c.bf16 %v693_v41, %v692_v7 }
 0x11b   : > { %v496_v22 = vpop.f32.mrf.mxu0  ;;  %v621_v6 = vpop.f32.mrf.mxu1 }
 0x11c   : > { %v665_v27 = vmax.f32 %v496_v22, 0.0  ;;  %v731_v32 = vpack.c.bf16 %v667_v20, %v666_v28  ;;  %v696_v15 = vmax.f32 %v621_v6, 0.0  ;;  %v745_v20 = vpack.c.bf16 %v695_v18, %v694_v4  ;;  %v4444_v28 = vld [vmem:[%s5725_s1 + $0xf0] sm:$0xff]  }
 0x11d   : > { %v3902_v10 = vpop.f32.mrf.mxu1  ;;  %v698_v22 = vmax.f32 %v3901_v1, 0.0 }
 0x11e   : > { %v730_v29 = vpack.c.bf16 %v665_v27, %v664_v25  ;;  %v699_v23 = vmax.f32 %v3902_v10, 0.0  ;;  %v4443_v27 = vld [vmem:[%s5725_s1 + $0xf8] sm:$0xff]  }
 0x11f   : > { %v624_v14 = vpop.f32.mrf.mxu1  ;;  %4063 = vmatprep.subr.bf16.mxu1 %v4443_v27 }
 0x120   : > { %3947 = vmatprep.mubr.bf16.mxu1 %v730_v29  ;;  %v697_v17 = vmax.f32 %v624_v14, 0.0  ;;  %v747_v25 = vpack.c.bf16 %v699_v23, %v698_v22  ;;  %4064 = vmatpush3.bf16.msra.mxu1 %v4443_v27  ;;  %v4445_v29 = vld [vmem:[%s5725_s1 + $0xe8] sm:$0xff]  }
 0x121   : > { %3948 = vmatmul.mubr.bf16.gmra.mxu1 %v731_v32  ;;  %4065 = vmatprep.subr.bf16.mxu1 %v4444_v28 }
 0x122   : > { %3951 = vmatprep.mubr.bf16.mxu1 %v732_v30  ;;  %v746_v19 = vpack.c.bf16 %v697_v17, %v696_v15 }
 0x124   : > { %4066 = vmatpush3.bf16.msra.mxu1 %v4444_v28 }
 0x125   : > { %4067 = vmatprep.subr.bf16.mxu1 %v4445_v29 }
 0x128   : > { %4068 = vmatpush3.bf16.msra.mxu1 %v4445_v29 }
 0x129   : > { %3952 = vmatmul.mubr.bf16.gmra.mxu1 %v733_v39  ;;  %4069 = vmatprep.subr.bf16.mxu1 %v4446_v34 }
 0x12a   : > { %3955 = vmatprep.mubr.bf16.mxu1 %v734_v38 }
 0x12c   : > { %4070 = vmatpush3.bf16.msra.mxu1 %v4446_v34 }
 0x12d   : > { %4071 = vmatprep.subr.bf16.mxu1 %v4447_v35 }
 0x130   : > { %4072 = vmatpush3.bf16.msra.mxu1 %v4447_v35 }
 0x131   : > { %3956 = vmatmul.mubr.bf16.gmra.mxu1 %v735_v21  ;;  %4073 = vmatprep.subr.bf16.mxu1 %v4448_v42 }
 0x132   : > { %3959 = vmatprep.mubr.bf16.mxu1 %v736_v0 }
 0x134   : > { %4074 = vmatpush3.bf16.msra.mxu1 %v4448_v42 }
 0x135   : > { %4075 = vmatprep.subr.bf16.mxu1 %v4449_v56 }
 0x138   : > { %4076 = vmatpush3.bf16.msra.mxu1 %v4449_v56 }
 0x139   : > { %3960 = vmatmul.mubr.bf16.gmra.mxu1 %v737_v50  ;;  %4077 = vmatprep.subr.bf16.mxu1 %v4450_v8 }
 0x13a   : > { %3963 = vmatprep.mubr.bf16.mxu1 %v738_v48 }
 0x13c   : > { %4078 = vmatpush3.bf16.msra.mxu1 %v4450_v8 }
 0x141   : > { %3964 = vmatmul.mubr.bf16.gmra.mxu1 %v739_v60 }
 0x142   : > { %3967 = vmatprep.mubr.bf16.mxu1 %v740_v49 }
 0x149   : > { %3968 = vmatmul.mubr.bf16.gmra.mxu1 %v741_v3 }
 0x14a   : > { %3971 = vmatprep.mubr.bf16.mxu1 %v742_v2 }
 0x151   : > { %3972 = vmatmul.mubr.bf16.gmra.mxu1 %v743_v13 }
 0x152   : > { %3975 = vmatprep.mubr.bf16.mxu1 %v744_v12 }
 0x159   : > { %3976 = vmatmul.mubr.bf16.gmra.mxu1 %v745_v20 }
 0x15a   : > { %3979 = vmatprep.mubr.bf16.mxu1 %v746_v19 }
 0x161   : > { %3980 = vmatmul.mubr.bf16.gmra.mxu1 %v747_v25 }
 0x1a9   : > { %v3921_v30 = vpop.f32.mrf.mxu1 }
 0x1aa   : > { %v1087_v39 = vmax.f32 %v3921_v30, 0.0 }
 0x1ab   : > { %v830_v32 = vpop.f32.mrf.mxu1 }
 0x1ac   : > { %v1085_v36 = vmax.f32 %v830_v32, 0.0 }
 0x1ad   : > { %v3922_v33 = vpop.f32.mrf.mxu1 }
 0x1ae   : > { %v1088_v59 = vmax.f32 %v3922_v33, 0.0 }
 0x1af   : > { %v833_v5 = vpop.f32.mrf.mxu1 }
 0x1b0   : > { %v1086_v38 = vmax.f32 %v833_v5, 0.0  ;;  %v1166_v44 = vpack.c.bf16 %v1088_v59, %v1087_v39 }
 0x1b1   : > { %v3925_v40 = vpop.f32.mrf.mxu1 }
 0x1b2   : > { %v1165_v43 = vpack.c.bf16 %v1086_v38, %v1085_v36  ;;  %v1091_v47 = vmax.f32 %v3925_v40, 0.0 }
 0x1b3   : > { %v846_v11 = vpop.f32.mrf.mxu1 }
 0x1b4   : > { %3999 = vmatprep.mubr.bf16.mxu0 %v1165_v43  ;;  %v1089_v46 = vmax.f32 %v846_v11, 0.0 }
 0x1b5   : > { %v3926_v45 = vpop.f32.mrf.mxu1  ;;  %4000 = vmatmul.mubr.bf16.vlgmr.msra.gmra.mxu0 %v1166_v44 }
 0x1b6   : > { %v1092_v0 = vmax.f32 %v3926_v45, 0.0 }
 0x1b7   : > { %v849_v21 = vpop.f32.mrf.mxu1 }
 0x1b8   : > { %v1090_v26 = vmax.f32 %v849_v21, 0.0  ;;  %v1168_v48 = vpack.c.bf16 %v1092_v0, %v1091_v47 }
 0x1b9   : > { %v3929_v37 = vpop.f32.mrf.mxu1 }
 0x1ba   : > { %v1167_v16 = vpack.c.bf16 %v1090_v26, %v1089_v46  ;;  %v1095_v58 = vmax.f32 %v3929_v37, 0.0 }
 0x1bb   : > { %v862_v50 = vpop.f32.mrf.mxu1 }
 0x1bc   : > { %4003 = vmatprep.mubr.bf16.mxu0 %v1167_v16  ;;  %v1093_v55 = vmax.f32 %v862_v50, 0.0 }
 0x1bd   : > { %v3930_v51 = vpop.f32.mrf.mxu1  ;;  %4004 = vmatmul.mubr.bf16.gmra.mxu0 %v1168_v48 }
 0x1be   : > { %v1096_v52 = vmax.f32 %v3930_v51, 0.0 }
 0x1bf   : > { %v865_v54 = vpop.f32.mrf.mxu1 }
 0x1c0   : > { %v1094_v57 = vmax.f32 %v865_v54, 0.0  ;;  %v1170_v61 = vpack.c.bf16 %v1096_v52, %v1095_v58 }
 0x1c1   : > { %v3933_v49 = vpop.f32.mrf.mxu1 }
 0x1c2   : > { %v1169_v60 = vpack.c.bf16 %v1094_v57, %v1093_v55  ;;  %v1099_v3 = vmax.f32 %v3933_v49, 0.0 }
 0x1c3   : > { %v878_v24 = vpop.f32.mrf.mxu1 }
 0x1c4   : > { %4007 = vmatprep.mubr.bf16.mxu0 %v1169_v60  ;;  %v1097_v1 = vmax.f32 %v878_v24, 0.0 }
 0x1c5   : > { %v3934_v31 = vpop.f32.mrf.mxu1  ;;  %4008 = vmatmul.mubr.bf16.gmra.mxu0 %v1170_v61 }
 0x1c6   : > { %v1100_v62 = vmax.f32 %v3934_v31, 0.0 }
 0x1c7   : > { %v881_v63 = vpop.f32.mrf.mxu1 }
 0x1c8   : > { %v1098_v2 = vmax.f32 %v881_v63, 0.0  ;;  %v1172_v41 = vpack.c.bf16 %v1100_v62, %v1099_v3 }
 0x1c9   : > { %v3937_v6 = vpop.f32.mrf.mxu1 }
 0x1ca   : > { %v1171_v7 = vpack.c.bf16 %v1098_v2, %v1097_v1  ;;  %v1103_v15 = vmax.f32 %v3937_v6, 0.0 }
 0x1cb   : > { %v894_v53 = vpop.f32.mrf.mxu1 }
 0x1cc   : > { %4011 = vmatprep.mubr.bf16.mxu0 %v1171_v7  ;;  %v1101_v13 = vmax.f32 %v894_v53, 0.0 }
 0x1cd   : > { %v3938_v9 = vpop.f32.mrf.mxu1  ;;  %4012 = vmatmul.mubr.bf16.gmra.mxu0 %v1172_v41 }
 0x1ce   : > { %v1104_v10 = vmax.f32 %v3938_v9, 0.0 }
 0x1cf   : > { %v897_v12 = vpop.f32.mrf.mxu1 }
 0x1d0   : > { %v1102_v14 = vmax.f32 %v897_v12, 0.0  ;;  %v1174_v18 = vpack.c.bf16 %v1104_v10, %v1103_v15 }
 0x1d1   : > { %v3941_v17 = vpop.f32.mrf.mxu1 }
 0x1d2   : > { %v1173_v4 = vpack.c.bf16 %v1102_v14, %v1101_v13  ;;  %v1107_v28 = vmax.f32 %v3941_v17, 0.0 }
 0x1d3   : > { %v910_v19 = vpop.f32.mrf.mxu1 }
 0x1d4   : > { %4015 = vmatprep.mubr.bf16.mxu0 %v1173_v4  ;;  %v1105_v25 = vmax.f32 %v910_v19, 0.0 }
 0x1d5   : > { %v3942_v20 = vpop.f32.mrf.mxu1  ;;  %4016 = vmatmul.mubr.bf16.gmra.mxu0 %v1174_v18 }
 0x1d6   : > { %v1108_v22 = vmax.f32 %v3942_v20, 0.0 }
 0x1d7   : > { %v913_v23 = vpop.f32.mrf.mxu1 }
 0x1d8   : > { %v1106_v27 = vmax.f32 %v913_v23, 0.0  ;;  %v1176_v32 = vpack.c.bf16 %v1108_v22, %v1107_v28 }
 0x1d9   : > { %v3945_v29 = vpop.f32.mrf.mxu1 }
 0x1da   : > { %v1175_v30 = vpack.c.bf16 %v1106_v27, %v1105_v25  ;;  %v1111_v38 = vmax.f32 %v3945_v29, 0.0 }
 0x1db   : > { %v926_v33 = vpop.f32.mrf.mxu1 }
 0x1dc   : > { %4019 = vmatprep.mubr.bf16.mxu0 %v1175_v30  ;;  %v1109_v5 = vmax.f32 %v926_v33, 0.0 }
 0x1dd   : > { %v3946_v34 = vpop.f32.mrf.mxu1  ;;  %4020 = vmatmul.mubr.bf16.gmra.mxu0 %v1176_v32 }
 0x1de   : > { %v1112_v35 = vmax.f32 %v3946_v34, 0.0 }
 0x1df   : > { %v929_v59 = vpop.f32.mrf.mxu1 }
 0x1e0   : > { %v1110_v36 = vmax.f32 %v929_v59, 0.0  ;;  %v1178_v42 = vpack.c.bf16 %v1112_v35, %v1111_v38 }
 0x1e1   : > { %v3949_v39 = vpop.f32.mrf.mxu1 }
 0x1e2   : > { %v1177_v40 = vpack.c.bf16 %v1110_v36, %v1109_v5  ;;  %v1115_v21 = vmax.f32 %v3949_v39, 0.0 }
 0x1e3   : > { %v942_v43 = vpop.f32.mrf.mxu1 }
 0x1e4   : > { %4023 = vmatprep.mubr.bf16.mxu0 %v1177_v40  ;;  %v1113_v56 = vmax.f32 %v942_v43, 0.0 }
 0x1e5   : > { %v3950_v44 = vpop.f32.mrf.mxu1  ;;  %4024 = vmatmul.mubr.bf16.gmra.mxu0 %v1178_v42 }
 0x1e6   : > { %v1116_v11 = vmax.f32 %v3950_v44, 0.0 }
 0x1e7   : > { %v945_v45 = vpop.f32.mrf.mxu1 }
 0x1e8   : > { %v1114_v0 = vmax.f32 %v945_v45, 0.0  ;;  %v1180_v47 = vpack.c.bf16 %v1116_v11, %v1115_v21 }
 0x1e9   : > { %v3953_v46 = vpop.f32.mrf.mxu1 }
 0x1ea   : > { %v1179_v26 = vpack.c.bf16 %v1114_v0, %v1113_v56  ;;  %v1119_v52 = vmax.f32 %v3953_v46, 0.0 }
 0x1eb   : > { %v958_v37 = vpop.f32.mrf.mxu1 }
 0x1ec   : > { %4027 = vmatprep.mubr.bf16.mxu0 %v1179_v26  ;;  %v1117_v50 = vmax.f32 %v958_v37, 0.0 }
 0x1ed   : > { %v3954_v8 = vpop.f32.mrf.mxu1  ;;  %4028 = vmatmul.mubr.bf16.gmra.mxu0 %v1180_v47 }
 0x1ee   : > { %v1120_v16 = vmax.f32 %v3954_v8, 0.0 }
 0x1ef   : > { %v961_v48 = vpop.f32.mrf.mxu1 }
 0x1f0   : > { %v1118_v51 = vmax.f32 %v961_v48, 0.0  ;;  %v1182_v57 = vpack.c.bf16 %v1120_v16, %v1119_v52 }
 0x1f1   : > { %v3957_v54 = vpop.f32.mrf.mxu1 }
 0x1f2   : > { %v1181_v55 = vpack.c.bf16 %v1118_v51, %v1117_v50  ;;  %v1123_v62 = vmax.f32 %v3957_v54, 0.0 }
 0x1f3   : > { %v974_v58 = vpop.f32.mrf.mxu1 }
 0x1f4   : > { %4031 = vmatprep.mubr.bf16.mxu0 %v1181_v55  ;;  %v1121_v24 = vmax.f32 %v974_v58, 0.0 }
 0x1f5   : > { %v3958_v49 = vpop.f32.mrf.mxu1  ;;  %4032 = vmatmul.mubr.bf16.gmra.mxu0 %v1182_v57 }
 0x1f6   : > { %v1124_v60 = vmax.f32 %v3958_v49, 0.0 }
 0x1f7   : > { %v977_v61 = vpop.f32.mrf.mxu1 }
 0x1f8   : > { %v1122_v31 = vmax.f32 %v977_v61, 0.0  ;;  %v1184_v2 = vpack.c.bf16 %v1124_v60, %v1123_v62  ;;  %v4452_v62 = vld [vmem:[%s5725_s1 + $0x130] sm:$0xff]  }
 0x1f9   : > { %v3961_v63 = vpop.f32.mrf.mxu1 }
 0x1fa   : > { %v1183_v1 = vpack.c.bf16 %v1122_v31, %v1121_v24  ;;  %v1127_v10 = vmax.f32 %v3961_v63, 0.0  ;;  %v4451_v31 = vld [vmem:[%s5725_s1 + $0x138] sm:$0xff]   ;;  %v4453_v63 = vld [vmem:[%s5725_s1 + $0x128] sm:$0xff]  }
 0x1fb   : > { %v990_v3 = vpop.f32.mrf.mxu1  ;;  %4143 = vmatprep.subr.bf16.mxu0 %v4451_v31 }
 0x1fc   : > { %4035 = vmatprep.mubr.bf16.mxu0 %v1183_v1  ;;  %v1125_v53 = vmax.f32 %v990_v3, 0.0  ;;  %4144 = vmatpush3.bf16.msra.mxu0 %v4451_v31 }
 0x1fd   : > { %v3962_v6 = vpop.f32.mrf.mxu1  ;;  %4036 = vmatmul.mubr.bf16.gmra.mxu0 %v1184_v2  ;;  %4145 = vmatprep.subr.bf16.mxu0 %v4452_v62 }
 0x1fe   : > { %v1128_v7 = vmax.f32 %v3962_v6, 0.0  ;;  %v4454_v6 = vld [vmem:[%s5725_s1 + $0x120] sm:$0xff]  }
 0x1ff   : > { %v993_v41 = vpop.f32.mrf.mxu1 }
 0x200   : > { %v1126_v9 = vmax.f32 %v993_v41, 0.0  ;;  %v1186_v14 = vpack.c.bf16 %v1128_v7, %v1127_v10  ;;  %4146 = vmatpush3.bf16.msra.mxu0 %v4452_v62  ;;  %v4455_v7 = vld [vmem:[%s5725_s1 + $0x118] sm:$0xff]  }
 0x201   : > { %v3965_v12 = vpop.f32.mrf.mxu1  ;;  %4147 = vmatprep.subr.bf16.mxu0 %v4453_v63 }
 0x202   : > { %v1185_v13 = vpack.c.bf16 %v1126_v9, %v1125_v53  ;;  %v1131_v22 = vmax.f32 %v3965_v12, 0.0 }
 0x203   : > { %v1006_v15 = vpop.f32.mrf.mxu1 }
 0x204   : > { %4039 = vmatprep.mubr.bf16.mxu0 %v1185_v13  ;;  %v1129_v19 = vmax.f32 %v1006_v15, 0.0  ;;  %4148 = vmatpush3.bf16.msra.mxu0 %v4453_v63 }
 0x205   : > { %v3966_v17 = vpop.f32.mrf.mxu1  ;;  %4040 = vmatmul.mubr.bf16.gmra.mxu0 %v1186_v14  ;;  %4149 = vmatprep.subr.bf16.mxu0 %v4454_v6  ;;  %v4456_v14 = vld [vmem:[%s5725_s1 + $0x110] sm:$0xff]  }
 0x206   : > { %v1132_v4 = vmax.f32 %v3966_v17, 0.0 }
 0x207   : > { %v1009_v18 = vpop.f32.mrf.mxu1 }
 0x208   : > { %v1130_v20 = vmax.f32 %v1009_v18, 0.0  ;;  %v1188_v27 = vpack.c.bf16 %v1132_v4, %v1131_v22  ;;  %4150 = vmatpush3.bf16.msra.mxu0 %v4454_v6 }
 0x209   : > { %v3969_v23 = vpop.f32.mrf.mxu1  ;;  %4151 = vmatprep.subr.bf16.mxu0 %v4455_v7 }
 0x20a   : > { %v1187_v25 = vpack.c.bf16 %v1130_v20, %v1129_v19  ;;  %v1135_v35 = vmax.f32 %v3969_v23, 0.0  ;;  %v4457_v19 = vld [vmem:[%s5725_s1 + $0x108] sm:$0xff]  }
 0x20b   : > { %v1022_v28 = vpop.f32.mrf.mxu1 }
 0x20c   : > { %4043 = vmatprep.mubr.bf16.mxu0 %v1187_v25  ;;  %v1133_v33 = vmax.f32 %v1022_v28, 0.0  ;;  %4152 = vmatpush3.bf16.msra.mxu0 %v4455_v7 }
 0x20d   : > { %v3970_v29 = vpop.f32.mrf.mxu1  ;;  %4044 = vmatmul.mubr.bf16.gmra.mxu0 %v1188_v27  ;;  %4153 = vmatprep.subr.bf16.mxu0 %v4456_v14 }
 0x20e   : > { %v1136_v30 = vmax.f32 %v3970_v29, 0.0  ;;  %v4458_v29 = vld [vmem:[%s5725_s1 + $0x100] sm:$0xff]  }
 0x20f   : > { %v1025_v32 = vpop.f32.mrf.mxu1 }
 0x210   : > { %v1134_v34 = vmax.f32 %v1025_v32, 0.0  ;;  %v1190_v36 = vpack.c.bf16 %v1136_v30, %v1135_v35  ;;  %4154 = vmatpush3.bf16.msra.mxu0 %v4456_v14 }
 0x211   : > { %v3973_v59 = vpop.f32.mrf.mxu1  ;;  %4155 = vmatprep.subr.bf16.mxu0 %v4457_v19 }
 0x212   : > { %v1189_v5 = vpack.c.bf16 %v1134_v34, %v1133_v33  ;;  %v1139_v11 = vmax.f32 %v3973_v59, 0.0 }
 0x213   : > { %v1038_v38 = vpop.f32.mrf.mxu1 }
 0x214   : > { %4047 = vmatprep.mubr.bf16.mxu0 %v1189_v5  ;;  %v1137_v43 = vmax.f32 %v1038_v38, 0.0  ;;  %4156 = vmatpush3.bf16.msra.mxu0 %v4457_v19 }
 0x215   : > { %v3974_v39 = vpop.f32.mrf.mxu1  ;;  %4048 = vmatmul.mubr.bf16.gmra.mxu0 %v1190_v36  ;;  %4157 = vmatprep.subr.bf16.mxu0 %v4458_v29 }
 0x216   : > { %v1140_v40 = vmax.f32 %v3974_v39, 0.0 }
 0x217   : > { %v1041_v42 = vpop.f32.mrf.mxu1 }
 0x218   : > { %v1138_v44 = vmax.f32 %v1041_v42, 0.0  ;;  %v1192_v0 = vpack.c.bf16 %v1140_v40, %v1139_v11  ;;  %4158 = vmatpush3.bf16.msra.mxu0 %v4458_v29 }
 0x219   : > { %v3977_v45 = vpop.f32.mrf.mxu1 }
 0x21a   : > { %v1191_v56 = vpack.c.bf16 %v1138_v44, %v1137_v43  ;;  %v1143_v16 = vmax.f32 %v3977_v45, 0.0 }
 0x21b   : > { %v1054_v21 = vpop.f32.mrf.mxu1 }
 0x21c   : > { %4051 = vmatprep.mubr.bf16.mxu0 %v1191_v56  ;;  %v1141_v37 = vmax.f32 %v1054_v21, 0.0 }
 0x21d   : > { %v3978_v46 = vpop.f32.mrf.mxu1  ;;  %4052 = vmatmul.mubr.bf16.gmra.mxu0 %v1192_v0 }
 0x21e   : > { %v1144_v26 = vmax.f32 %v3978_v46, 0.0 }
 0x21f   : > { %v1057_v47 = vpop.f32.mrf.mxu1 }
 0x220   : > { %v1142_v8 = vmax.f32 %v1057_v47, 0.0  ;;  %v1194_v51 = vpack.c.bf16 %v1144_v26, %v1143_v16 }
 0x221   : > { %v3981_v48 = vpop.f32.mrf.mxu1 }
 0x222   : > { %v1193_v50 = vpack.c.bf16 %v1142_v8, %v1141_v37  ;;  %v1147_v60 = vmax.f32 %v3981_v48, 0.0 }
 0x223   : > { %v1070_v52 = vpop.f32.mrf.mxu1 }
 0x224   : > { %4055 = vmatprep.mubr.bf16.mxu0 %v1193_v50  ;;  %v1145_v58 = vmax.f32 %v1070_v52, 0.0 }
 0x225   : > { %v3982_v54 = vpop.f32.mrf.mxu1  ;;  %4056 = vmatmul.mubr.bf16.gmra.mxu0 %v1194_v51 }
 0x226   : > { %v1148_v55 = vmax.f32 %v3982_v54, 0.0 }
 0x227   : > { %v1073_v57 = vpop.f32.mrf.mxu1 }
 0x228   : > { %v1146_v49 = vmax.f32 %v1073_v57, 0.0  ;;  %v1196_v24 = vpack.c.bf16 %v1148_v55, %v1147_v60 }
 0x22a   : > { %v1195_v61 = vpack.c.bf16 %v1146_v49, %v1145_v58 }
 0x22c   : > { %4059 = vmatprep.mubr.bf16.mxu0 %v1195_v61 }
 0x22d   : > { %4060 = vmatmul.mubr.bf16.gmra.mxu0 %v1196_v24 }
 0x275   : > { %v4837_v1 = vpop.f32.mrf.mxu0 }
 0x276   : > { %v5774_v12 = vmax.f32 %v4837_v1, 0.0 }
 0x277   : > { %v4839_v2 = vpop.f32.mrf.mxu0 }
 0x278   : > { %v5773_v9 = vmax.f32 %v4839_v2, 0.0 }
 0x279   : > { %v4841_v3 = vpop.f32.mrf.mxu0 }
 0x27a   : > { %v5772_v41 = vmax.f32 %v4841_v3, 0.0 }
 0x27b   : > { %v4850_v53 = vpop.f32.mrf.mxu0 }
 0x27c   : > { %v5767_v10 = vmax.f32 %v4850_v53, 0.0  ;;  %v1615_v17 = vpack.c.bf16 %v5772_v41, %v5774_v12 }
 0x27d   : > { %v4855_v13 = vpop.f32.mrf.mxu0 }
 0x27e   : > { %v1614_v15 = vpack.c.bf16 %v5767_v10, %v5773_v9  ;;  %v5766_v27 = vmax.f32 %v4855_v13, 0.0 }
 0x27f   : > { %v4868_v4 = vpop.f32.mrf.mxu0 }
 0x280   : > { %4079 = vmatprep.mubr.bf16.mxu1 %v1614_v15  ;;  %v5765_v23 = vmax.f32 %v4868_v4, 0.0 }
 0x281   : > { %v4870_v18 = vpop.f32.mrf.mxu0  ;;  %4080 = vmatmul.mubr.bf16.vlgmr.msra.gmra.mxu1 %v1615_v17 }
 0x282   : > { %v5764_v20 = vmax.f32 %v4870_v18, 0.0 }
 0x283   : > { %v4876_v22 = vpop.f32.mrf.mxu0 }
 0x284   : > { %v5759_v25 = vmax.f32 %v4876_v22, 0.0  ;;  %v1617_v32 = vpack.c.bf16 %v5764_v20, %v5766_v27 }
 0x285   : > { %v4881_v28 = vpop.f32.mrf.mxu0 }
 0x286   : > { %v1616_v30 = vpack.c.bf16 %v5759_v25, %v5765_v23  ;;  %v5758_v38 = vmax.f32 %v4881_v28, 0.0 }
 0x287   : > { %v4894_v33 = vpop.f32.mrf.mxu0 }
 0x288   : > { %4083 = vmatprep.mubr.bf16.mxu1 %v1616_v30  ;;  %v5757_v5 = vmax.f32 %v4894_v33, 0.0 }
 0x289   : > { %v4896_v34 = vpop.f32.mrf.mxu0  ;;  %4084 = vmatmul.mubr.bf16.gmra.mxu1 %v1617_v32 }
 0x28a   : > { %v5756_v35 = vmax.f32 %v4896_v34, 0.0 }
 0x28b   : > { %v4899_v59 = vpop.f32.mrf.mxu0 }
 0x28c   : > { %v5751_v36 = vmax.f32 %v4899_v59, 0.0  ;;  %v1619_v42 = vpack.c.bf16 %v5756_v35, %v5758_v38 }
 0x28d   : > { %v4904_v39 = vpop.f32.mrf.mxu0 }
 0x28e   : > { %v1618_v40 = vpack.c.bf16 %v5751_v36, %v5757_v5  ;;  %v5750_v21 = vmax.f32 %v4904_v39, 0.0 }
 0x28f   : > { %v4914_v43 = vpop.f32.mrf.mxu0 }
 0x290   : > { %4087 = vmatprep.mubr.bf16.mxu1 %v1618_v40  ;;  %v5749_v56 = vmax.f32 %v4914_v43, 0.0 }
 0x291   : > { %v4916_v44 = vpop.f32.mrf.mxu0  ;;  %4088 = vmatmul.mubr.bf16.gmra.mxu1 %v1619_v42 }
 0x292   : > { %v5748_v11 = vmax.f32 %v4916_v44, 0.0 }
 0x293   : > { %v4919_v45 = vpop.f32.mrf.mxu0 }
 0x294   : > { %v5743_v0 = vmax.f32 %v4919_v45, 0.0  ;;  %v1621_v47 = vpack.c.bf16 %v5748_v11, %v5750_v21 }
 0x295   : > { %v4924_v46 = vpop.f32.mrf.mxu0 }
 0x296   : > { %v1620_v26 = vpack.c.bf16 %v5743_v0, %v5749_v56  ;;  %v5742_v52 = vmax.f32 %v4924_v46, 0.0 }
 0x297   : > { %v4934_v37 = vpop.f32.mrf.mxu0 }
 0x298   : > { %4091 = vmatprep.mubr.bf16.mxu1 %v1620_v26  ;;  %v5741_v50 = vmax.f32 %v4934_v37, 0.0 }
 0x299   : > { %v4936_v8 = vpop.f32.mrf.mxu0  ;;  %4092 = vmatmul.mubr.bf16.gmra.mxu1 %v1621_v47 }
 0x29a   : > { %v5740_v16 = vmax.f32 %v4936_v8, 0.0 }
 0x29b   : > { %v4939_v48 = vpop.f32.mrf.mxu0 }
 0x29c   : > { %v5735_v51 = vmax.f32 %v4939_v48, 0.0  ;;  %v1623_v57 = vpack.c.bf16 %v5740_v16, %v5742_v52 }
 0x29d   : > { %v4944_v54 = vpop.f32.mrf.mxu0 }
 0x29e   : > { %v1622_v55 = vpack.c.bf16 %v5735_v51, %v5741_v50  ;;  %v5734_v62 = vmax.f32 %v4944_v54, 0.0 }
 0x29f   : > { %v4954_v58 = vpop.f32.mrf.mxu0 }
 0x2a0   : > { %4095 = vmatprep.mubr.bf16.mxu1 %v1622_v55  ;;  %v5733_v24 = vmax.f32 %v4954_v58, 0.0 }
 0x2a1   : > { %v4956_v49 = vpop.f32.mrf.mxu0  ;;  %4096 = vmatmul.mubr.bf16.gmra.mxu1 %v1623_v57 }
 0x2a2   : > { %5878 = vst [vmem:[#allocation5_spill] sm:$0xff] %v4956_v49  ;;  %v5732_v60 = vmax.f32 %v4956_v49, 0.0 }
 0x2a3   : > { %v4959_v61 = vpop.f32.mrf.mxu0 }
 0x2a4   : > { %5879 = vst [vmem:[#allocation6_spill] sm:$0xff] %v4959_v61  ;;  %v5727_v31 = vmax.f32 %v4959_v61, 0.0  ;;  %v1625_v7 = vpack.c.bf16 %v5732_v60, %v5734_v62 }
 0x2a5   : > { %v4964_v63 = vpop.f32.mrf.mxu0 }
 0x2a6   : > { %5880 = vst [vmem:[#allocation7_spill] sm:$0xff] %v4964_v63  ;;  %v1624_v6 = vpack.c.bf16 %v5727_v31, %v5733_v24  ;;  %v5731_v32 = vmax.f32 %v4964_v63, 0.0 }
 0x2a7   : > { %v4974_v14 = vpop.f32.mrf.mxu0 }
 0x2a8   : > { %5881 = vst [vmem:[#allocation8_spill] sm:$0xff] %v4974_v14  ;;  %4099 = vmatprep.mubr.bf16.mxu1 %v1624_v6  ;;  %v5729_v29 = vmax.f32 %v4974_v14, 0.0 }
 0x2a9   : > { %v4976_v15 = vpop.f32.mrf.mxu0  ;;  %4100 = vmatmul.mubr.bf16.gmra.mxu1 %v1625_v7 }
 0x2aa   : > { %5882 = vst [vmem:[#allocation9_spill] sm:$0xff] %v4976_v15  ;;  %v5730_v17 = vmax.f32 %v4976_v15, 0.0 }
 0x2ab   : > { %v4979_v19 = vpop.f32.mrf.mxu0 }
 0x2ac   : > { %5883 = vst [vmem:[#allocation10_spill] sm:$0xff] %v4979_v19  ;;  %v5728_v30 = vmax.f32 %v4979_v19, 0.0  ;;  %v1627_v26 = vpack.c.bf16 %v5730_v17, %v5731_v32 }
 0x2ad   : > { %v4984_v40 = vpop.f32.mrf.mxu0 }
 0x2ae   : > { %5884 = vst [vmem:[#allocation11_spill] sm:$0xff] %v4984_v40  ;;  %v1626_v42 = vpack.c.bf16 %v5728_v30, %v5729_v29  ;;  %v5739_v30 = vmax.f32 %v4984_v40, 0.0 }
 0x2af   : > { %v4994_v47 = vpop.f32.mrf.mxu0 }
 0x2b0   : > { %5885 = vst [vmem:[#allocation12_spill] sm:$0xff] %v4994_v47  ;;  %4103 = vmatprep.mubr.bf16.mxu1 %v1626_v42  ;;  %v5737_v7 = vmax.f32 %v4994_v47, 0.0 }
 0x2b1   : > { %v4996_v55 = vpop.f32.mrf.mxu0  ;;  %4104 = vmatmul.mubr.bf16.gmra.mxu1 %v1627_v26 }
 0x2b2   : > { %5886 = vst [vmem:[#allocation13_spill] sm:$0xff] %v4996_v55  ;;  %v5738_v57 = vmax.f32 %v4996_v55, 0.0 }
 0x2b3   : > { %v4999_v6 = vpop.f32.mrf.mxu0 }
 0x2b4   : > { %5887 = vst [vmem:[#allocation14_spill] sm:$0xff] %v4999_v6  ;;  %v5736_v31 = vmax.f32 %v4999_v6, 0.0  ;;  %v1629_v26 = vpack.c.bf16 %v5738_v57, %v5739_v30 }
 0x2b5   : > { %v5004_v29 = vpop.f32.mrf.mxu0 }
 0x2b6   : > { %5888 = vst [vmem:[#allocation15_spill] sm:$0xff] %v5004_v29  ;;  %v1628_v42 = vpack.c.bf16 %v5736_v31, %v5737_v7  ;;  %v5747_v31 = vmax.f32 %v5004_v29, 0.0 }
 0x2b7   : > { %v5014_v17 = vpop.f32.mrf.mxu0 }
 0x2b8   : > { %5889 = vst [vmem:[#allocation16_spill] sm:$0xff] %v5014_v17  ;;  %4107 = vmatprep.mubr.bf16.mxu1 %v1628_v42  ;;  %v5745_v62 = vmax.f32 %v5014_v17, 0.0 }
 0x2b9   : > { %v5016_v32 = vpop.f32.mrf.mxu0  ;;  %4108 = vmatmul.mubr.bf16.gmra.mxu1 %v1629_v26 }
 0x2ba   : > { %5890 = vst [vmem:[#allocation17_spill] sm:$0xff] %v5016_v32  ;;  %v5746_v60 = vmax.f32 %v5016_v32, 0.0 }
 0x2bb   : > { %v5019_v24 = vpop.f32.mrf.mxu0 }
 0x2bc   : > { %5891 = vst [vmem:[#allocation18_spill] sm:$0xff] %v5019_v24  ;;  %v5744_v51 = vmax.f32 %v5019_v24, 0.0  ;;  %v1631_v26 = vpack.c.bf16 %v5746_v60, %v5747_v31 }
 0x2bd   : > { %v5024_v7 = vpop.f32.mrf.mxu0 }
 0x2be   : > { %5892 = vst [vmem:[#allocation19_spill] sm:$0xff] %v5024_v7  ;;  %v1630_v42 = vpack.c.bf16 %v5744_v51, %v5745_v62  ;;  %v5755_v51 = vmax.f32 %v5024_v7, 0.0 }
 0x2bf   : > { %v5034_v57 = vpop.f32.mrf.mxu0 }
 0x2c0   : > { %5893 = vst [vmem:[#allocation20_spill] sm:$0xff] %v5034_v57  ;;  %4111 = vmatprep.mubr.bf16.mxu1 %v1630_v42  ;;  %v5753_v52 = vmax.f32 %v5034_v57, 0.0 }
 0x2c1   : > { %v5036_v30 = vpop.f32.mrf.mxu0  ;;  %4112 = vmatmul.mubr.bf16.gmra.mxu1 %v1631_v26 }
 0x2c2   : > { %5894 = vst [vmem:[#allocation21_spill] sm:$0xff] %v5036_v30  ;;  %v5754_v16 = vmax.f32 %v5036_v30, 0.0 }
 0x2c3   : > { %v5039_v50 = vpop.f32.mrf.mxu0 }
 0x2c4   : > { %5895 = vst [vmem:[#allocation22_spill] sm:$0xff] %v5039_v50  ;;  %v5752_v0 = vmax.f32 %v5039_v50, 0.0  ;;  %v1633_v26 = vpack.c.bf16 %v5754_v16, %v5755_v51 }
 0x2c5   : > { %v5044_v62 = vpop.f32.mrf.mxu0 }
 0x2c6   : > { %5896 = vst [vmem:[#allocation23_spill] sm:$0xff] %v5044_v62  ;;  %v1632_v42 = vpack.c.bf16 %v5752_v0, %v5753_v52  ;;  %v5763_v0 = vmax.f32 %v5044_v62, 0.0 }
 0x2c7   : > { %v5054_v60 = vpop.f32.mrf.mxu0 }
 0x2c8   : > { %5897 = vst [vmem:[#allocation24_spill] sm:$0xff] %v5054_v60  ;;  %4115 = vmatprep.mubr.bf16.mxu1 %v1632_v42  ;;  %v5761_v21 = vmax.f32 %v5054_v60, 0.0 }
 0x2c9   : > { %v5056_v31 = vpop.f32.mrf.mxu0  ;;  %4116 = vmatmul.mubr.bf16.gmra.mxu1 %v1633_v26 }
 0x2ca   : > { %5898 = vst [vmem:[#allocation25_spill] sm:$0xff] %v5056_v31  ;;  %v5762_v11 = vmax.f32 %v5056_v31, 0.0 }
 0x2cb   : > { %v5059_v56 = vpop.f32.mrf.mxu0 }
 0x2cc   : > { %5899 = vst [vmem:[#allocation26_spill] sm:$0xff] %v5059_v56  ;;  %v5760_v36 = vmax.f32 %v5059_v56, 0.0  ;;  %v1635_v26 = vpack.c.bf16 %v5762_v11, %v5763_v0 }
 0x2cd   : > { %v5064_v52 = vpop.f32.mrf.mxu0 }
 0x2ce   : > { %5900 = vst [vmem:[#allocation27_spill] sm:$0xff] %v5064_v52  ;;  %v1634_v42 = vpack.c.bf16 %v5760_v36, %v5761_v21  ;;  %v5771_v36 = vmax.f32 %v5064_v52, 0.0 }
 0x2cf   : > { %v5074_v16 = vpop.f32.mrf.mxu0 }
 0x2d0   : > { %5901 = vst [vmem:[#allocation28_spill] sm:$0xff] %v5074_v16  ;;  %4119 = vmatprep.mubr.bf16.mxu1 %v1634_v42  ;;  %v5769_v38 = vmax.f32 %v5074_v16, 0.0 }
 0x2d1   : > { %v5076_v51 = vpop.f32.mrf.mxu0  ;;  %4120 = vmatmul.mubr.bf16.gmra.mxu1 %v1635_v26 }
 0x2d2   : > { %5902 = vst [vmem:[#allocation29_spill] sm:$0xff] %v5076_v51  ;;  %v5770_v35 = vmax.f32 %v5076_v51, 0.0 }
 0x2d3   : > { %v5079_v5 = vpop.f32.mrf.mxu0 }
 0x2d4   : > { %5903 = vst [vmem:[#allocation30_spill] sm:$0xff] %v5079_v5  ;;  %v5768_v25 = vmax.f32 %v5079_v5, 0.0  ;;  %v1637_v26 = vpack.c.bf16 %v5770_v35, %v5771_v36 }
 0x2d5   : > { %v5084_v21 = vpop.f32.mrf.mxu0 }
 0x2d6   : > { %5904 = vst [vmem:[#allocation31_spill] sm:$0xff] %v5084_v21  ;;  %v1636_v42 = vpack.c.bf16 %v5768_v25, %v5769_v38  ;;  %v5779_v25 = vmax.f32 %v5084_v21, 0.0 }
 0x2d7   : > { %v5094_v11 = vpop.f32.mrf.mxu0 }
 0x2d8   : > { %5905 = vst [vmem:[#allocation32_spill] sm:$0xff] %v5094_v11  ;;  %4123 = vmatprep.mubr.bf16.mxu1 %v1636_v42  ;;  %v5777_v27 = vmax.f32 %v5094_v11, 0.0 }
 0x2d9   : > { %v5096_v0 = vpop.f32.mrf.mxu0  ;;  %4124 = vmatmul.mubr.bf16.gmra.mxu1 %v1637_v26 }
 0x2da   : > { %5906 = vst [vmem:[#allocation33_spill] sm:$0xff] %v5096_v0  ;;  %v5778_v20 = vmax.f32 %v5096_v0, 0.0 }
 0x2db   : > { %v5099_v23 = vpop.f32.mrf.mxu0 }
 0x2dc   : > { %5907 = vst [vmem:[#allocation34_spill] sm:$0xff] %v5099_v23  ;;  %v5776_v10 = vmax.f32 %v5099_v23, 0.0  ;;  %v1639_v26 = vpack.c.bf16 %v5778_v20, %v5779_v25 }
 0x2dd   : > { %v5104_v38 = vpop.f32.mrf.mxu0 }
 0x2de   : > { %5908 = vst [vmem:[#allocation35_spill] sm:$0xff] %v5104_v38  ;;  %v1638_v42 = vpack.c.bf16 %v5776_v10, %v5777_v27  ;;  %v5787_v10 = vmax.f32 %v5104_v38, 0.0 }
 0x2df   : > { %v5114_v35 = vpop.f32.mrf.mxu0 }
 0x2e0   : > { %5909 = vst [vmem:[#allocation36_spill] sm:$0xff] %v5114_v35  ;;  %4127 = vmatprep.mubr.bf16.mxu1 %v1638_v42  ;;  %v5785_v12 = vmax.f32 %v5114_v35, 0.0 }
 0x2e1   : > { %v5116_v36 = vpop.f32.mrf.mxu0  ;;  %4128 = vmatmul.mubr.bf16.gmra.mxu1 %v1639_v26 }
 0x2e2   : > { %5910 = vst [vmem:[#allocation37_spill] sm:$0xff] %v5116_v36  ;;  %v5786_v41 = vmax.f32 %v5116_v36, 0.0 }
 0x2e3   : > { %v5119_v9 = vpop.f32.mrf.mxu0 }
 0x2e4   : > { %5911 = vst [vmem:[#allocation38_spill] sm:$0xff] %v5119_v9  ;;  %v5784_v23 = vmax.f32 %v5119_v9, 0.0  ;;  %v1641_v26 = vpack.c.bf16 %v5786_v41, %v5787_v10 }
 0x2e5   : > { %v5124_v27 = vpop.f32.mrf.mxu0 }
 0x2e6   : > { %5912 = vst [vmem:[#allocation39_spill] sm:$0xff] %v5124_v27  ;;  %v1640_v42 = vpack.c.bf16 %v5784_v23, %v5785_v12  ;;  %v5799_v23 = vmax.f32 %v5124_v27, 0.0 }
 0x2e7   : > { %v5134_v20 = vpop.f32.mrf.mxu0 }
 0x2e8   : > { %5913 = vst [vmem:[#allocation40_spill] sm:$0xff] %v5134_v20  ;;  %4131 = vmatprep.mubr.bf16.mxu1 %v1640_v42  ;;  %v5794_v35 = vmax.f32 %v5134_v20, 0.0 }
 0x2e9   : > { %v5136_v25 = vpop.f32.mrf.mxu0  ;;  %4132 = vmatmul.mubr.bf16.gmra.mxu1 %v1641_v26 }
 0x2ea   : > { %5914 = vst [vmem:[#allocation41_spill] sm:$0xff] %v5136_v25  ;;  %v5793_v0 = vmax.f32 %v5136_v25, 0.0 }
 0x2eb   : > { %v5139_v11 = vpop.f32.mrf.mxu0 }
 0x2ec   : > { %5915 = vst [vmem:[#allocation42_spill] sm:$0xff] %v5139_v11  ;;  %v5792_v9 = vmax.f32 %v5139_v11, 0.0  ;;  %v1643_v26 = vpack.c.bf16 %v5793_v0, %v5799_v23 }
 0x2ed   : > { %v5144_v12 = vpop.f32.mrf.mxu0 }
 0x2ee   : > { %5916 = vst [vmem:[#allocation43_spill] sm:$0xff] %v5144_v12  ;;  %v1642_v42 = vpack.c.bf16 %v5792_v9, %v5794_v35  ;;  %v5798_v9 = vmax.f32 %v5144_v12, 0.0  ;;  %v4460_v35 = vld [vmem:[%s5725_s1 + $0x170] sm:$0xff]  }
 0x2ef   : > { %v5154_v41 = vpop.f32.mrf.mxu0 }
 0x2f0   : > { %5917 = vst [vmem:[#allocation44_spill] sm:$0xff] %v5154_v41  ;;  %4135 = vmatprep.mubr.bf16.mxu1 %v1642_v42  ;;  %v5797_v20 = vmax.f32 %v5154_v41, 0.0 }
 0x2f1   : > { %v5156_v10 = vpop.f32.mrf.mxu0  ;;  %4136 = vmatmul.mubr.bf16.gmra.mxu1 %v1643_v26  ;;  %v4459_v26 = vld [vmem:[%s5725_s1 + $0x178] sm:$0xff]  }
 0x2f2   : > { %5918 = vst [vmem:[#allocation45_spill] sm:$0xff] %v5156_v10  ;;  %v5796_v36 = vmax.f32 %v5156_v10, 0.0  ;;  %4223 = vmatprep.subr.bf16.mxu1 %v4459_v26 }
 0x2f3   : > { %v5159_v38 = vpop.f32.mrf.mxu0  ;;  %4224 = vmatpush3.bf16.msra.mxu1 %v4459_v26  ;;  %v4463_v26 = vld [vmem:[%s5725_s1 + $0x158] sm:$0xff]  }
 0x2f4   : > { %5919 = vst [vmem:[#allocation46_spill] sm:$0xff] %v5159_v38  ;;  %v5795_v11 = vmax.f32 %v5159_v38, 0.0  ;;  %v1645_v42 = vpack.c.bf16 %v5796_v36, %v5798_v9  ;;  %4225 = vmatprep.subr.bf16.mxu1 %v4460_v35 }
 0x2f6   : > { %v1644_v0 = vpack.c.bf16 %v5795_v11, %v5797_v20  ;;  %v4461_v11 = vld [vmem:[%s5725_s1 + $0x168] sm:$0xff]   ;;  %v4462_v20 = vld [vmem:[%s5725_s1 + $0x160] sm:$0xff]  }
 0x2f7   : > { %4226 = vmatpush3.bf16.msra.mxu1 %v4460_v35 }
 0x2f8   : > { %4139 = vmatprep.mubr.bf16.mxu1 %v1644_v0  ;;  %4227 = vmatprep.subr.bf16.mxu1 %v4461_v11 }
 0x2f9   : > { %4140 = vmatmul.mubr.bf16.gmra.mxu1 %v1645_v42 }
 0x2fb   : > { %4228 = vmatpush3.bf16.msra.mxu1 %v4461_v11  ;;  %v4464_v11 = vld [vmem:[%s5725_s1 + $0x150] sm:$0xff]  }
 0x2fc   : > { %4229 = vmatprep.subr.bf16.mxu1 %v4462_v20 }
 0x2ff   : > { %4230 = vmatpush3.bf16.msra.mxu1 %v4462_v20 }
 0x300   : > { %4231 = vmatprep.subr.bf16.mxu1 %v4463_v26 }
 0x303   : > { %4232 = vmatpush3.bf16.msra.mxu1 %v4463_v26 }
 0x304   : > { %4233 = vmatprep.subr.bf16.mxu1 %v4464_v11 }
 0x307   : > { %4234 = vmatpush3.bf16.msra.mxu1 %v4464_v11 }
 0x341   : > { %v4081_v0 = vpop.f32.mrf.mxu1 }
 0x342   : > { %v1985_v10 = vmax.f32 %v4081_v0, 0.0 }
 0x343   : > { %v1728_v42 = vpop.f32.mrf.mxu1 }
 0x344   : > { %v1983_v35 = vmax.f32 %v1728_v42, 0.0 }
 0x345   : > { %v4082_v36 = vpop.f32.mrf.mxu1 }
 0x346   : > { %v1986_v9 = vmax.f32 %v4082_v36, 0.0 }
 0x347   : > { %v1731_v23 = vpop.f32.mrf.mxu1 }
 0x348   : > { %v1984_v38 = vmax.f32 %v1731_v23, 0.0  ;;  %v2064_v25 = vpack.c.bf16 %v1986_v9, %v1985_v10  ;;  %v4465_v23 = vld [vmem:[%s5725_s1 + $0x148] sm:$0xff]   ;;  %v4466_v9 = vld [vmem:[%s5725_s1 + $0x140] sm:$0xff]  }
 0x349   : > { %v4085_v41 = vpop.f32.mrf.mxu1  ;;  %4235 = vmatprep.subr.bf16.mxu1 %v4465_v23 }
 0x34a   : > { %v2063_v12 = vpack.c.bf16 %v1984_v38, %v1983_v35  ;;  %v1989_v5 = vmax.f32 %v4085_v41, 0.0  ;;  %4236 = vmatpush3.bf16.msra.mxu1 %v4465_v23 }
 0x34b   : > { %v1744_v27 = vpop.f32.mrf.mxu1  ;;  %4237 = vmatprep.subr.bf16.mxu1 %v4466_v9 }
 0x34c   : > { %4159 = vmatprep.mubr.bf16.mxu0 %v2063_v12  ;;  %v1987_v0 = vmax.f32 %v1744_v27, 0.0 }
 0x34d   : > { %v4086_v21 = vpop.f32.mrf.mxu1  ;;  %4160 = vmatmul.mubr.bf16.vlgmr.msra.gmra.mxu0 %v2064_v25 }
 0x34e   : > { %v1990_v20 = vmax.f32 %v4086_v21, 0.0  ;;  %4238 = vmatpush3.bf16.msra.mxu1 %v4466_v9 }
 0x34f   : > { %v1747_v36 = vpop.f32.mrf.mxu1 }
 0x350   : > { %v1988_v42 = vmax.f32 %v1747_v36, 0.0  ;;  %v2066_v12 = vpack.c.bf16 %v1990_v20, %v1989_v5 }
 0x351   : > { %v4089_v51 = vpop.f32.mrf.mxu1 }
 0x352   : > { %v2065_v10 = vpack.c.bf16 %v1988_v42, %v1987_v0  ;;  %v1993_v41 = vmax.f32 %v4089_v51, 0.0 }
 0x353   : > { %v1760_v25 = vpop.f32.mrf.mxu1 }
 0x354   : > { %4163 = vmatprep.mubr.bf16.mxu0 %v2065_v10  ;;  %v1991_v27 = vmax.f32 %v1760_v25, 0.0 }
 0x355   : > { %v4090_v38 = vpop.f32.mrf.mxu1  ;;  %4164 = vmatmul.mubr.bf16.gmra.mxu0 %v2066_v12 }
 0x356   : > { %v1994_v21 = vmax.f32 %v4090_v38, 0.0 }
 0x357   : > { %v1763_v26 = vpop.f32.mrf.mxu1 }
 0x358   : > { %v1992_v35 = vmax.f32 %v1763_v26, 0.0  ;;  %v2068_v16 = vpack.c.bf16 %v1994_v21, %v1993_v41 }
 0x359   : > { %v4093_v11 = vpop.f32.mrf.mxu1 }
 0x35a   : > { %v2067_v36 = vpack.c.bf16 %v1992_v35, %v1991_v27  ;;  %v1997_v42 = vmax.f32 %v4093_v11, 0.0 }
 0x35b   : > { %v1776_v52 = vpop.f32.mrf.mxu1 }
 0x35c   : > { %4167 = vmatprep.mubr.bf16.mxu0 %v2067_v36  ;;  %v1995_v0 = vmax.f32 %v1776_v52, 0.0 }
 0x35d   : > { %v4094_v56 = vpop.f32.mrf.mxu1  ;;  %4168 = vmatmul.mubr.bf16.gmra.mxu0 %v2068_v16 }
 0x35e   : > { %v1998_v5 = vmax.f32 %v4094_v56, 0.0 }
 0x35f   : > { %v1779_v20 = vpop.f32.mrf.mxu1 }
 0x360   : > { %v1996_v23 = vmax.f32 %v1779_v20, 0.0  ;;  %v2070_v38 = vpack.c.bf16 %v1998_v5, %v1997_v42 }
 0x361   : > { %v4097_v10 = vpop.f32.mrf.mxu1 }
 0x362   : > { %v2069_v12 = vpack.c.bf16 %v1996_v23, %v1995_v0  ;;  %v2001_v27 = vmax.f32 %v4097_v10, 0.0 }
 0x363   : > { %v1792_v31 = vpop.f32.mrf.mxu1 }
 0x364   : > { %4171 = vmatprep.mubr.bf16.mxu0 %v2069_v12  ;;  %v1999_v26 = vmax.f32 %v1792_v31, 0.0 }
 0x365   : > { %v4098_v25 = vpop.f32.mrf.mxu1  ;;  %4172 = vmatmul.mubr.bf16.gmra.mxu0 %v2070_v38 }
 0x366   : > { %v2002_v51 = vmax.f32 %v4098_v25, 0.0 }
 0x367   : > { %v1795_v9 = vpop.f32.mrf.mxu1 }
 0x368   : > { %v2000_v21 = vmax.f32 %v1795_v9, 0.0  ;;  %v2072_v16 = vpack.c.bf16 %v2002_v51, %v2001_v27 }
 0x369   : > { %v4101_v35 = vpop.f32.mrf.mxu1 }
 0x36a   : > { %v2071_v41 = vpack.c.bf16 %v2000_v21, %v1999_v26  ;;  %v2005_v0 = vmax.f32 %v4101_v35, 0.0 }
 0x36b   : > { %v1808_v56 = vpop.f32.mrf.mxu1 }
 0x36c   : > { %4175 = vmatprep.mubr.bf16.mxu0 %v2071_v41  ;;  %v2003_v20 = vmax.f32 %v1808_v56, 0.0 }
 0x36d   : > { %v4102_v52 = vpop.f32.mrf.mxu1  ;;  %4176 = vmatmul.mubr.bf16.gmra.mxu0 %v2072_v16 }
 0x36e   : > { %v2006_v11 = vmax.f32 %v4102_v52, 0.0 }
 0x36f   : > { %v1811_v36 = vpop.f32.mrf.mxu1 }
 0x370   : > { %v2004_v5 = vmax.f32 %v1811_v36, 0.0  ;;  %v2074_v12 = vpack.c.bf16 %v2006_v11, %v2005_v0 }
 0x371   : > { %v4105_v23 = vpop.f32.mrf.mxu1 }
 0x372   : > { %v2073_v42 = vpack.c.bf16 %v2004_v5, %v2003_v20  ;;  %v2009_v26 = vmax.f32 %v4105_v23, 0.0 }
 0x373   : > { %v1824_v38 = vpop.f32.mrf.mxu1 }
 0x374   : > { %4179 = vmatprep.mubr.bf16.mxu0 %v2073_v42  ;;  %v2007_v9 = vmax.f32 %v1824_v38, 0.0 }
 0x375   : > { %v4106_v31 = vpop.f32.mrf.mxu1  ;;  %4180 = vmatmul.mubr.bf16.gmra.mxu0 %v2074_v12 }
 0x376   : > { %v2010_v10 = vmax.f32 %v4106_v31, 0.0 }
 0x377   : > { %v1827_v25 = vpop.f32.mrf.mxu1 }
 0x378   : > { %v2008_v51 = vmax.f32 %v1827_v25, 0.0  ;;  %v2076_v41 = vpack.c.bf16 %v2010_v10, %v2009_v26 }
 0x379   : > { %v4109_v21 = vpop.f32.mrf.mxu1 }
 0x37a   : > { %v2075_v27 = vpack.c.bf16 %v2008_v51, %v2007_v9  ;;  %v2013_v20 = vmax.f32 %v4109_v21, 0.0 }
 0x37b   : > { %v1840_v16 = vpop.f32.mrf.mxu1 }
 0x37c   : > { %4183 = vmatprep.mubr.bf16.mxu0 %v2075_v27  ;;  %v2011_v36 = vmax.f32 %v1840_v16, 0.0 }
 0x37d   : > { %v4110_v56 = vpop.f32.mrf.mxu1  ;;  %4184 = vmatmul.mubr.bf16.gmra.mxu0 %v2076_v41 }
 0x37e   : > { %v2014_v35 = vmax.f32 %v4110_v56, 0.0 }
 0x37f   : > { %v1843_v52 = vpop.f32.mrf.mxu1 }
 0x380   : > { %v2012_v11 = vmax.f32 %v1843_v52, 0.0  ;;  %v2078_v42 = vpack.c.bf16 %v2014_v35, %v2013_v20 }
 0x381   : > { %v4113_v5 = vpop.f32.mrf.mxu1 }
 0x382   : > { %v2077_v0 = vpack.c.bf16 %v2012_v11, %v2011_v36  ;;  %v2017_v9 = vmax.f32 %v4113_v5, 0.0 }
 0x383   : > { %v1856_v12 = vpop.f32.mrf.mxu1 }
 0x384   : > { %4187 = vmatprep.mubr.bf16.mxu0 %v2077_v0  ;;  %v2015_v25 = vmax.f32 %v1856_v12, 0.0 }
 0x385   : > { %v4114_v38 = vpop.f32.mrf.mxu1  ;;  %4188 = vmatmul.mubr.bf16.gmra.mxu0 %v2078_v42 }
 0x386   : > { %v2018_v23 = vmax.f32 %v4114_v38, 0.0 }
 0x387   : > { %v1859_v31 = vpop.f32.mrf.mxu1 }
 0x388   : > { %v2016_v10 = vmax.f32 %v1859_v31, 0.0  ;;  %v2080_v27 = vpack.c.bf16 %v2018_v23, %v2017_v9 }
 0x389   : > { %v4117_v51 = vpop.f32.mrf.mxu1 }
 0x38a   : > { %v2079_v26 = vpack.c.bf16 %v2016_v10, %v2015_v25  ;;  %v2021_v36 = vmax.f32 %v4117_v51, 0.0 }
 0x38b   : > { %v1872_v41 = vpop.f32.mrf.mxu1 }
 0x38c   : > { %4191 = vmatprep.mubr.bf16.mxu0 %v2079_v26  ;;  %v2019_v52 = vmax.f32 %v1872_v41, 0.0 }
 0x38d   : > { %v4118_v16 = vpop.f32.mrf.mxu1  ;;  %4192 = vmatmul.mubr.bf16.gmra.mxu0 %v2080_v27 }
 0x38e   : > { %v2022_v21 = vmax.f32 %v4118_v16, 0.0 }
 0x38f   : > { %v1875_v56 = vpop.f32.mrf.mxu1 }
 0x390   : > { %v2020_v35 = vmax.f32 %v1875_v56, 0.0  ;;  %v2082_v0 = vpack.c.bf16 %v2022_v21, %v2021_v36 }
 0x391   : > { %v4121_v11 = vpop.f32.mrf.mxu1 }
 0x392   : > { %v2081_v20 = vpack.c.bf16 %v2020_v35, %v2019_v52  ;;  %v2025_v25 = vmax.f32 %v4121_v11, 0.0 }
 0x393   : > { %v1888_v42 = vpop.f32.mrf.mxu1 }
 0x394   : > { %4195 = vmatprep.mubr.bf16.mxu0 %v2081_v20  ;;  %v2023_v31 = vmax.f32 %v1888_v42, 0.0 }
 0x395   : > { %v4122_v12 = vpop.f32.mrf.mxu1  ;;  %4196 = vmatmul.mubr.bf16.gmra.mxu0 %v2082_v0 }
 0x396   : > { %v2026_v5 = vmax.f32 %v4122_v12, 0.0 }
 0x397   : > { %v1891_v38 = vpop.f32.mrf.mxu1 }
 0x398   : > { %v2024_v23 = vmax.f32 %v1891_v38, 0.0  ;;  %v2084_v26 = vpack.c.bf16 %v2026_v5, %v2025_v25 }
 0x399   : > { %v4125_v10 = vpop.f32.mrf.mxu1 }
 0x39a   : > { %v2083_v9 = vpack.c.bf16 %v2024_v23, %v2023_v31  ;;  %v2029_v52 = vmax.f32 %v4125_v10, 0.0 }
 0x39b   : > { %v1904_v27 = vpop.f32.mrf.mxu1 }
 0x39c   : > { %4199 = vmatprep.mubr.bf16.mxu0 %v2083_v9  ;;  %v2027_v56 = vmax.f32 %v1904_v27, 0.0 }
 0x39d   : > { %v4126_v41 = vpop.f32.mrf.mxu1  ;;  %4200 = vmatmul.mubr.bf16.gmra.mxu0 %v2084_v26 }
 0x39e   : > { %v2030_v51 = vmax.f32 %v4126_v41, 0.0 }
 0x39f   : > { %v1907_v16 = vpop.f32.mrf.mxu1 }
 0x3a0   : > { %v2028_v21 = vmax.f32 %v1907_v16, 0.0  ;;  %v2086_v20 = vpack.c.bf16 %v2030_v51, %v2029_v52 }
 0x3a1   : > { %v4129_v35 = vpop.f32.mrf.mxu1 }
 0x3a2   : > { %v2085_v36 = vpack.c.bf16 %v2028_v21, %v2027_v56  ;;  %v2033_v31 = vmax.f32 %v4129_v35, 0.0 }
 0x3a3   : > { %v1920_v0 = vpop.f32.mrf.mxu1 }
 0x3a4   : > { %4203 = vmatprep.mubr.bf16.mxu0 %v2085_v36  ;;  %v2031_v38 = vmax.f32 %v1920_v0, 0.0 }
 0x3a5   : > { %v4130_v42 = vpop.f32.mrf.mxu1  ;;  %4204 = vmatmul.mubr.bf16.gmra.mxu0 %v2086_v20 }
 0x3a6   : > { %v2034_v11 = vmax.f32 %v4130_v42, 0.0 }
 0x3a7   : > { %v1923_v12 = vpop.f32.mrf.mxu1 }
 0x3a8   : > { %v2032_v5 = vmax.f32 %v1923_v12, 0.0  ;;  %v2088_v9 = vpack.c.bf16 %v2034_v11, %v2033_v31 }
 0x3a9   : > { %v4133_v23 = vpop.f32.mrf.mxu1 }
 0x3aa   : > { %v2087_v25 = vpack.c.bf16 %v2032_v5, %v2031_v38  ;;  %v2037_v56 = vmax.f32 %v4133_v23, 0.0 }
 0x3ab   : > { %v1936_v26 = vpop.f32.mrf.mxu1 }
 0x3ac   : > { %4207 = vmatprep.mubr.bf16.mxu0 %v2087_v25  ;;  %v2035_v16 = vmax.f32 %v1936_v26, 0.0 }
 0x3ad   : > { %v4134_v27 = vpop.f32.mrf.mxu1  ;;  %4208 = vmatmul.mubr.bf16.gmra.mxu0 %v2088_v9 }
 0x3ae   : > { %v2038_v10 = vmax.f32 %v4134_v27, 0.0 }
 0x3af   : > { %v1939_v41 = vpop.f32.mrf.mxu1 }
 0x3b0   : > { %v2036_v51 = vmax.f32 %v1939_v41, 0.0  ;;  %v2090_v36 = vpack.c.bf16 %v2038_v10, %v2037_v56 }
 0x3b1   : > { %v4137_v21 = vpop.f32.mrf.mxu1 }
 0x3b2   : > { %v2089_v52 = vpack.c.bf16 %v2036_v51, %v2035_v16  ;;  %v2041_v38 = vmax.f32 %v4137_v21, 0.0  ;;  %v4467_v21 = vld [vmem:[%s5725_s1 + $0x1b8] sm:$0xff]  }
 0x3b3   : > { %v1952_v20 = vpop.f32.mrf.mxu1  ;;  %4303 = vmatprep.subr.bf16.mxu0 %v4467_v21 }
 0x3b4   : > { %4211 = vmatprep.mubr.bf16.mxu0 %v2089_v52  ;;  %v2039_v12 = vmax.f32 %v1952_v20, 0.0  ;;  %4304 = vmatpush3.bf16.msra.mxu0 %v4467_v21  ;;  %v4468_v52 = vld [vmem:[%s5725_s1 + $0x1b0] sm:$0xff]  }
 0x3b5   : > { %v4138_v0 = vpop.f32.mrf.mxu1  ;;  %4212 = vmatmul.mubr.bf16.gmra.mxu0 %v2090_v36  ;;  %4305 = vmatprep.subr.bf16.mxu0 %v4468_v52  ;;  %v4469_v36 = vld [vmem:[%s5725_s1 + $0x1a8] sm:$0xff]  }
 0x3b6   : > { %v2042_v35 = vmax.f32 %v4138_v0, 0.0 }
 0x3b7   : > { %v1955_v42 = vpop.f32.mrf.mxu1 }
 0x3b8   : > { %v2040_v11 = vmax.f32 %v1955_v42, 0.0  ;;  %v2092_v25 = vpack.c.bf16 %v2042_v35, %v2041_v38  ;;  %4306 = vmatpush3.bf16.msra.mxu0 %v4468_v52  ;;  %v4470_v35 = vld [vmem:[%s5725_s1 + $0x1a0] sm:$0xff]   ;;  %v4471_v42 = vld [vmem:[%s5725_s1 + $0x198] sm:$0xff]   ;;  %v4472_v38 = vld [vmem:[%s5725_s1 + $0x190] sm:$0xff]  }
 0x3b9   : > { %v4141_v5 = vpop.f32.mrf.mxu1  ;;  %4307 = vmatprep.subr.bf16.mxu0 %v4469_v36 }
 0x3ba   : > { %v2091_v31 = vpack.c.bf16 %v2040_v11, %v2039_v12  ;;  %v2045_v16 = vmax.f32 %v4141_v5, 0.0 }
 0x3bb   : > { %v1968_v9 = vpop.f32.mrf.mxu1 }
 0x3bc   : > { %4215 = vmatprep.mubr.bf16.mxu0 %v2091_v31  ;;  %v2043_v41 = vmax.f32 %v1968_v9, 0.0  ;;  %4308 = vmatpush3.bf16.msra.mxu0 %v4469_v36 }
 0x3bd   : > { %v4142_v26 = vpop.f32.mrf.mxu1  ;;  %4216 = vmatmul.mubr.bf16.gmra.mxu0 %v2092_v25  ;;  %4309 = vmatprep.subr.bf16.mxu0 %v4470_v35 }
 0x3be   : > { %v2046_v23 = vmax.f32 %v4142_v26, 0.0  ;;  %v4473_v26 = vld [vmem:[%s5725_s1 + $0x188] sm:$0xff]  }
 0x3bf   : > { %v1971_v27 = vpop.f32.mrf.mxu1 }
 0x3c0   : > { %v2044_v10 = vmax.f32 %v1971_v27, 0.0  ;;  %v2094_v56 = vpack.c.bf16 %v2046_v23, %v2045_v16  ;;  %4310 = vmatpush3.bf16.msra.mxu0 %v4470_v35 }
 0x3c1   : > { %4311 = vmatprep.subr.bf16.mxu0 %v4471_v42 }
 0x3c2   : > { %v2093_v51 = vpack.c.bf16 %v2044_v10, %v2043_v41  ;;  %v4474_v41 = vld [vmem:[%s5725_s1 + $0x180] sm:$0xff]  }
 0x3c4   : > { %4219 = vmatprep.mubr.bf16.mxu0 %v2093_v51  ;;  %4312 = vmatpush3.bf16.msra.mxu0 %v4471_v42 }
 0x3c5   : > { %4220 = vmatmul.mubr.bf16.gmra.mxu0 %v2094_v56  ;;  %4313 = vmatprep.subr.bf16.mxu0 %v4472_v38 }
 0x3c8   : > { %4314 = vmatpush3.bf16.msra.mxu0 %v4472_v38 }
 0x3c9   : > { %4315 = vmatprep.subr.bf16.mxu0 %v4473_v26 }
 0x3cc   : > { %4316 = vmatpush3.bf16.msra.mxu0 %v4473_v26 }
 0x3cd   : > { %4317 = vmatprep.subr.bf16.mxu0 %v4474_v41 }
 0x3d0   : > { %4318 = vmatpush3.bf16.msra.mxu0 %v4474_v41 }
 0x40d   : > { %v5205_v20 = vpop.f32.mrf.mxu0 }
 0x40f   : > { %v5207_v0 = vpop.f32.mrf.mxu0 }
 0x411   : > { %v5215_v12 = vpop.f32.mrf.mxu0 }
 0x412   : > { %v2449_v31 = vpack.c.bf16 %v5215_v12, %v5205_v20 }
 0x413   : > { %v5217_v11 = vpop.f32.mrf.mxu0 }
 0x414   : > { %v2448_v5 = vpack.c.bf16 %v5217_v11, %v5207_v0 }
 0x415   : > { %v5226_v25 = vpop.f32.mrf.mxu0 }
 0x416   : > { %4239 = vmatprep.mubr.bf16.mxu1 %v2448_v5 }
 0x417   : > { %v5228_v9 = vpop.f32.mrf.mxu0  ;;  %4240 = vmatmul.mubr.bf16.vlgmr.msra.gmra.mxu1 %v2449_v31 }
 0x419   : > { %v5233_v23 = vpop.f32.mrf.mxu0 }
 0x41a   : > { %v2451_v16 = vpack.c.bf16 %v5233_v23, %v5226_v25 }
 0x41b   : > { %v5235_v27 = vpop.f32.mrf.mxu0 }
 0x41c   : > { %v2450_v10 = vpack.c.bf16 %v5235_v27, %v5228_v9 }
 0x41d   : > { %v5244_v51 = vpop.f32.mrf.mxu0 }
 0x41e   : > { %4243 = vmatprep.mubr.bf16.mxu1 %v2450_v10 }
 0x41f   : > { %v5246_v56 = vpop.f32.mrf.mxu0  ;;  %4244 = vmatmul.mubr.bf16.gmra.mxu1 %v2451_v16 }
 0x421   : > { %v5248_v21 = vpop.f32.mrf.mxu0 }
 0x422   : > { %v2453_v35 = vpack.c.bf16 %v5248_v21, %v5244_v51 }
 0x423   : > { %v5250_v52 = vpop.f32.mrf.mxu0 }
 0x424   : > { %v2452_v36 = vpack.c.bf16 %v5250_v52, %v5246_v56 }
 0x425   : > { %v5256_v42 = vpop.f32.mrf.mxu0 }
 0x426   : > { %4247 = vmatprep.mubr.bf16.mxu1 %v2452_v36 }
 0x427   : > { %v5258_v38 = vpop.f32.mrf.mxu0  ;;  %4248 = vmatmul.mubr.bf16.gmra.mxu1 %v2453_v35 }
 0x429   : > { %v5260_v5 = vpop.f32.mrf.mxu0 }
 0x42a   : > { %v2455_v41 = vpack.c.bf16 %v5260_v5, %v5256_v42 }
 0x42b   : > { %v5262_v31 = vpop.f32.mrf.mxu0 }
 0x42c   : > { %v2454_v26 = vpack.c.bf16 %v5262_v31, %v5258_v38 }
 0x42d   : > { %v5268_v10 = vpop.f32.mrf.mxu0 }
 0x42e   : > { %4251 = vmatprep.mubr.bf16.mxu1 %v2454_v26 }
 0x42f   : > { %v5270_v16 = vpop.f32.mrf.mxu0  ;;  %4252 = vmatmul.mubr.bf16.gmra.mxu1 %v2455_v41 }
 0x431   : > { %v5272_v36 = vpop.f32.mrf.mxu0 }
 0x432   : > { %v2457_v62 = vpack.c.bf16 %v5272_v36, %v5268_v10 }
 0x433   : > { %v5274_v60 = vpop.f32.mrf.mxu0 }
 0x434   : > { %v2456_v35 = vpack.c.bf16 %v5274_v60, %v5270_v16 }
 0x435   : > { %v5280_v50 = vpop.f32.mrf.mxu0 }
 0x436   : > { %4255 = vmatprep.mubr.bf16.mxu1 %v2456_v35 }
 0x437   : > { %v5282_v30 = vpop.f32.mrf.mxu0  ;;  %4256 = vmatmul.mubr.bf16.gmra.mxu1 %v2457_v62 }
 0x438   : > { %5920 = vst [vmem:[#allocation47_spill] sm:$0xff] %v5282_v30 }
 0x439   : > { %v5284_v26 = vpop.f32.mrf.mxu0 }
 0x43a   : > { %5921 = vst [vmem:[#allocation48_spill] sm:$0xff] %v5284_v26  ;;  %v2459_v7 = vpack.c.bf16 %v5284_v26, %v5280_v50 }
 0x43b   : > { %v5286_v57 = vpop.f32.mrf.mxu0 }
 0x43c   : > { %5922 = vst [vmem:[#allocation49_spill] sm:$0xff] %v5286_v57  ;;  %v2458_v41 = vpack.c.bf16 %v5286_v57, %v5282_v30 }
 0x43d   : > { %v5292_v24 = vpop.f32.mrf.mxu0 }
 0x43e   : > { %5923 = vst [vmem:[#allocation50_spill] sm:$0xff] %v5292_v24  ;;  %4259 = vmatprep.mubr.bf16.mxu1 %v2458_v41 }
 0x43f   : > { %v5294_v32 = vpop.f32.mrf.mxu0  ;;  %4260 = vmatmul.mubr.bf16.gmra.mxu1 %v2459_v7 }
 0x440   : > { %5924 = vst [vmem:[#allocation51_spill] sm:$0xff] %v5294_v32 }
 0x441   : > { %v5296_v35 = vpop.f32.mrf.mxu0 }
 0x442   : > { %5925 = vst [vmem:[#allocation52_spill] sm:$0xff] %v5296_v35  ;;  %v2461_v29 = vpack.c.bf16 %v5296_v35, %v5292_v24 }
 0x443   : > { %v5298_v17 = vpop.f32.mrf.mxu0 }
 0x444   : > { %5926 = vst [vmem:[#allocation53_spill] sm:$0xff] %v5298_v17  ;;  %v2460_v62 = vpack.c.bf16 %v5298_v17, %v5294_v32 }
 0x445   : > { %v5304_v6 = vpop.f32.mrf.mxu0 }
 0x446   : > { %5927 = vst [vmem:[#allocation54_spill] sm:$0xff] %v5304_v6  ;;  %4263 = vmatprep.mubr.bf16.mxu1 %v2460_v62 }
 0x447   : > { %v5306_v55 = vpop.f32.mrf.mxu0  ;;  %4264 = vmatmul.mubr.bf16.gmra.mxu1 %v2461_v29 }
 0x448   : > { %5928 = vst [vmem:[#allocation55_spill] sm:$0xff] %v5306_v55 }
 0x449   : > { %v5308_v41 = vpop.f32.mrf.mxu0 }
 0x44a   : > { %5929 = vst [vmem:[#allocation56_spill] sm:$0xff] %v5308_v41  ;;  %v2463_v40 = vpack.c.bf16 %v5308_v41, %v5304_v6 }
 0x44b   : > { %v5310_v47 = vpop.f32.mrf.mxu0 }
 0x44c   : > { %5930 = vst [vmem:[#allocation57_spill] sm:$0xff] %v5310_v47  ;;  %v2462_v7 = vpack.c.bf16 %v5310_v47, %v5306_v55 }
 0x44d   : > { %v5316_v17 = vpop.f32.mrf.mxu0 }
 0x44e   : > { %5931 = vst [vmem:[#allocation58_spill] sm:$0xff] %v5316_v17  ;;  %4267 = vmatprep.mubr.bf16.mxu1 %v2462_v7 }
 0x44f   : > { %v5318_v19 = vpop.f32.mrf.mxu0  ;;  %4268 = vmatmul.mubr.bf16.gmra.mxu1 %v2463_v40 }
 0x450   : > { %5932 = vst [vmem:[#allocation59_spill] sm:$0xff] %v5318_v19 }
 0x451   : > { %v5320_v62 = vpop.f32.mrf.mxu0 }
 0x452   : > { %5933 = vst [vmem:[#allocation60_spill] sm:$0xff] %v5320_v62  ;;  %v2465_v15 = vpack.c.bf16 %v5320_v62, %v5316_v17 }
 0x453   : > { %v5322_v35 = vpop.f32.mrf.mxu0 }
 0x454   : > { %5934 = vst [vmem:[#allocation61_spill] sm:$0xff] %v5322_v35  ;;  %v2464_v29 = vpack.c.bf16 %v5322_v35, %v5318_v19 }
 0x455   : > { %v5328_v47 = vpop.f32.mrf.mxu0 }
 0x456   : > { %5935 = vst [vmem:[#allocation62_spill] sm:$0xff] %v5328_v47  ;;  %4271 = vmatprep.mubr.bf16.mxu1 %v2464_v29 }
 0x457   : > { %v5330_v41 = vpop.f32.mrf.mxu0  ;;  %4272 = vmatmul.mubr.bf16.gmra.mxu1 %v2465_v15 }
 0x458   : > { %5936 = vst [vmem:[#allocation63_spill] sm:$0xff] %v5330_v41 }
 0x459   : > { %v5332_v7 = vpop.f32.mrf.mxu0 }
 0x45a   : > { %5937 = vst [vmem:[#allocation64_spill] sm:$0xff] %v5332_v7  ;;  %v2467_v6 = vpack.c.bf16 %v5332_v7, %v5328_v47 }
 0x45b   : > { %v5334_v55 = vpop.f32.mrf.mxu0 }
 0x45c   : > { %5938 = vst [vmem:[#allocation65_spill] sm:$0xff] %v5334_v55  ;;  %v2466_v40 = vpack.c.bf16 %v5334_v55, %v5330_v41 }
 0x45d   : > { %v5340_v35 = vpop.f32.mrf.mxu0 }
 0x45e   : > { %5939 = vst [vmem:[#allocation66_spill] sm:$0xff] %v5340_v35  ;;  %4275 = vmatprep.mubr.bf16.mxu1 %v2466_v40 }
 0x45f   : > { %v5342_v62 = vpop.f32.mrf.mxu0  ;;  %4276 = vmatmul.mubr.bf16.gmra.mxu1 %v2467_v6 }
 0x460   : > { %5940 = vst [vmem:[#allocation67_spill] sm:$0xff] %v5342_v62 }
 0x461   : > { %v5344_v29 = vpop.f32.mrf.mxu0 }
 0x462   : > { %5941 = vst [vmem:[#allocation68_spill] sm:$0xff] %v5344_v29  ;;  %v2469_v17 = vpack.c.bf16 %v5344_v29, %v5340_v35 }
 0x463   : > { %v5346_v19 = vpop.f32.mrf.mxu0 }
 0x464   : > { %5942 = vst [vmem:[#allocation69_spill] sm:$0xff] %v5346_v19  ;;  %v2468_v15 = vpack.c.bf16 %v5346_v19, %v5342_v62 }
 0x465   : > { %v5352_v55 = vpop.f32.mrf.mxu0 }
 0x466   : > { %5943 = vst [vmem:[#allocation70_spill] sm:$0xff] %v5352_v55  ;;  %4279 = vmatprep.mubr.bf16.mxu1 %v2468_v15 }
 0x467   : > { %v5354_v7 = vpop.f32.mrf.mxu0  ;;  %4280 = vmatmul.mubr.bf16.gmra.mxu1 %v2469_v17 }
 0x468   : > { %5944 = vst [vmem:[#allocation71_spill] sm:$0xff] %v5354_v7 }
 0x469   : > { %v5356_v40 = vpop.f32.mrf.mxu0 }
 0x46a   : > { %5945 = vst [vmem:[#allocation72_spill] sm:$0xff] %v5356_v40  ;;  %v2471_v47 = vpack.c.bf16 %v5356_v40, %v5352_v55 }
 0x46b   : > { %v5358_v41 = vpop.f32.mrf.mxu0 }
 0x46c   : > { %5946 = vst [vmem:[#allocation73_spill] sm:$0xff] %v5358_v41  ;;  %v2470_v6 = vpack.c.bf16 %v5358_v41, %v5354_v7 }
 0x46d   : > { %v5364_v19 = vpop.f32.mrf.mxu0 }
 0x46e   : > { %5947 = vst [vmem:[#allocation74_spill] sm:$0xff] %v5364_v19  ;;  %4283 = vmatprep.mubr.bf16.mxu1 %v2470_v6 }
 0x46f   : > { %v5366_v29 = vpop.f32.mrf.mxu0  ;;  %4284 = vmatmul.mubr.bf16.gmra.mxu1 %v2471_v47 }
 0x470   : > { %5948 = vst [vmem:[#allocation75_spill] sm:$0xff] %v5366_v29 }
 0x471   : > { %v5368_v15 = vpop.f32.mrf.mxu0 }
 0x472   : > { %5949 = vst [vmem:[#allocation76_spill] sm:$0xff] %v5368_v15  ;;  %v2473_v35 = vpack.c.bf16 %v5368_v15, %v5364_v19 }
 0x473   : > { %v5370_v62 = vpop.f32.mrf.mxu0 }
 0x474   : > { %5950 = vst [vmem:[#allocation77_spill] sm:$0xff] %v5370_v62  ;;  %v2472_v17 = vpack.c.bf16 %v5370_v62, %v5366_v29 }
 0x475   : > { %v5376_v41 = vpop.f32.mrf.mxu0 }
 0x476   : > { %5951 = vst [vmem:[#allocation78_spill] sm:$0xff] %v5376_v41  ;;  %4287 = vmatprep.mubr.bf16.mxu1 %v2472_v17 }
 0x477   : > { %v5378_v40 = vpop.f32.mrf.mxu0  ;;  %4288 = vmatmul.mubr.bf16.gmra.mxu1 %v2473_v35 }
 0x478   : > { %5952 = vst [vmem:[#allocation79_spill] sm:$0xff] %v5378_v40 }
 0x479   : > { %v5380_v6 = vpop.f32.mrf.mxu0 }
 0x47a   : > { %5953 = vst [vmem:[#allocation80_spill] sm:$0xff] %v5380_v6  ;;  %v2475_v55 = vpack.c.bf16 %v5380_v6, %v5376_v41 }
 0x47b   : > { %v5382_v7 = vpop.f32.mrf.mxu0 }
 0x47c   : > { %5954 = vst [vmem:[#allocation81_spill] sm:$0xff] %v5382_v7  ;;  %v2474_v47 = vpack.c.bf16 %v5382_v7, %v5378_v40 }
 0x47d   : > { %v5388_v62 = vpop.f32.mrf.mxu0 }
 0x47e   : > { %5955 = vst [vmem:[#allocation82_spill] sm:$0xff] %v5388_v62  ;;  %4291 = vmatprep.mubr.bf16.mxu1 %v2474_v47 }
 0x47f   : > { %v5390_v15 = vpop.f32.mrf.mxu0  ;;  %4292 = vmatmul.mubr.bf16.gmra.mxu1 %v2475_v55 }
 0x480   : > { %5956 = vst [vmem:[#allocation83_spill] sm:$0xff] %v5390_v15 }
 0x481   : > { %v5392_v17 = vpop.f32.mrf.mxu0 }
 0x482   : > { %5957 = vst [vmem:[#allocation84_spill] sm:$0xff] %v5392_v17  ;;  %v2477_v19 = vpack.c.bf16 %v5392_v17, %v5388_v62 }
 0x483   : > { %v5394_v29 = vpop.f32.mrf.mxu0 }
 0x484   : > { %5958 = vst [vmem:[#allocation85_spill] sm:$0xff] %v5394_v29  ;;  %v2476_v35 = vpack.c.bf16 %v5394_v29, %v5390_v15 }
 0x485   : > { %v5400_v7 = vpop.f32.mrf.mxu0 }
 0x486   : > { %5959 = vst [vmem:[#allocation86_spill] sm:$0xff] %v5400_v7  ;;  %4295 = vmatprep.mubr.bf16.mxu1 %v2476_v35 }
 0x487   : > { %v5402_v6 = vpop.f32.mrf.mxu0  ;;  %4296 = vmatmul.mubr.bf16.gmra.mxu1 %v2477_v19 }
 0x488   : > { %5960 = vst [vmem:[#allocation87_spill] sm:$0xff] %v5402_v6 }
 0x489   : > { %v5404_v47 = vpop.f32.mrf.mxu0 }
 0x48a   : > { %5961 = vst [vmem:[#allocation88_spill] sm:$0xff] %v5404_v47  ;;  %v2479_v41 = vpack.c.bf16 %v5404_v47, %v5400_v7 }
 0x48b   : > { %v5406_v40 = vpop.f32.mrf.mxu0 }
 0x48c   : > { %5962 = vst [vmem:[#allocation89_spill] sm:$0xff] %v5406_v40  ;;  %v2478_v55 = vpack.c.bf16 %v5406_v40, %v5402_v6 }
 0x48e   : > { %4299 = vmatprep.mubr.bf16.mxu1 %v2478_v55 }
 0x48f   : > { %4300 = vmatmul.mubr.bf16.gmra.mxu1 %v2479_v41 }
 0x4d7   : > { %v4241_v29 = vpop.f32.mrf.mxu1 }
 0x4d8   : > { %v2819_v19 = vmax.f32 %v4241_v29, 0.0 }
 0x4d9   : > { %v2562_v17 = vpop.f32.mrf.mxu1 }
 0x4da   : > { %v2817_v32 = vmax.f32 %v2562_v17, 0.0 }
 0x4db   : > { %v4242_v15 = vpop.f32.mrf.mxu1 }
 0x4dc   : > { %v2820_v62 = vmax.f32 %v4242_v15, 0.0 }
 0x4dd   : > { %v2565_v35 = vpop.f32.mrf.mxu1 }
 0x4de   : > { %v2818_v14 = vmax.f32 %v2565_v35, 0.0  ;;  %v2898_v57 = vpack.c.bf16 %v2820_v62, %v2819_v19 }
 0x4df   : > { %v4245_v24 = vpop.f32.mrf.mxu1 }
 0x4e0   : > { %v2897_v63 = vpack.c.bf16 %v2818_v14, %v2817_v32  ;;  %v2823_v41 = vmax.f32 %v4245_v24, 0.0 }
 0x4e1   : > { %v2578_v61 = vpop.f32.mrf.mxu1 }
 0x4e2   : > { %4319 = vmatprep.mubr.bf16.mxu0 %v2897_v63  ;;  %v2821_v47 = vmax.f32 %v2578_v61, 0.0 }
 0x4e3   : > { %v4246_v26 = vpop.f32.mrf.mxu1  ;;  %4320 = vmatmul.mubr.bf16.vlgmr.msra.gmra.mxu0 %v2898_v57 }
 0x4e4   : > { %v2824_v40 = vmax.f32 %v4246_v26, 0.0 }
 0x4e5   : > { %v2581_v6 = vpop.f32.mrf.mxu1 }
 0x4e6   : > { %v2822_v55 = vmax.f32 %v2581_v6, 0.0  ;;  %v2900_v30 = vpack.c.bf16 %v2824_v40, %v2823_v41 }
 0x4e7   : > { %v4249_v7 = vpop.f32.mrf.mxu1 }
 0x4e8   : > { %v2899_v49 = vpack.c.bf16 %v2822_v55, %v2821_v47  ;;  %v2827_v62 = vmax.f32 %v4249_v7, 0.0 }
 0x4e9   : > { %v2594_v15 = vpop.f32.mrf.mxu1 }
 0x4ea   : > { %4323 = vmatprep.mubr.bf16.mxu0 %v2899_v49  ;;  %v2825_v14 = vmax.f32 %v2594_v15, 0.0 }
 0x4eb   : > { %v4250_v17 = vpop.f32.mrf.mxu1  ;;  %4324 = vmatmul.mubr.bf16.gmra.mxu0 %v2900_v30 }
 0x4ec   : > { %v2828_v29 = vmax.f32 %v4250_v17, 0.0 }
 0x4ed   : > { %v2597_v35 = vpop.f32.mrf.mxu1 }
 0x4ee   : > { %v2826_v32 = vmax.f32 %v2597_v35, 0.0  ;;  %v2902_v57 = vpack.c.bf16 %v2828_v29, %v2827_v62 }
 0x4ef   : > { %v4253_v63 = vpop.f32.mrf.mxu1 }
 0x4f0   : > { %v2901_v19 = vpack.c.bf16 %v2826_v32, %v2825_v14  ;;  %v2831_v55 = vmax.f32 %v4253_v63, 0.0 }
 0x4f1   : > { %v2610_v26 = vpop.f32.mrf.mxu1 }
 0x4f2   : > { %4327 = vmatprep.mubr.bf16.mxu0 %v2901_v19  ;;  %v2829_v47 = vmax.f32 %v2610_v26, 0.0 }
 0x4f3   : > { %v4254_v61 = vpop.f32.mrf.mxu1  ;;  %4328 = vmatmul.mubr.bf16.gmra.mxu0 %v2902_v57 }
 0x4f4   : > { %v2832_v24 = vmax.f32 %v4254_v61, 0.0 }
 0x4f5   : > { %v2613_v6 = vpop.f32.mrf.mxu1 }
 0x4f6   : > { %v2830_v40 = vmax.f32 %v2613_v6, 0.0  ;;  %v2904_v30 = vpack.c.bf16 %v2832_v24, %v2831_v55 }
 0x4f7   : > { %v4257_v49 = vpop.f32.mrf.mxu1 }
 0x4f8   : > { %v2903_v41 = vpack.c.bf16 %v2830_v40, %v2829_v47  ;;  %v2835_v32 = vmax.f32 %v4257_v49, 0.0 }
 0x4f9   : > { %v2626_v17 = vpop.f32.mrf.mxu1 }
 0x4fa   : > { %4331 = vmatprep.mubr.bf16.mxu0 %v2903_v41  ;;  %v2833_v14 = vmax.f32 %v2626_v17, 0.0 }
 0x4fb   : > { %v4258_v15 = vpop.f32.mrf.mxu1  ;;  %4332 = vmatmul.mubr.bf16.gmra.mxu0 %v2904_v30 }
 0x4fc   : > { %v2836_v7 = vmax.f32 %v4258_v15, 0.0 }
 0x4fd   : > { %v2629_v35 = vpop.f32.mrf.mxu1 }
 0x4fe   : > { %v2834_v29 = vmax.f32 %v2629_v35, 0.0  ;;  %v2906_v57 = vpack.c.bf16 %v2836_v7, %v2835_v32 }
 0x4ff   : > { %v4261_v62 = vpop.f32.mrf.mxu1 }
 0x500   : > { %v2905_v19 = vpack.c.bf16 %v2834_v29, %v2833_v14  ;;  %v2839_v40 = vmax.f32 %v4261_v62, 0.0 }
 0x501   : > { %v2642_v61 = vpop.f32.mrf.mxu1 }
 0x502   : > { %4335 = vmatprep.mubr.bf16.mxu0 %v2905_v19  ;;  %v2837_v47 = vmax.f32 %v2642_v61, 0.0 }
 0x503   : > { %v4262_v26 = vpop.f32.mrf.mxu1  ;;  %4336 = vmatmul.mubr.bf16.gmra.mxu0 %v2906_v57 }
 0x504   : > { %v2840_v63 = vmax.f32 %v4262_v26, 0.0 }
 0x505   : > { %v2645_v6 = vpop.f32.mrf.mxu1 }
 0x506   : > { %v2838_v24 = vmax.f32 %v2645_v6, 0.0  ;;  %v2908_v30 = vpack.c.bf16 %v2840_v63, %v2839_v40 }
 0x507   : > { %v4265_v55 = vpop.f32.mrf.mxu1 }
 0x508   : > { %v2907_v41 = vpack.c.bf16 %v2838_v24, %v2837_v47  ;;  %v2843_v29 = vmax.f32 %v4265_v55, 0.0 }
 0x509   : > { %v2658_v15 = vpop.f32.mrf.mxu1 }
 0x50a   : > { %4339 = vmatprep.mubr.bf16.mxu0 %v2907_v41  ;;  %v2841_v14 = vmax.f32 %v2658_v15, 0.0 }
 0x50b   : > { %v4266_v17 = vpop.f32.mrf.mxu1  ;;  %4340 = vmatmul.mubr.bf16.gmra.mxu0 %v2908_v30 }
 0x50c   : > { %v2844_v49 = vmax.f32 %v4266_v17, 0.0 }
 0x50d   : > { %v2661_v35 = vpop.f32.mrf.mxu1 }
 0x50e   : > { %v2842_v7 = vmax.f32 %v2661_v35, 0.0  ;;  %v2910_v57 = vpack.c.bf16 %v2844_v49, %v2843_v29 }
 0x50f   : > { %v4269_v32 = vpop.f32.mrf.mxu1 }
 0x510   : > { %v2909_v19 = vpack.c.bf16 %v2842_v7, %v2841_v14  ;;  %v2847_v24 = vmax.f32 %v4269_v32, 0.0 }
 0x511   : > { %v2674_v26 = vpop.f32.mrf.mxu1 }
 0x512   : > { %4343 = vmatprep.mubr.bf16.mxu0 %v2909_v19  ;;  %v2845_v47 = vmax.f32 %v2674_v26, 0.0 }
 0x513   : > { %v4270_v61 = vpop.f32.mrf.mxu1  ;;  %4344 = vmatmul.mubr.bf16.gmra.mxu0 %v2910_v57 }
 0x514   : > { %v2848_v62 = vmax.f32 %v4270_v61, 0.0 }
 0x515   : > { %v2677_v6 = vpop.f32.mrf.mxu1 }
 0x516   : > { %v2846_v63 = vmax.f32 %v2677_v6, 0.0  ;;  %v2912_v30 = vpack.c.bf16 %v2848_v62, %v2847_v24 }
 0x517   : > { %v4273_v40 = vpop.f32.mrf.mxu1 }
 0x518   : > { %v2911_v41 = vpack.c.bf16 %v2846_v63, %v2845_v47  ;;  %v2851_v7 = vmax.f32 %v4273_v40, 0.0 }
 0x519   : > { %v2690_v17 = vpop.f32.mrf.mxu1 }
 0x51a   : > { %4347 = vmatprep.mubr.bf16.mxu0 %v2911_v41  ;;  %v2849_v14 = vmax.f32 %v2690_v17, 0.0 }
 0x51b   : > { %v4274_v15 = vpop.f32.mrf.mxu1  ;;  %4348 = vmatmul.mubr.bf16.gmra.mxu0 %v2912_v30 }
 0x51c   : > { %v2852_v55 = vmax.f32 %v4274_v15, 0.0 }
 0x51d   : > { %v2693_v35 = vpop.f32.mrf.mxu1 }
 0x51e   : > { %v2850_v49 = vmax.f32 %v2693_v35, 0.0  ;;  %v2914_v57 = vpack.c.bf16 %v2852_v55, %v2851_v7 }
 0x51f   : > { %v4277_v29 = vpop.f32.mrf.mxu1 }
 0x520   : > { %v2913_v19 = vpack.c.bf16 %v2850_v49, %v2849_v14  ;;  %v2855_v63 = vmax.f32 %v4277_v29, 0.0 }
 0x521   : > { %v2706_v61 = vpop.f32.mrf.mxu1 }
 0x522   : > { %4351 = vmatprep.mubr.bf16.mxu0 %v2913_v19  ;;  %v2853_v47 = vmax.f32 %v2706_v61, 0.0 }
 0x523   : > { %v4278_v26 = vpop.f32.mrf.mxu1  ;;  %4352 = vmatmul.mubr.bf16.gmra.mxu0 %v2914_v57 }
 0x524   : > { %v2856_v32 = vmax.f32 %v4278_v26, 0.0 }
 0x525   : > { %v2709_v6 = vpop.f32.mrf.mxu1 }
 0x526   : > { %v2854_v62 = vmax.f32 %v2709_v6, 0.0  ;;  %v2916_v30 = vpack.c.bf16 %v2856_v32, %v2855_v63 }
 0x527   : > { %v4281_v24 = vpop.f32.mrf.mxu1 }
 0x528   : > { %v2915_v41 = vpack.c.bf16 %v2854_v62, %v2853_v47  ;;  %v2859_v49 = vmax.f32 %v4281_v24, 0.0 }
 0x529   : > { %v2722_v15 = vpop.f32.mrf.mxu1 }
 0x52a   : > { %4355 = vmatprep.mubr.bf16.mxu0 %v2915_v41  ;;  %v2857_v14 = vmax.f32 %v2722_v15, 0.0 }
 0x52b   : > { %v4282_v17 = vpop.f32.mrf.mxu1  ;;  %4356 = vmatmul.mubr.bf16.gmra.mxu0 %v2916_v30 }
 0x52c   : > { %v2860_v40 = vmax.f32 %v4282_v17, 0.0 }
 0x52d   : > { %v2725_v35 = vpop.f32.mrf.mxu1 }
 0x52e   : > { %v2858_v55 = vmax.f32 %v2725_v35, 0.0  ;;  %v2918_v57 = vpack.c.bf16 %v2860_v40, %v2859_v49 }
 0x52f   : > { %v4285_v7 = vpop.f32.mrf.mxu1 }
 0x530   : > { %v2917_v19 = vpack.c.bf16 %v2858_v55, %v2857_v14  ;;  %v2863_v62 = vmax.f32 %v4285_v7, 0.0 }
 0x531   : > { %v2738_v26 = vpop.f32.mrf.mxu1 }
 0x532   : > { %4359 = vmatprep.mubr.bf16.mxu0 %v2917_v19  ;;  %v2861_v47 = vmax.f32 %v2738_v26, 0.0 }
 0x533   : > { %v4286_v61 = vpop.f32.mrf.mxu1  ;;  %4360 = vmatmul.mubr.bf16.gmra.mxu0 %v2918_v57 }
 0x534   : > { %v2864_v29 = vmax.f32 %v4286_v61, 0.0 }
 0x535   : > { %v2741_v6 = vpop.f32.mrf.mxu1 }
 0x536   : > { %v2862_v32 = vmax.f32 %v2741_v6, 0.0  ;;  %v2920_v30 = vpack.c.bf16 %v2864_v29, %v2863_v62 }
 0x537   : > { %v4289_v63 = vpop.f32.mrf.mxu1 }
 0x538   : > { %v2919_v41 = vpack.c.bf16 %v2862_v32, %v2861_v47  ;;  %v2867_v55 = vmax.f32 %v4289_v63, 0.0 }
 0x539   : > { %v2754_v17 = vpop.f32.mrf.mxu1 }
 0x53a   : > { %4363 = vmatprep.mubr.bf16.mxu0 %v2919_v41  ;;  %v2865_v14 = vmax.f32 %v2754_v17, 0.0 }
 0x53b   : > { %v4290_v15 = vpop.f32.mrf.mxu1  ;;  %4364 = vmatmul.mubr.bf16.gmra.mxu0 %v2920_v30 }
 0x53c   : > { %v2868_v24 = vmax.f32 %v4290_v15, 0.0 }
 0x53d   : > { %v2757_v35 = vpop.f32.mrf.mxu1 }
 0x53e   : > { %v2866_v40 = vmax.f32 %v2757_v35, 0.0  ;;  %v2922_v57 = vpack.c.bf16 %v2868_v24, %v2867_v55 }
 0x53f   : > { %v4293_v49 = vpop.f32.mrf.mxu1 }
 0x540   : > { %v2921_v19 = vpack.c.bf16 %v2866_v40, %v2865_v14  ;;  %v2871_v32 = vmax.f32 %v4293_v49, 0.0 }
 0x541   : > { %v2770_v61 = vpop.f32.mrf.mxu1 }
 0x542   : > { %4367 = vmatprep.mubr.bf16.mxu0 %v2921_v19  ;;  %v2869_v47 = vmax.f32 %v2770_v61, 0.0 }
 0x543   : > { %v4294_v26 = vpop.f32.mrf.mxu1  ;;  %4368 = vmatmul.mubr.bf16.gmra.mxu0 %v2922_v57 }
 0x544   : > { %v2872_v7 = vmax.f32 %v4294_v26, 0.0 }
 0x545   : > { %v2773_v6 = vpop.f32.mrf.mxu1 }
 0x546   : > { %v2870_v29 = vmax.f32 %v2773_v6, 0.0  ;;  %v2924_v30 = vpack.c.bf16 %v2872_v7, %v2871_v32 }
 0x547   : > { %v4297_v62 = vpop.f32.mrf.mxu1 }
 0x548   : > { %v2923_v41 = vpack.c.bf16 %v2870_v29, %v2869_v47  ;;  %v2875_v40 = vmax.f32 %v4297_v62, 0.0 }
 0x549   : > { %v2786_v15 = vpop.f32.mrf.mxu1 }
 0x54a   : > { %4371 = vmatprep.mubr.bf16.mxu0 %v2923_v41  ;;  %v2873_v14 = vmax.f32 %v2786_v15, 0.0 }
 0x54b   : > { %v4298_v17 = vpop.f32.mrf.mxu1  ;;  %4372 = vmatmul.mubr.bf16.gmra.mxu0 %v2924_v30  ;;  %v5963_v30 = vmax.f32 %v4837_v1, 0.0  ;;  %v5965_v1 = vmax.f32 %v4841_v3, 0.0 }
 0x54c   : > { %v2876_v63 = vmax.f32 %v4298_v17, 0.0 }
 0x54d   : > { %v2789_v35 = vpop.f32.mrf.mxu1 }
 0x54e   : > { %v2874_v24 = vmax.f32 %v2789_v35, 0.0  ;;  %v2926_v57 = vpack.c.bf16 %v2876_v63, %v2875_v40  ;;  %v5964_v35 = vmax.f32 %v4839_v2, 0.0 }
 0x54f   : > { %v4301_v55 = vpop.f32.mrf.mxu1 }
 0x550   : > { %v2925_v19 = vpack.c.bf16 %v2874_v24, %v2873_v14  ;;  %v2879_v29 = vmax.f32 %v4301_v55, 0.0 }
 0x551   : > { %v2802_v61 = vpop.f32.mrf.mxu1 }
 0x552   : > { %4375 = vmatprep.mubr.bf16.mxu0 %v2925_v19  ;;  %v2877_v6 = vmax.f32 %v2802_v61, 0.0 }
 0x553   : > { %v4302_v49 = vpop.f32.mrf.mxu1  ;;  %4376 = vmatmul.mubr.bf16.gmra.mxu0 %v2926_v57 }
 0x554   : > { %v2880_v26 = vmax.f32 %v4302_v49, 0.0 }
 0x555   : > { %v2805_v7 = vpop.f32.mrf.mxu1 }
 0x556   : > { %v2878_v47 = vmax.f32 %v2805_v7, 0.0  ;;  %v2928_v41 = vpack.c.bf16 %v2880_v26, %v2879_v29  ;;  %v5967_v26 = vmax.f32 %v4855_v13, 0.0  ;;  %v5969_v29 = vmax.f32 %v4870_v18, 0.0 }
 0x558   : > { %v2927_v32 = vpack.c.bf16 %v2878_v47, %v2877_v6  ;;  %v5968_v6 = vmax.f32 %v4868_v4, 0.0 }
 0x55a   : > { %4379 = vmatprep.mubr.bf16.mxu0 %v2927_v32 }
 0x55b   : > { %4380 = vmatmul.mubr.bf16.gmra.mxu0 %v2928_v41  ;;  %v5970_v41 = vmax.f32 %v4876_v22, 0.0 }
 0x5a3   : > { %v4321_v62 = vpop.f32.mrf.mxu0 }
 0x5a4   : > { %v3020_v15 = vadd.f32 %v4321_v62, %v5963_v30  ;;  %v5971_v30 = vmax.f32 %v4881_v28, 0.0 }
 0x5a5   : > { %v3011_v17 = vpop.f32.mrf.mxu0 }
 0x5a6   : > { %v3268_v63 = vadd.f32 %v5205_v20, %v3020_v15  ;;  %v3012_v14 = vadd.f32 %v3011_v17, %v5964_v35  ;;  %v5966_v20 = vmax.f32 %v4850_v53, 0.0  ;;  %v5972_v17 = vmax.f32 %v4894_v33, 0.0 }
 0x5a7   : > { %v4322_v24 = vpop.f32.mrf.mxu0  ;;  %v5973_v35 = vmax.f32 %v4896_v34, 0.0 }
 0x5a8   : > { %3332 = vst [vmem:[%s5420_s3 + $0x10] sm:$0xff] %v3268_v63  ;;  %v3266_v40 = vadd.f32 %v3012_v14, %v5207_v0  ;;  %v3023_v55 = vadd.f32 %v4322_v24, %v5965_v1  ;;  %v5974_v24 = vmax.f32 %v4899_v59, 0.0  ;;  %v5975_v1 = vmax.f32 %v4904_v39, 0.0 }
 0x5a9   : > { %v3014_v19 = vpop.f32.mrf.mxu0 }
 0x5aa   : > { %3330 = vst [vmem:[%s5420_s3] sm:$0xff] %v3266_v40  ;;  %v3269_v2 = vadd.f32 %v5215_v12, %v3023_v55  ;;  %v3015_v57 = vadd.f32 %v3014_v19, %v5966_v20  ;;  %v5976_v19 = vmax.f32 %v4914_v43, 0.0  ;;  %v5977_v20 = vmax.f32 %v4916_v44, 0.0 }
 0x5ab   : > { %v4325_v61 = vpop.f32.mrf.mxu0 }
 0x5ac   : > { %3333 = vst [vmem:[%s5420_s3 + $0x18] sm:$0xff] %v3269_v2  ;;  %v3267_v49 = vadd.f32 %v3015_v57, %v5217_v11  ;;  %v3036_v7 = vadd.f32 %v4325_v61, %v5967_v26  ;;  %v5978_v61 = vmax.f32 %v4919_v45, 0.0  ;;  %v5979_v26 = vmax.f32 %v4924_v46, 0.0 }
 0x5ad   : > { %v3027_v0 = vpop.f32.mrf.mxu0 }
 0x5ae   : > { %3331 = vst [vmem:[%s5420_s3 + $0x8] sm:$0xff] %v3267_v49  ;;  %v3272_v3 = vadd.f32 %v5226_v25, %v3036_v7  ;;  %v3028_v47 = vadd.f32 %v3027_v0, %v5968_v6  ;;  %v5980_v0 = vmax.f32 %v4934_v37, 0.0  ;;  %v5981_v6 = vmax.f32 %v4936_v8, 0.0 }
 0x5af   : > { %v4326_v12 = vpop.f32.mrf.mxu0 }
 0x5b0   : > { %3336 = vst [vmem:[%s5420_s3 + $0x30] sm:$0xff] %v3272_v3  ;;  %v3270_v53 = vadd.f32 %v3028_v47, %v5228_v9  ;;  %v3039_v32 = vadd.f32 %v4326_v12, %v5969_v29  ;;  %v5982_v12 = vmax.f32 %v4939_v48, 0.0  ;;  %v5983_v29 = vmax.f32 %v4944_v54, 0.0  ;;  %v5985_v48 = vld [vmem:[#allocation47_spill] sm:$0xff]  ;;  %v5988_v54 = vld [vmem:[#allocation48_spill] sm:$0xff] }
 0x5b1   : > { %v3030_v11 = vpop.f32.mrf.mxu0 }
 0x5b2   : > { %3334 = vst [vmem:[%s5420_s3 + $0x20] sm:$0xff] %v3270_v53  ;;  %v3273_v13 = vadd.f32 %v5233_v23, %v3039_v32  ;;  %v3031_v62 = vadd.f32 %v3030_v11, %v5970_v41  ;;  %v5984_v11 = vmax.f32 %v4954_v58, 0.0  ;;  %v5991_v58 = vld [vmem:[#allocation49_spill] sm:$0xff] }
 0x5b3   : > { %v4329_v25 = vpop.f32.mrf.mxu0 }
 0x5b4   : > { %3337 = vst [vmem:[%s5420_s3 + $0x38] sm:$0xff] %v3273_v13  ;;  %v3271_v4 = vadd.f32 %v3031_v62, %v5235_v27  ;;  %v3052_v15 = vadd.f32 %v4329_v25, %v5971_v30  ;;  %v5986_v62 = vld [vmem:[#allocation5_spill] sm:$0xff] }
 0x5b5   : > { %v3043_v9 = vpop.f32.mrf.mxu0  ;;  %v5987_v25 = vmax.f32 %v5986_v62, 0.0  ;;  %v6018_v62 = vld [vmem:[#allocation58_spill] sm:$0xff] }
 0x5b6   : > { %3335 = vst [vmem:[%s5420_s3 + $0x28] sm:$0xff] %v3271_v4  ;;  %v3276_v18 = vadd.f32 %v5244_v51, %v3052_v15  ;;  %v3044_v63 = vadd.f32 %v3043_v9, %v5972_v17  ;;  %v5989_v15 = vld [vmem:[#allocation6_spill] sm:$0xff] }
 0x5b7   : > { %v4330_v23 = vpop.f32.mrf.mxu0  ;;  %v5990_v9 = vmax.f32 %v5989_v15, 0.0  ;;  %v6021_v15 = vld [vmem:[#allocation59_spill] sm:$0xff] }
 0x5b8   : > { %3340 = vst [vmem:[%s5420_s3 + $0x50] sm:$0xff] %v3276_v18  ;;  %v3274_v22 = vadd.f32 %v3044_v63, %v5246_v56  ;;  %v3055_v14 = vadd.f32 %v4330_v23, %v5973_v35  ;;  %v5992_v63 = vld [vmem:[#allocation7_spill] sm:$0xff] }
 0x5b9   : > { %v3046_v27 = vpop.f32.mrf.mxu0  ;;  %v5993_v23 = vmax.f32 %v5992_v63, 0.0  ;;  %v6024_v63 = vld [vmem:[#allocation60_spill] sm:$0xff] }
 0x5ba   : > { %3338 = vst [vmem:[%s5420_s3 + $0x40] sm:$0xff] %v3274_v22  ;;  %v3277_v28 = vadd.f32 %v5248_v21, %v3055_v14  ;;  %v3047_v40 = vadd.f32 %v3046_v27, %v5974_v24  ;;  %v5994_v14 = vld [vmem:[#allocation50_spill] sm:$0xff] }
 0x5bb   : > { %v4333_v51 = vpop.f32.mrf.mxu0 }
 0x5bc   : > { %3341 = vst [vmem:[%s5420_s3 + $0x58] sm:$0xff] %v3277_v28  ;;  %v3275_v33 = vadd.f32 %v3047_v40, %v5250_v52  ;;  %v3068_v55 = vadd.f32 %v4333_v51, %v5975_v1  ;;  %v5995_v28 = vld [vmem:[#allocation8_spill] sm:$0xff] }
 0x5bd   : > { %v3059_v56 = vpop.f32.mrf.mxu0  ;;  %v5996_v24 = vmax.f32 %v5995_v28, 0.0  ;;  %v6027_v28 = vld [vmem:[#allocation61_spill] sm:$0xff] }
 0x5be   : > { %3339 = vst [vmem:[%s5420_s3 + $0x48] sm:$0xff] %v3275_v33  ;;  %v3280_v34 = vadd.f32 %v5256_v42, %v3068_v55  ;;  %v3060_v2 = vadd.f32 %v3059_v56, %v5976_v19  ;;  %v5997_v33 = vld [vmem:[#allocation51_spill] sm:$0xff]  ;;  %v5998_v55 = vld [vmem:[#allocation9_spill] sm:$0xff] }
 0x5bf   : > { %v4334_v21 = vpop.f32.mrf.mxu0  ;;  %v5999_v56 = vmax.f32 %v5998_v55, 0.0  ;;  %v6030_v55 = vld [vmem:[#allocation62_spill] sm:$0xff] }
 0x5c0   : > { %3344 = vst [vmem:[%s5420_s3 + $0x70] sm:$0xff] %v3280_v34  ;;  %v3278_v59 = vadd.f32 %v3060_v2, %v5258_v38  ;;  %v3071_v57 = vadd.f32 %v4334_v21, %v5977_v20  ;;  %v6000_v2 = vld [vmem:[#allocation52_spill] sm:$0xff] }
 0x5c1   : > { %v3062_v52 = vpop.f32.mrf.mxu0 }
 0x5c2   : > { %3342 = vst [vmem:[%s5420_s3 + $0x60] sm:$0xff] %v3278_v59  ;;  %v3281_v39 = vadd.f32 %v5260_v5, %v3071_v57  ;;  %v3063_v49 = vadd.f32 %v3062_v52, %v5978_v61  ;;  %v6001_v59 = vld [vmem:[#allocation10_spill] sm:$0xff] }
 0x5c3   : > { %v4337_v42 = vpop.f32.mrf.mxu0  ;;  %v6002_v20 = vmax.f32 %v6001_v59, 0.0  ;;  %v6033_v59 = vld [vmem:[#allocation63_spill] sm:$0xff] }
 0x5c4   : > { %3345 = vst [vmem:[%s5420_s3 + $0x78] sm:$0xff] %v3281_v39  ;;  %v3279_v43 = vadd.f32 %v3063_v49, %v5262_v31  ;;  %v3084_v7 = vadd.f32 %v4337_v42, %v5979_v26  ;;  %v6003_v39 = vld [vmem:[#allocation53_spill] sm:$0xff]  ;;  %v6004_v49 = vld [vmem:[#allocation11_spill] sm:$0xff] }
 0x5c5   : > { %v3075_v38 = vpop.f32.mrf.mxu0  ;;  %v6005_v42 = vmax.f32 %v6004_v49, 0.0  ;;  %v6036_v49 = vld [vmem:[#allocation64_spill] sm:$0xff] }
 0x5c6   : > { %3343 = vst [vmem:[%s5420_s3 + $0x68] sm:$0xff] %v3279_v43  ;;  %v3284_v44 = vadd.f32 %v5268_v10, %v3084_v7  ;;  %v3076_v3 = vadd.f32 %v3075_v38, %v5980_v0  ;;  %v6006_v7 = vld [vmem:[#allocation54_spill] sm:$0xff] }
 0x5c7   : > { %v4338_v5 = vpop.f32.mrf.mxu0 }
 0x5c8   : > { %3348 = vst [vmem:[%s5420_s3 + $0x90] sm:$0xff] %v3284_v44  ;;  %v3282_v45 = vadd.f32 %v3076_v3, %v5270_v16  ;;  %v3087_v47 = vadd.f32 %v4338_v5, %v5981_v6  ;;  %v6007_v44 = vld [vmem:[#allocation12_spill] sm:$0xff] }
 0x5c9   : > { %v3078_v31 = vpop.f32.mrf.mxu0  ;;  %v6008_v0 = vmax.f32 %v6007_v44, 0.0  ;;  %v6039_v44 = vld [vmem:[#allocation65_spill] sm:$0xff] }
 0x5ca   : > { %3346 = vst [vmem:[%s5420_s3 + $0x80] sm:$0xff] %v3282_v45  ;;  %v3285_v46 = vadd.f32 %v5272_v36, %v3087_v47  ;;  %v3079_v53 = vadd.f32 %v3078_v31, %v5982_v12  ;;  %v6009_v45 = vld [vmem:[#allocation55_spill] sm:$0xff]  ;;  %v6010_v47 = vld [vmem:[#allocation13_spill] sm:$0xff] }
 0x5cb   : > { %v4341_v10 = vpop.f32.mrf.mxu0  ;;  %v6011_v31 = vmax.f32 %v6010_v47, 0.0  ;;  %v6042_v47 = vld [vmem:[#allocation66_spill] sm:$0xff] }
 0x5cc   : > { %3349 = vst [vmem:[%s5420_s3 + $0x98] sm:$0xff] %v3285_v46  ;;  %v3283_v37 = vadd.f32 %v3079_v53, %v5274_v60  ;;  %v3100_v32 = vadd.f32 %v4341_v10, %v5983_v29  ;;  %v6012_v53 = vld [vmem:[#allocation56_spill] sm:$0xff] }
 0x5cd   : > { %v3091_v16 = vpop.f32.mrf.mxu0 }
 0x5ce   : > { %3347 = vst [vmem:[%s5420_s3 + $0x88] sm:$0xff] %v3283_v37  ;;  %v3288_v8 = vadd.f32 %v5280_v50, %v3100_v32  ;;  %v3092_v13 = vadd.f32 %v3091_v16, %v5984_v11  ;;  %v6013_v37 = vld [vmem:[#allocation14_spill] sm:$0xff] }
 0x5cf   : > { %v4342_v36 = vpop.f32.mrf.mxu0  ;;  %v6014_v29 = vmax.f32 %v6013_v37, 0.0  ;;  %v6045_v37 = vld [vmem:[#allocation67_spill] sm:$0xff] }
 0x5d0   : > { %3352 = vst [vmem:[%s5420_s3 + $0xb0] sm:$0xff] %v3288_v8  ;;  %v3286_v41 = vadd.f32 %v3092_v13, %v5985_v48  ;;  %v3103_v4 = vadd.f32 %v4342_v36, %v5987_v25  ;;  %v6015_v8 = vld [vmem:[#allocation57_spill] sm:$0xff]  ;;  %v6016_v13 = vld [vmem:[#allocation15_spill] sm:$0xff] }
 0x5d1   : > { %v3094_v60 = vpop.f32.mrf.mxu0  ;;  %v6017_v36 = vmax.f32 %v6016_v13, 0.0  ;;  %v6048_v13 = vld [vmem:[#allocation68_spill] sm:$0xff] }
 0x5d2   : > { %3350 = vst [vmem:[%s5420_s3 + $0xa0] sm:$0xff] %v3286_v41  ;;  %v3289_v30 = vadd.f32 %v5988_v54, %v3103_v4  ;;  %v3095_v18 = vadd.f32 %v3094_v60, %v5990_v9  ;;  %v6019_v4 = vld [vmem:[#allocation16_spill] sm:$0xff] }
 0x5d3   : > { %v4345_v50 = vpop.f32.mrf.mxu0  ;;  %v6020_v60 = vmax.f32 %v6019_v4, 0.0  ;;  %v6051_v4 = vld [vmem:[#allocation69_spill] sm:$0xff] }
 0x5d4   : > { %3353 = vst [vmem:[%s5420_s3 + $0xb8] sm:$0xff] %v3289_v30  ;;  %v3287_v17 = vadd.f32 %v3095_v18, %v5991_v58  ;;  %v3116_v22 = vadd.f32 %v4345_v50, %v5993_v23  ;;  %v6022_v18 = vld [vmem:[#allocation17_spill] sm:$0xff] }
 0x5d5   : > { %v3107_v35 = vpop.f32.mrf.mxu0  ;;  %v6023_v50 = vmax.f32 %v6022_v18, 0.0  ;;  %v6054_v18 = vld [vmem:[#allocation70_spill] sm:$0xff] }
 0x5d6   : > { %3351 = vst [vmem:[%s5420_s3 + $0xa8] sm:$0xff] %v3287_v17  ;;  %v3292_v27 = vadd.f32 %v5994_v14, %v3116_v22  ;;  %v3108_v40 = vadd.f32 %v3107_v35, %v5996_v24  ;;  %v6025_v22 = vld [vmem:[#allocation18_spill] sm:$0xff] }
 0x5d7   : > { %v4346_v51 = vpop.f32.mrf.mxu0  ;;  %v6026_v35 = vmax.f32 %v6025_v22, 0.0  ;;  %v6057_v22 = vld [vmem:[#allocation71_spill] sm:$0xff] }
 0x5d8   : > { %3356 = vst [vmem:[%s5420_s3 + $0xd0] sm:$0xff] %v3292_v27  ;;  %v3290_v1 = vadd.f32 %v3108_v40, %v5997_v33  ;;  %v3119_v34 = vadd.f32 %v4346_v51, %v5999_v56  ;;  %v6028_v40 = vld [vmem:[#allocation19_spill] sm:$0xff] }
 0x5d9   : > { %v3110_v19 = vpop.f32.mrf.mxu0  ;;  %v6029_v51 = vmax.f32 %v6028_v40, 0.0  ;;  %v6060_v40 = vld [vmem:[#allocation72_spill] sm:$0xff] }
 0x5da   : > { %3354 = vst [vmem:[%s5420_s3 + $0xc0] sm:$0xff] %v3290_v1  ;;  %v3293_v21 = vadd.f32 %v6000_v2, %v3119_v34  ;;  %v3111_v57 = vadd.f32 %v3110_v19, %v6002_v20  ;;  %v6031_v34 = vld [vmem:[#allocation20_spill] sm:$0xff] }
 0x5db   : > { %v4349_v52 = vpop.f32.mrf.mxu0  ;;  %v6032_v19 = vmax.f32 %v6031_v34, 0.0  ;;  %v6063_v34 = vld [vmem:[#allocation73_spill] sm:$0xff] }
 0x5dc   : > { %3357 = vst [vmem:[%s5420_s3 + $0xd8] sm:$0xff] %v3293_v21  ;;  %v3291_v61 = vadd.f32 %v3111_v57, %v6003_v39  ;;  %v3132_v43 = vadd.f32 %v4349_v52, %v6005_v42  ;;  %v6034_v57 = vld [vmem:[#allocation21_spill] sm:$0xff] }
 0x5dd   : > { %v3123_v26 = vpop.f32.mrf.mxu0  ;;  %v6035_v52 = vmax.f32 %v6034_v57, 0.0  ;;  %v6066_v57 = vld [vmem:[#allocation74_spill] sm:$0xff] }
 0x5de   : > { %3355 = vst [vmem:[%s5420_s3 + $0xc8] sm:$0xff] %v3291_v61  ;;  %v3296_v38 = vadd.f32 %v6006_v7, %v3132_v43  ;;  %v3124_v3 = vadd.f32 %v3123_v26, %v6008_v0  ;;  %v6037_v43 = vld [vmem:[#allocation22_spill] sm:$0xff] }
 0x5df   : > { %v4350_v5 = vpop.f32.mrf.mxu0  ;;  %v6038_v26 = vmax.f32 %v6037_v43, 0.0  ;;  %v6069_v43 = vld [vmem:[#allocation75_spill] sm:$0xff] }
 0x5e0   : > { %3360 = vst [vmem:[%s5420_s3 + $0xf0] sm:$0xff] %v3296_v38  ;;  %v3294_v6 = vadd.f32 %v3124_v3, %v6009_v45  ;;  %v3135_v46 = vadd.f32 %v4350_v5, %v6011_v31  ;;  %v6040_v3 = vld [vmem:[#allocation23_spill] sm:$0xff] }
 0x5e1   : > { %v3126_v12 = vpop.f32.mrf.mxu0  ;;  %v6041_v5 = vmax.f32 %v6040_v3, 0.0  ;;  %v6072_v3 = vld [vmem:[#allocation76_spill] sm:$0xff] }
 0x5e2   : > { %3358 = vst [vmem:[%s5420_s3 + $0xe0] sm:$0xff] %v3294_v6  ;;  %v3297_v10 = vadd.f32 %v6012_v53, %v3135_v46  ;;  %v3127_v32 = vadd.f32 %v3126_v12, %v6014_v29  ;;  %v6043_v46 = vld [vmem:[#allocation24_spill] sm:$0xff] }
 0x5e3   : > { %v4353_v16 = vpop.f32.mrf.mxu0  ;;  %v6044_v12 = vmax.f32 %v6043_v46, 0.0  ;;  %v6075_v46 = vld [vmem:[#allocation77_spill] sm:$0xff] }
 0x5e4   : > { %3361 = vst [vmem:[%s5420_s3 + $0xf8] sm:$0xff] %v3297_v10  ;;  %v3295_v11 = vadd.f32 %v3127_v32, %v6015_v8  ;;  %v3148_v48 = vadd.f32 %v4353_v16, %v6017_v36  ;;  %v6046_v32 = vld [vmem:[#allocation25_spill] sm:$0xff] }
 0x5e5   : > { %v3139_v41 = vpop.f32.mrf.mxu0  ;;  %v6047_v16 = vmax.f32 %v6046_v32, 0.0  ;;  %v6078_v32 = vld [vmem:[#allocation78_spill] sm:$0xff] }
 0x5e6   : > { %3359 = vst [vmem:[%s5420_s3 + $0xe8] sm:$0xff] %v3295_v11  ;;  %v3300_v25 = vadd.f32 %v6018_v62, %v3148_v48  ;;  %v3140_v54 = vadd.f32 %v3139_v41, %v6020_v60  ;;  %v6049_v48 = vld [vmem:[#allocation26_spill] sm:$0xff] }
 0x5e7   : > { %v4354_v30 = vpop.f32.mrf.mxu0  ;;  %v6050_v41 = vmax.f32 %v6049_v48, 0.0  ;;  %v6081_v48 = vld [vmem:[#allocation79_spill] sm:$0xff] }
 0x5e8   : > { %3364 = vst [vmem:[%s5420_s3 + $0x110] sm:$0xff] %v3300_v25  ;;  %v3298_v9 = vadd.f32 %v3140_v54, %v6021_v15  ;;  %v3151_v58 = vadd.f32 %v4354_v30, %v6023_v50  ;;  %v6052_v54 = vld [vmem:[#allocation27_spill] sm:$0xff] }
 0x5e9   : > { %v3142_v17 = vpop.f32.mrf.mxu0  ;;  %v6053_v30 = vmax.f32 %v6052_v54, 0.0  ;;  %v6084_v54 = vld [vmem:[#allocation80_spill] sm:$0xff] }
 0x5ea   : > { %3362 = vst [vmem:[%s5420_s3 + $0x100] sm:$0xff] %v3298_v9  ;;  %v3301_v23 = vadd.f32 %v6024_v63, %v3151_v58  ;;  %v3143_v14 = vadd.f32 %v3142_v17, %v6026_v35  ;;  %v6055_v58 = vld [vmem:[#allocation28_spill] sm:$0xff] }
 0x5eb   : > { %v4357_v27 = vpop.f32.mrf.mxu0  ;;  %v6056_v17 = vmax.f32 %v6055_v58, 0.0  ;;  %v6087_v58 = vld [vmem:[#allocation81_spill] sm:$0xff] }
 0x5ec   : > { %3365 = vst [vmem:[%s5420_s3 + $0x118] sm:$0xff] %v3301_v23  ;;  %v3299_v24 = vadd.f32 %v3143_v14, %v6027_v28  ;;  %v3164_v33 = vadd.f32 %v4357_v27, %v6029_v51  ;;  %v6058_v14 = vld [vmem:[#allocation29_spill] sm:$0xff] }
 0x5ed   : > { %v3155_v1 = vpop.f32.mrf.mxu0  ;;  %v6059_v27 = vmax.f32 %v6058_v14, 0.0  ;;  %v6090_v14 = vld [vmem:[#allocation82_spill] sm:$0xff] }
 0x5ee   : > { %3363 = vst [vmem:[%s5420_s3 + $0x108] sm:$0xff] %v3299_v24  ;;  %v3304_v56 = vadd.f32 %v6030_v55, %v3164_v33  ;;  %v3156_v2 = vadd.f32 %v3155_v1, %v6032_v19  ;;  %v6061_v33 = vld [vmem:[#allocation30_spill] sm:$0xff] }
 0x5ef   : > { %v4358_v21 = vpop.f32.mrf.mxu0  ;;  %v6062_v1 = vmax.f32 %v6061_v33, 0.0  ;;  %v6093_v33 = vld [vmem:[#allocation83_spill] sm:$0xff] }
 0x5f0   : > { %3368 = vst [vmem:[%s5420_s3 + $0x130] sm:$0xff] %v3304_v56  ;;  %v3302_v20 = vadd.f32 %v3156_v2, %v6033_v59  ;;  %v3167_v39 = vadd.f32 %v4358_v21, %v6035_v52  ;;  %v6064_v2 = vld [vmem:[#allocation31_spill] sm:$0xff] }
 0x5f1   : > { %v3158_v61 = vpop.f32.mrf.mxu0  ;;  %v6065_v21 = vmax.f32 %v6064_v2, 0.0  ;;  %v6096_v2 = vld [vmem:[#allocation84_spill] sm:$0xff] }
 0x5f2   : > { %3366 = vst [vmem:[%s5420_s3 + $0x120] sm:$0xff] %v3302_v20  ;;  %v3305_v42 = vadd.f32 %v6036_v49, %v3167_v39  ;;  %v3159_v7 = vadd.f32 %v3158_v61, %v6038_v26  ;;  %v6067_v39 = vld [vmem:[#allocation32_spill] sm:$0xff] }
 0x5f3   : > { %v4361_v38 = vpop.f32.mrf.mxu0  ;;  %v6068_v61 = vmax.f32 %v6067_v39, 0.0  ;;  %v6099_v39 = vld [vmem:[#allocation85_spill] sm:$0xff] }
 0x5f4   : > { %3369 = vst [vmem:[%s5420_s3 + $0x138] sm:$0xff] %v3305_v42  ;;  %v3303_v0 = vadd.f32 %v3159_v7, %v6039_v44  ;;  %v3180_v45 = vadd.f32 %v4361_v38, %v6041_v5  ;;  %v6070_v7 = vld [vmem:[#allocation33_spill] sm:$0xff] }
 0x5f5   : > { %v3171_v6 = vpop.f32.mrf.mxu0  ;;  %v6071_v38 = vmax.f32 %v6070_v7, 0.0  ;;  %v6102_v7 = vld [vmem:[#allocation86_spill] sm:$0xff] }
 0x5f6   : > { %3367 = vst [vmem:[%s5420_s3 + $0x128] sm:$0xff] %v3303_v0  ;;  %v3308_v31 = vadd.f32 %v6042_v47, %v3180_v45  ;;  %v3172_v53 = vadd.f32 %v3171_v6, %v6044_v12  ;;  %v6073_v45 = vld [vmem:[#allocation34_spill] sm:$0xff] }
 0x5f7   : > { %v4362_v10 = vpop.f32.mrf.mxu0  ;;  %v6074_v6 = vmax.f32 %v6073_v45, 0.0  ;;  %v6105_v45 = vld [vmem:[#allocation87_spill] sm:$0xff] }
 0x5f8   : > { %3372 = vst [vmem:[%s5420_s3 + $0x150] sm:$0xff] %v3308_v31  ;;  %v3306_v29 = vadd.f32 %v3172_v53, %v6045_v37  ;;  %v3183_v8 = vadd.f32 %v4362_v10, %v6047_v16  ;;  %v6076_v53 = vld [vmem:[#allocation35_spill] sm:$0xff] }
 0x5f9   : > { %v3174_v11 = vpop.f32.mrf.mxu0  ;;  %v6077_v10 = vmax.f32 %v6076_v53, 0.0  ;;  %v6108_v53 = vld [vmem:[#allocation88_spill] sm:$0xff] }
 0x5fa   : > { %3370 = vst [vmem:[%s5420_s3 + $0x140] sm:$0xff] %v3306_v29  ;;  %v3309_v36 = vadd.f32 %v6048_v13, %v3183_v8  ;;  %v3175_v62 = vadd.f32 %v3174_v11, %v6050_v41  ;;  %v6079_v8 = vld [vmem:[#allocation36_spill] sm:$0xff] }
 0x5fb   : > { %v4365_v25 = vpop.f32.mrf.mxu0  ;;  %v6080_v11 = vmax.f32 %v6079_v8, 0.0 }
 0x5fc   : > { %3373 = vst [vmem:[%s5420_s3 + $0x158] sm:$0xff] %v3309_v36  ;;  %v3307_v60 = vadd.f32 %v3175_v62, %v6051_v4  ;;  %v3196_v15 = vadd.f32 %v4365_v25, %v6053_v30  ;;  %v6082_v62 = vld [vmem:[#allocation37_spill] sm:$0xff] }
 0x5fd   : > { %v3187_v9 = vpop.f32.mrf.mxu0  ;;  %v6083_v25 = vmax.f32 %v6082_v62, 0.0 }
 0x5fe   : > { %3371 = vst [vmem:[%s5420_s3 + $0x148] sm:$0xff] %v3307_v60  ;;  %v3312_v50 = vadd.f32 %v6054_v18, %v3196_v15  ;;  %v3188_v63 = vadd.f32 %v3187_v9, %v6056_v17  ;;  %v6085_v15 = vld [vmem:[#allocation38_spill] sm:$0xff] }
 0x5ff   : > { %v4366_v23 = vpop.f32.mrf.mxu0  ;;  %v6086_v9 = vmax.f32 %v6085_v15, 0.0 }
 0x600   : > { %3376 = vst [vmem:[%s5420_s3 + $0x170] sm:$0xff] %v3312_v50  ;;  %v3310_v35 = vadd.f32 %v3188_v63, %v6057_v22  ;;  %v3199_v28 = vadd.f32 %v4366_v23, %v6059_v27  ;;  %v6088_v63 = vld [vmem:[#allocation39_spill] sm:$0xff] }
 0x601   : > { %v3190_v24 = vpop.f32.mrf.mxu0  ;;  %v6089_v23 = vmax.f32 %v6088_v63, 0.0 }
 0x602   : > { %3374 = vst [vmem:[%s5420_s3 + $0x160] sm:$0xff] %v3310_v35  ;;  %v3313_v51 = vadd.f32 %v6060_v40, %v3199_v28  ;;  %v3191_v55 = vadd.f32 %v3190_v24, %v6062_v1  ;;  %v6091_v28 = vld [vmem:[#allocation40_spill] sm:$0xff] }
 0x603   : > { %v4369_v56 = vpop.f32.mrf.mxu0  ;;  %v6092_v24 = vmax.f32 %v6091_v28, 0.0 }
 0x604   : > { %3377 = vst [vmem:[%s5420_s3 + $0x178] sm:$0xff] %v3313_v51  ;;  %v3311_v19 = vadd.f32 %v3191_v55, %v6063_v34  ;;  %v3212_v59 = vadd.f32 %v4369_v56, %v6065_v21  ;;  %v6094_v55 = vld [vmem:[#allocation41_spill] sm:$0xff] }
 0x605   : > { %v3203_v20 = vpop.f32.mrf.mxu0  ;;  %v6095_v56 = vmax.f32 %v6094_v55, 0.0 }
 0x606   : > { %3375 = vst [vmem:[%s5420_s3 + $0x168] sm:$0xff] %v3311_v19  ;;  %v3316_v52 = vadd.f32 %v6066_v57, %v3212_v59  ;;  %v3204_v49 = vadd.f32 %v3203_v20, %v6068_v61  ;;  %v6097_v59 = vld [vmem:[#allocation42_spill] sm:$0xff] }
 0x607   : > { %v4370_v42 = vpop.f32.mrf.mxu0  ;;  %v6098_v20 = vmax.f32 %v6097_v59, 0.0 }
 0x608   : > { %3380 = vst [vmem:[%s5420_s3 + $0x190] sm:$0xff] %v3316_v52  ;;  %v3314_v26 = vadd.f32 %v3204_v49, %v6069_v43  ;;  %v3215_v44 = vadd.f32 %v4370_v42, %v6071_v38  ;;  %v6100_v49 = vld [vmem:[#allocation43_spill] sm:$0xff] }
 0x609   : > { %v3206_v0 = vpop.f32.mrf.mxu0  ;;  %v6101_v42 = vmax.f32 %v6100_v49, 0.0 }
 0x60a   : > { %3378 = vst [vmem:[%s5420_s3 + $0x180] sm:$0xff] %v3314_v26  ;;  %v3317_v5 = vadd.f32 %v6072_v3, %v3215_v44  ;;  %v3207_v47 = vadd.f32 %v3206_v0, %v6074_v6  ;;  %v6103_v44 = vld [vmem:[#allocation44_spill] sm:$0xff] }
 0x60b   : > { %v4373_v31 = vpop.f32.mrf.mxu0  ;;  %v6104_v0 = vmax.f32 %v6103_v44, 0.0 }
 0x60c   : > { %3381 = vst [vmem:[%s5420_s3 + $0x198] sm:$0xff] %v3317_v5  ;;  %v3315_v12 = vadd.f32 %v3207_v47, %v6075_v46  ;;  %v3228_v37 = vadd.f32 %v4373_v31, %v6077_v10  ;;  %v6106_v47 = vld [vmem:[#allocation45_spill] sm:$0xff] }
 0x60d   : > { %v3219_v29 = vpop.f32.mrf.mxu0  ;;  %v6107_v31 = vmax.f32 %v6106_v47, 0.0 }
 0x60e   : > { %3379 = vst [vmem:[%s5420_s3 + $0x188] sm:$0xff] %v3315_v12  ;;  %v3320_v16 = vadd.f32 %v6078_v32, %v3228_v37  ;;  %v3220_v13 = vadd.f32 %v3219_v29, %v6080_v11  ;;  %v6109_v37 = vld [vmem:[#allocation46_spill] sm:$0xff] }
 0x60f   : > { %v4374_v36 = vpop.f32.mrf.mxu0  ;;  %v6110_v29 = vmax.f32 %v6109_v37, 0.0 }
 0x610   : > { %3384 = vst [vmem:[%s5420_s3 + $0x1b0] sm:$0xff] %v3320_v16  ;;  %v3318_v41 = vadd.f32 %v3220_v13, %v6081_v48  ;;  %v3231_v4 = vadd.f32 %v4374_v36, %v6083_v25  ;;  %v6111_v16 = vld [vmem:[#allocation89_spill] sm:$0xff] }
 0x611   : > { %v3222_v60 = vpop.f32.mrf.mxu0 }
 0x612   : > { %3382 = vst [vmem:[%s5420_s3 + $0x1a0] sm:$0xff] %v3318_v41  ;;  %v3321_v30 = vadd.f32 %v6084_v54, %v3231_v4  ;;  %v3223_v18 = vadd.f32 %v3222_v60, %v6086_v9 }
 0x613   : > { %v4377_v50 = vpop.f32.mrf.mxu0 }
 0x614   : > { %3385 = vst [vmem:[%s5420_s3 + $0x1b8] sm:$0xff] %v3321_v30  ;;  %v3319_v17 = vadd.f32 %v3223_v18, %v6087_v58  ;;  %v3244_v22 = vadd.f32 %v4377_v50, %v6089_v23 }
 0x615   : > { %v3235_v35 = vpop.f32.mrf.mxu0 }
 0x616   : > { %3383 = vst [vmem:[%s5420_s3 + $0x1a8] sm:$0xff] %v3319_v17  ;;  %v3324_v27 = vadd.f32 %v6090_v14, %v3244_v22  ;;  %v3236_v40 = vadd.f32 %v3235_v35, %v6092_v24 }
 0x617   : > { %v4378_v51 = vpop.f32.mrf.mxu0 }
 0x618   : > { %3388 = vst [vmem:[%s5420_s3 + $0x1d0] sm:$0xff] %v3324_v27  ;;  %v3322_v1 = vadd.f32 %v3236_v40, %v6093_v33  ;;  %v3247_v34 = vadd.f32 %v4378_v51, %v6095_v56 }
 0x619   : > { %v3238_v19 = vpop.f32.mrf.mxu0 }
 0x61a   : > { %3386 = vst [vmem:[%s5420_s3 + $0x1c0] sm:$0xff] %v3322_v1  ;;  %v3325_v21 = vadd.f32 %v6096_v2, %v3247_v34  ;;  %v3239_v57 = vadd.f32 %v3238_v19, %v6098_v20 }
 0x61b   : > { %v4381_v52 = vpop.f32.mrf.mxu0 }
 0x61c   : > { %3389 = vst [vmem:[%s5420_s3 + $0x1d8] sm:$0xff] %v3325_v21  ;;  %v3323_v61 = vadd.f32 %v3239_v57, %v6099_v39  ;;  %v3260_v43 = vadd.f32 %v4381_v52, %v6101_v42 }
 0x61d   : > { %v3251_v26 = vpop.f32.mrf.mxu0 }
 0x61e   : > { %3387 = vst [vmem:[%s5420_s3 + $0x1c8] sm:$0xff] %v3323_v61  ;;  %v3328_v38 = vadd.f32 %v6102_v7, %v3260_v43  ;;  %v3252_v3 = vadd.f32 %v3251_v26, %v6104_v0 }
 0x61f   : > { %v4382_v5 = vpop.f32.mrf.mxu0 }
 0x620   : > { %3392 = vst [vmem:[%s5420_s3 + $0x1f0] sm:$0xff] %v3328_v38  ;;  %v3326_v6 = vadd.f32 %v3252_v3, %v6105_v45  ;;  %v3263_v46 = vadd.f32 %v4382_v5, %v6107_v31 }
 0x621   : > { %v3254_v12 = vpop.f32.mrf.mxu0 }
 0x622   : > { %3390 = vst [vmem:[%s5420_s3 + $0x1e0] sm:$0xff] %v3326_v6  ;;  %v3329_v10 = vadd.f32 %v6108_v53, %v3263_v46  ;;  %v3255_v32 = vadd.f32 %v3254_v12, %v6110_v29 }
 0x624   : > { %3393 = vst [vmem:[%s5420_s3 + $0x1f8] sm:$0xff] %v3329_v10  ;;  %v3327_v8 = vadd.f32 %v3255_v32, %v6111_v16 }
 0x626   : > { %3391 = vst [vmem:[%s5420_s3 + $0x1e8] sm:$0xff] %v3327_v8 }
 0x627   : > { %4488 = shalt.err (!%p4485_p3)
}
 0x628   : > { %s4489_s22 = scalar_lea.hbm %s5675_s8, 8192  ;;  %s4493_s25 = scalar_lea.hbm %s5726_s2, 16384 }
 0x629   : > { %p4490_p4 = scmp.ne.s32.totalorder %s5675_s8, %s4489_s22  ;;  %p4494_p9 = scmp.lt.s32.totalorder %s5675_s8, %s5726_s2 }
 0x62a   : > { %p4495_p10 = scmp.lt.s32.totalorder %s4493_s25, %s4489_s22 }
 0x62b   : > { %p4491_p7 = pnand %p4490_p4, %p4593_p5 }
 0x62c   : > { %p4496_p11 = por %p4495_p10, %p4494_p9 }
 0x62d   : > { %p4492_p8 = pneg %p4491_p7 }
 0x62f   : > { %p4497_p12 = pnand %p4496_p11, %p4492_p8 }
 0x631   : > { %4500 = shalt.err (!%p4497_p12)
}
 0x632   : > { %s4538_s28 = smov 128   ;;  %s4539_s29 = smov 8  }
 0x633   : > { %4385 = dma.vmem_to_hbm [thread:$0]  (%p4593_p5), %s5677_s5, 8192, %s5675_s8, %s5684_s13, %s4538_s28, %s4538_s28, %s4539_s29  }
 0x634 PF: > { %p4391_p13 = scmp.ge.s32.totalorder %s4535_s12, 2  ;;  %s3423_s30 = sand.u32 1, %s4523_s9  }
 0x635   : > { %s3424_s3 = scalar_lea.sflag [#allocation3], %s3423_s30 }
 0x636   : > { %p4388_p0 = pnand %p4391_p13, %p4597_p6 }
 0x638   : > { %p4389_p1 = pneg %p4388_p0 }
 0x63a   : > { %4518 = dma.done.wait (%p4389_p1), %s3424_s3, 8192  }
 0x63b   : > { %4520 = vsyncadd (%p4389_p1), %s3424_s3, 4294959104  ;;  %p12_p2 = scmp.ge.s32.totalorder %s4580_s15, 4   ;;  %s6112_s9 = smov %s4527_s10 }
 0x63c   : > { %s6113_s10 = smov %s4531_s11  ;;  %s6114_s11 = smov %s4591_s18 }
 0x63d   : > { %s6115_s12 = smov %s4580_s15  ;;  %14 = sbr.rel (!%p12_p2) target bundleno = 3 (0x3), region = 63 }
 0x642   :  { %3429 = vsyncpa [#allocation3], 1 }
 0x643   :  { %3431 = vsyncpa [#allocation3 + $0x1], 1 }

</bundles_post_ra>
